<compile_context>
chip_gen: v7x
topology: tpu7x:2x2x1
jax: 0.10.0
libtpu: 0.0.40
codegen_flags: <defaults>
</compile_context>

<pallas_src>
import numpy as np
import jax
import jax.numpy as jnp
from jax.experimental import pallas as pl
from jax.experimental.pallas import tpu as pltpu


def _make_double_conv_kernel(H, W, C_in, C_out, NB):
    HW = H * W
    TAPS = tuple((dy, dx) for dy in (-1, 0, 1) for dx in (-1, 0, 1))  # k = (dy+1)*3+(dx+1)

    def kernel(x_ref, mask_ref, w1_ref, w2_ref, t_ref, o_ref):
        f32 = jnp.float32
        # Hoisted, once-per-grid-step loads (all lane-dense / tiny):
        masks = mask_ref[...]                 # (9, HW)       boundary masks
        W1 = w1_ref[...]                      # (C_out, 9*C_in)   BN-scale-folded conv1 weights
        W2 = w2_ref[...]                      # (C_out, 9*C_out)  BN-scale-folded conv2 weights
        tt = t_ref[...]                       # (2, C_out, 1)     merged BN shifts
        t1, t2 = tt[0], tt[1]
        xall = x_ref[...].astype(f32)         # (NB, C_in, HW)

        def conv_bn_relu(xin, c_src, Wd, t):
            # xin: (c_src, HW) f32, spatial flattened on the lane dim.
            # out[o,p] = max( sum_{k,c} Wd[o, k*c_src+c] * x[c, p + d_k] + t[o], 0 )
            acc = jnp.zeros((C_out, HW), f32)
            for k, (dy, dx) in enumerate(TAPS):
                d = dy * W + dx                                   # flattened neighbour offset
                if d == 0:
                    xs = xin
                else:
                    # xs[p] = xin[p + d]; wrapped / out-of-image taps zeroed by mask.
                    xs = pltpu.roll(xin, shift=(-d) % HW, axis=1) * masks[k:k + 1, :]
                base = k * c_src
                for c in range(c_src):
                    # Tiny channels: VPU broadcast FMA (C_out,1)*(1,HW); weight column is a
                    # slice of the already-loaded dense weight value (no per-(k,c) VMEM load).
                    acc = acc + Wd[:, base + c:base + c + 1] * xs[c:c + 1, :]
            return jnp.maximum(acc + t, 0.0)   # fused (conv-bias+BN shift) + ReLU

        for nb in range(NB):                   # static unroll over the batch block
            h1 = conv_bn_relu(xall[nb], C_in, W1, t1)
            h2 = conv_bn_relu(h1, C_out, W2, t2)
            o_ref[nb] = h2.astype(o_ref.dtype)

    return kernel


def _dense_scaled_weight(w, s):
    # (C_out, C_src, 3, 3) -> (C_out, 9*C_src), tap-major / channel-minor, lane-dense,
    # with the folded BN scale s (C_out,) multiplied in:
    #   Wd[o, (ky*3+kx)*C_src + c] = s[o] * w[o, c, ky, kx]
    c_out, c_src = w.shape[0], w.shape[1]
    wd = jnp.transpose(w, (0, 2, 3, 1)).reshape(c_out, 9 * c_src)
    return (wd * s[:, None]).astype(jnp.float32)


def _fold_bn(conv_bias, gamma, beta, mean, var, eps):
    # BN(conv(x)+b) = conv(x)*s + t  with  s = gamma/sqrt(var+eps), t = (b-mean)*s + beta
    # TODO(synk): training-mode BatchNorm (batch statistics + running-stat update) is not
    # implemented; this folds inference-mode running stats.
    s = gamma / jnp.sqrt(var + eps)
    t = (conv_bias - mean) * s + beta
    return s.astype(jnp.float32), t.astype(jnp.float32).reshape(-1, 1)


def _boundary_masks(H, W):
    # masks[k, p] = 1.0 iff tap (dy,dx) at destination p stays inside the image (zero padding).
    HW = H * W
    pos = np.arange(HW)
    row, col = pos // W, pos % W
    ms = []
    for dy in (-1, 0, 1):
        for dx in (-1, 0, 1):
            ok = np.ones(HW, dtype=bool)
            if dy == -1:
                ok &= row >= 1
            if dy == 1:
                ok &= row <= H - 2
            if dx == -1:
                ok &= col >= 1
            if dx == 1:
                ok &= col <= W - 2
            ms.append(ok)
    return jnp.asarray(np.stack(ms).astype(np.float32))       # (9, HW), lane-dense


def double_conv_pallas(x, params, eps=1e-5, images_per_step=None):
    """(Conv2d 3x3 pad=1 -> BatchNorm2d(eval) -> ReLU) * 2, fused in one Pallas kernel.

    x: (N, C_in, H, W) float32 (NCHW); returns (N, C_out, H, W).
    """
    (w1, b1, g1, be1, m1, v1, w2, b2, g2, be2, m2, v2) = params
    N, C_in, H, W = x.shape
    C_out = w1.shape[0]
    HW = H * W
    # NOTE: H*W is a multiple of 128 here (16*16=256) so all stores are unmasked lane-dense
    # vst; other spatial sizes remain correct, only slower (masked stores).

    if images_per_step is None:
        # Whole batch in one grid step when it comfortably fits VMEM (kills the per-step
        # overhead on single-TC v5e/v6e).  On v7x prefer a grid length that is a multiple
        # of 2 (one step per TensorCore) by passing images_per_step = ceil(N/2).
        per_image_bytes = 4 * HW * (C_in + 2 * C_out) * 2     # in+out blocks, double-buffered
        images_per_step = max(1, min(N, (8 * 1024 * 1024) // max(per_image_bytes, 1)))
    NB = int(images_per_step)
    G = pl.cdiv(N, NB)
    N_pad = G * NB

    x_flat = x.reshape(N, C_in, HW)                           # metadata-only reshape
    if N_pad != N:
        x_flat = jnp.concatenate(
            [x_flat, jnp.zeros((N_pad - N, C_in, HW), x.dtype)], axis=0)

    masks = _boundary_masks(H, W)
    s1, t1 = _fold_bn(b1, g1, be1, m1, v1, eps)
    s2, t2 = _fold_bn(b2, g2, be2, m2, v2, eps)
    W1d = _dense_scaled_weight(w1, s1)                        # (C_out, 9*C_in)
    W2d = _dense_scaled_weight(w2, s2)                        # (C_out, 9*C_out)
    tt = jnp.stack([t1, t2], axis=0)                          # (2, C_out, 1)

    kernel = _make_double_conv_kernel(H, W, C_in, C_out, NB)

    out_flat = pl.pallas_call(
        kernel,
        out_shape=jax.ShapeDtypeStruct((N_pad, C_out, HW), x.dtype),
        grid=(G,),
        in_specs=[
            pl.BlockSpec((NB, C_in, HW), lambda n: (n, 0, 0)),       # x, batch-blocked
            pl.BlockSpec((9, HW), lambda n: (0, 0)),                 # boundary masks
            pl.BlockSpec((C_out, 9 * C_in), lambda n: (0, 0)),       # conv1 weights (scale-folded)
            pl.BlockSpec((C_out, 9 * C_out), lambda n: (0, 0)),      # conv2 weights (scale-folded)
            pl.BlockSpec((2, C_out, 1), lambda n: (0, 0, 0)),        # merged BN shifts
        ],
        out_specs=pl.BlockSpec((NB, C_out, HW), lambda n: (n, 0, 0)),
        compiler_params=pltpu.CompilerParams(
            dimension_semantics=("parallel",),        # megacore-shard steps on v7x (if G > 1)
            vmem_limit_bytes=32 * 1024 * 1024,        # safe on all gens incl. v7x (64 MiB phys)
        ),
    )(x_flat, masks, W1d, W2d, tt)

    out = out_flat.reshape(N_pad, C_out, H, W)                # metadata-only reshape
    return out[:N] if N_pad != N else out


def _reference(x, params, eps=1e-5):
    (w1, b1, g1, be1, m1, v1, w2, b2, g2, be2, m2, v2) = params

    def block(h, w, b, g, be, m, v):
        y = jax.lax.conv_general_dilated(
            h, w, window_strides=(1, 1), padding=((1, 1), (1, 1)),
            dimension_numbers=("NCHW", "OIHW", "NCHW"),
            precision=jax.lax.Precision.HIGHEST)
        y = y + b[None, :, None, None]
        y = (y - m[None, :, None, None]) * (g / jnp.sqrt(v + eps))[None, :, None, None]
        y = y + be[None, :, None, None]
        return jnp.maximum(y, 0.0)

    return block(block(x, w1, b1, g1, be1, m1, v1), w2, b2, g2, be2, m2, v2)


if __name__ == "__main__":
    key = jax.random.PRNGKey(0)
    ks = jax.random.split(key, 8)

    N, C_in, C_out, H, W = 2, 4, 8, 16, 16
    x = jax.random.normal(ks[0], (N, C_in, H, W), dtype=jnp.float32)

    def conv_init(k, co, ci):
        bound = 1.0 / (ci * 9) ** 0.5
        kw, kb = jax.random.split(k)
        w = jax.random.uniform(kw, (co, ci, 3, 3), minval=-bound, maxval=bound,
                               dtype=jnp.float32)
        b = jax.random.uniform(kb, (co,), minval=-bound, maxval=bound, dtype=jnp.float32)
        return w, b

    def bn_init(k, c):
        k1, k2, k3, k4 = jax.random.split(k, 4)
        gamma = jax.random.uniform(k1, (c,), minval=0.5, maxval=1.5, dtype=jnp.float32)
        beta = 0.1 * jax.random.normal(k2, (c,), dtype=jnp.float32)
        mean = 0.1 * jax.random.normal(k3, (c,), dtype=jnp.float32)
        var = jax.random.uniform(k4, (c,), minval=0.5, maxval=1.5, dtype=jnp.float32)
        return gamma, beta, mean, var

    w1, b1 = conv_init(ks[1], C_out, C_in)
    w2, b2 = conv_init(ks[2], C_out, C_out)
    g1, be1, m1, v1 = bn_init(ks[3], C_out)
    g2, be2, m2, v2 = bn_init(ks[4], C_out)

    params = (w1, b1, g1, be1, m1, v1, w2, b2, g2, be2, m2, v2)

    out = double_conv_pallas(x, params)
    jax.block_until_ready(out)

    ref = _reference(x, params)
    assert out.shape == (N, C_out, H, W)
    err = float(jnp.max(jnp.abs(out - ref)))
    assert jnp.allclose(out, ref, atol=1e-4, rtol=1e-4), err

    print("KERNEL_OK")
</pallas_src>

<mosaic_0001>
module attributes {stable_mosaic.version = 11 : i64} {
  func.func @kernel(%arg0: i32, %arg1: memref<2x4x256xf32, #tpu.memory_space<vmem>>, %arg2: memref<9x256xf32, #tpu.memory_space<vmem>>, %arg3: memref<8x36xf32, #tpu.memory_space<vmem>>, %arg4: memref<8x72xf32, #tpu.memory_space<vmem>>, %arg5: memref<2x8x1xf32, #tpu.memory_space<vmem>>, %arg6: memref<2x8x256xf32, #tpu.memory_space<vmem>>) attributes {dimension_semantics = [#tpu.dimension_semantics<parallel>], iteration_bounds = array<i64: 1>, scalar_prefetch = 0 : i64, scratch_operands = 0 : i64, tpu.core_type = #tpu.core_type<tc>, window_params = [{transform_indices = @transform_0, window_bounds = array<i64: 2, 4, 256>}, {pipeline_mode = #tpu.pipeline_mode<synchronous>, transform_indices = @transform_1, window_bounds = array<i64: 9, 256>}, {pipeline_mode = #tpu.pipeline_mode<synchronous>, transform_indices = @transform_2, window_bounds = array<i64: 8, 36>}, {pipeline_mode = #tpu.pipeline_mode<synchronous>, transform_indices = @transform_3, window_bounds = array<i64: 8, 72>}, {pipeline_mode = #tpu.pipeline_mode<synchronous>, transform_indices = @transform_4, window_bounds = array<i64: 2, 8, 1>}, {transform_indices = @transform_5, window_bounds = array<i64: 2, 8, 256>}]} {
    %c0 = arith.constant 0 : index
    %c0_0 = arith.constant 0 : index
    %0 = vector.load %arg2[%c0, %c0_0] : memref<9x256xf32, #tpu.memory_space<vmem>>, vector<9x256xf32>
    %c0_1 = arith.constant 0 : index
    %c0_2 = arith.constant 0 : index
    %1 = vector.load %arg3[%c0_1, %c0_2] : memref<8x36xf32, #tpu.memory_space<vmem>>, vector<8x36xf32>
    %c0_3 = arith.constant 0 : index
    %c0_4 = arith.constant 0 : index
    %2 = vector.load %arg4[%c0_3, %c0_4] : memref<8x72xf32, #tpu.memory_space<vmem>>, vector<8x72xf32>
    %c0_5 = arith.constant 0 : index
    %c0_6 = arith.constant 0 : index
    %c0_7 = arith.constant 0 : index
    %3 = vector.load %arg5[%c0_5, %c0_6, %c0_7] : memref<2x8x1xf32, #tpu.memory_space<vmem>>, vector<2x8x1xf32>
    %4 = vector.extract_strided_slice %3 {offsets = [0, 0, 0], sizes = [1, 8, 1], strides = [1, 1, 1]} : vector<2x8x1xf32> to vector<1x8x1xf32>
    %5 = vector.shape_cast %4 : vector<1x8x1xf32> to vector<8x1xf32>
    %6 = vector.extract_strided_slice %3 {offsets = [1, 0, 0], sizes = [1, 8, 1], strides = [1, 1, 1]} : vector<2x8x1xf32> to vector<1x8x1xf32>
    %7 = vector.shape_cast %6 : vector<1x8x1xf32> to vector<8x1xf32>
    %c0_8 = arith.constant 0 : index
    %c0_9 = arith.constant 0 : index
    %c0_10 = arith.constant 0 : index
    %8 = vector.load %arg1[%c0_8, %c0_9, %c0_10] : memref<2x4x256xf32, #tpu.memory_space<vmem>>, vector<2x4x256xf32>
    %9 = vector.extract_strided_slice %8 {offsets = [0, 0, 0], sizes = [1, 4, 256], strides = [1, 1, 1]} : vector<2x4x256xf32> to vector<1x4x256xf32>
    %10 = vector.shape_cast %9 : vector<1x4x256xf32> to vector<4x256xf32>
    %cst = arith.constant 0.000000e+00 : f32
    %11 = vector.broadcast %cst : f32 to vector<8x256xf32>
    %c17_i32 = arith.constant 17 : i32
    %12 = tpu.dynamic_rotate %10 by %c17_i32 dim 1 : vector<4x256xf32>, i32 -> vector<4x256xf32>
    %13 = vector.extract_strided_slice %0 {offsets = [0, 0], sizes = [1, 256], strides = [1, 1]} : vector<9x256xf32> to vector<1x256xf32>
    %14 = vector.broadcast %13 : vector<1x256xf32> to vector<4x256xf32>
    %15 = arith.mulf %12, %14 : vector<4x256xf32>
    %16 = vector.extract_strided_slice %1 {offsets = [0, 0], sizes = [8, 1], strides = [1, 1]} : vector<8x36xf32> to vector<8x1xf32>
    %17 = vector.extract_strided_slice %15 {offsets = [0, 0], sizes = [1, 256], strides = [1, 1]} : vector<4x256xf32> to vector<1x256xf32>
    %18 = vector.broadcast %16 : vector<8x1xf32> to vector<8x256xf32>
    %19 = vector.broadcast %17 : vector<1x256xf32> to vector<8x256xf32>
    %20 = arith.mulf %18, %19 : vector<8x256xf32>
    %21 = arith.addf %11, %20 : vector<8x256xf32>
    %22 = vector.extract_strided_slice %1 {offsets = [0, 1], sizes = [8, 1], strides = [1, 1]} : vector<8x36xf32> to vector<8x1xf32>
    %23 = vector.extract_strided_slice %15 {offsets = [1, 0], sizes = [1, 256], strides = [1, 1]} : vector<4x256xf32> to vector<1x256xf32>
    %24 = vector.broadcast %22 : vector<8x1xf32> to vector<8x256xf32>
    %25 = vector.broadcast %23 : vector<1x256xf32> to vector<8x256xf32>
    %26 = arith.mulf %24, %25 : vector<8x256xf32>
    %27 = arith.addf %21, %26 : vector<8x256xf32>
    %28 = vector.extract_strided_slice %1 {offsets = [0, 2], sizes = [8, 1], strides = [1, 1]} : vector<8x36xf32> to vector<8x1xf32>
    %29 = vector.extract_strided_slice %15 {offsets = [2, 0], sizes = [1, 256], strides = [1, 1]} : vector<4x256xf32> to vector<1x256xf32>
    %30 = vector.broadcast %28 : vector<8x1xf32> to vector<8x256xf32>
    %31 = vector.broadcast %29 : vector<1x256xf32> to vector<8x256xf32>
    %32 = arith.mulf %30, %31 : vector<8x256xf32>
    %33 = arith.addf %27, %32 : vector<8x256xf32>
    %34 = vector.extract_strided_slice %1 {offsets = [0, 3], sizes = [8, 1], strides = [1, 1]} : vector<8x36xf32> to vector<8x1xf32>
    %35 = vector.extract_strided_slice %15 {offsets = [3, 0], sizes = [1, 256], strides = [1, 1]} : vector<4x256xf32> to vector<1x256xf32>
    %36 = vector.broadcast %34 : vector<8x1xf32> to vector<8x256xf32>
    %37 = vector.broadcast %35 : vector<1x256xf32> to vector<8x256xf32>
    %38 = arith.mulf %36, %37 : vector<8x256xf32>
    %39 = arith.addf %33, %38 : vector<8x256xf32>
    %c16_i32 = arith.constant 16 : i32
    %40 = tpu.dynamic_rotate %10 by %c16_i32 dim 1 : vector<4x256xf32>, i32 -> vector<4x256xf32>
    %41 = vector.extract_strided_slice %0 {offsets = [1, 0], sizes = [1, 256], strides = [1, 1]} : vector<9x256xf32> to vector<1x256xf32>
    %42 = vector.broadcast %41 : vector<1x256xf32> to vector<4x256xf32>
    %43 = arith.mulf %40, %42 : vector<4x256xf32>
    %44 = vector.extract_strided_slice %1 {offsets = [0, 4], sizes = [8, 1], strides = [1, 1]} : vector<8x36xf32> to vector<8x1xf32>
    %45 = vector.extract_strided_slice %43 {offsets = [0, 0], sizes = [1, 256], strides = [1, 1]} : vector<4x256xf32> to vector<1x256xf32>
    %46 = vector.broadcast %44 : vector<8x1xf32> to vector<8x256xf32>
    %47 = vector.broadcast %45 : vector<1x256xf32> to vector<8x256xf32>
    %48 = arith.mulf %46, %47 : vector<8x256xf32>
    %49 = arith.addf %39, %48 : vector<8x256xf32>
    %50 = vector.extract_strided_slice %1 {offsets = [0, 5], sizes = [8, 1], strides = [1, 1]} : vector<8x36xf32> to vector<8x1xf32>
    %51 = vector.extract_strided_slice %43 {offsets = [1, 0], sizes = [1, 256], strides = [1, 1]} : vector<4x256xf32> to vector<1x256xf32>
    %52 = vector.broadcast %50 : vector<8x1xf32> to vector<8x256xf32>
    %53 = vector.broadcast %51 : vector<1x256xf32> to vector<8x256xf32>
    %54 = arith.mulf %52, %53 : vector<8x256xf32>
    %55 = arith.addf %49, %54 : vector<8x256xf32>
    %56 = vector.extract_strided_slice %1 {offsets = [0, 6], sizes = [8, 1], strides = [1, 1]} : vector<8x36xf32> to vector<8x1xf32>
    %57 = vector.extract_strided_slice %43 {offsets = [2, 0], sizes = [1, 256], strides = [1, 1]} : vector<4x256xf32> to vector<1x256xf32>
    %58 = vector.broadcast %56 : vector<8x1xf32> to vector<8x256xf32>
    %59 = vector.broadcast %57 : vector<1x256xf32> to vector<8x256xf32>
    %60 = arith.mulf %58, %59 : vector<8x256xf32>
    %61 = arith.addf %55, %60 : vector<8x256xf32>
    %62 = vector.extract_strided_slice %1 {offsets = [0, 7], sizes = [8, 1], strides = [1, 1]} : vector<8x36xf32> to vector<8x1xf32>
    %63 = vector.extract_strided_slice %43 {offsets = [3, 0], sizes = [1, 256], strides = [1, 1]} : vector<4x256xf32> to vector<1x256xf32>
    %64 = vector.broadcast %62 : vector<8x1xf32> to vector<8x256xf32>
    %65 = vector.broadcast %63 : vector<1x256xf32> to vector<8x256xf32>
    %66 = arith.mulf %64, %65 : vector<8x256xf32>
    %67 = arith.addf %61, %66 : vector<8x256xf32>
    %c15_i32 = arith.constant 15 : i32
    %68 = tpu.dynamic_rotate %10 by %c15_i32 dim 1 : vector<4x256xf32>, i32 -> vector<4x256xf32>
    %69 = vector.extract_strided_slice %0 {offsets = [2, 0], sizes = [1, 256], strides = [1, 1]} : vector<9x256xf32> to vector<1x256xf32>
    %70 = vector.broadcast %69 : vector<1x256xf32> to vector<4x256xf32>
    %71 = arith.mulf %68, %70 : vector<4x256xf32>
    %72 = vector.extract_strided_slice %1 {offsets = [0, 8], sizes = [8, 1], strides = [1, 1]} : vector<8x36xf32> to vector<8x1xf32>
    %73 = vector.extract_strided_slice %71 {offsets = [0, 0], sizes = [1, 256], strides = [1, 1]} : vector<4x256xf32> to vector<1x256xf32>
    %74 = vector.broadcast %72 : vector<8x1xf32> to vector<8x256xf32>
    %75 = vector.broadcast %73 : vector<1x256xf32> to vector<8x256xf32>
    %76 = arith.mulf %74, %75 : vector<8x256xf32>
    %77 = arith.addf %67, %76 : vector<8x256xf32>
    %78 = vector.extract_strided_slice %1 {offsets = [0, 9], sizes = [8, 1], strides = [1, 1]} : vector<8x36xf32> to vector<8x1xf32>
    %79 = vector.extract_strided_slice %71 {offsets = [1, 0], sizes = [1, 256], strides = [1, 1]} : vector<4x256xf32> to vector<1x256xf32>
    %80 = vector.broadcast %78 : vector<8x1xf32> to vector<8x256xf32>
    %81 = vector.broadcast %79 : vector<1x256xf32> to vector<8x256xf32>
    %82 = arith.mulf %80, %81 : vector<8x256xf32>
    %83 = arith.addf %77, %82 : vector<8x256xf32>
    %84 = vector.extract_strided_slice %1 {offsets = [0, 10], sizes = [8, 1], strides = [1, 1]} : vector<8x36xf32> to vector<8x1xf32>
    %85 = vector.extract_strided_slice %71 {offsets = [2, 0], sizes = [1, 256], strides = [1, 1]} : vector<4x256xf32> to vector<1x256xf32>
    %86 = vector.broadcast %84 : vector<8x1xf32> to vector<8x256xf32>
    %87 = vector.broadcast %85 : vector<1x256xf32> to vector<8x256xf32>
    %88 = arith.mulf %86, %87 : vector<8x256xf32>
    %89 = arith.addf %83, %88 : vector<8x256xf32>
    %90 = vector.extract_strided_slice %1 {offsets = [0, 11], sizes = [8, 1], strides = [1, 1]} : vector<8x36xf32> to vector<8x1xf32>
    %91 = vector.extract_strided_slice %71 {offsets = [3, 0], sizes = [1, 256], strides = [1, 1]} : vector<4x256xf32> to vector<1x256xf32>
    %92 = vector.broadcast %90 : vector<8x1xf32> to vector<8x256xf32>
    %93 = vector.broadcast %91 : vector<1x256xf32> to vector<8x256xf32>
    %94 = arith.mulf %92, %93 : vector<8x256xf32>
    %95 = arith.addf %89, %94 : vector<8x256xf32>
    %c1_i32 = arith.constant 1 : i32
    %96 = tpu.dynamic_rotate %10 by %c1_i32 dim 1 : vector<4x256xf32>, i32 -> vector<4x256xf32>
    %97 = vector.extract_strided_slice %0 {offsets = [3, 0], sizes = [1, 256], strides = [1, 1]} : vector<9x256xf32> to vector<1x256xf32>
    %98 = vector.broadcast %97 : vector<1x256xf32> to vector<4x256xf32>
    %99 = arith.mulf %96, %98 : vector<4x256xf32>
    %100 = vector.extract_strided_slice %1 {offsets = [0, 12], sizes = [8, 1], strides = [1, 1]} : vector<8x36xf32> to vector<8x1xf32>
    %101 = vector.extract_strided_slice %99 {offsets = [0, 0], sizes = [1, 256], strides = [1, 1]} : vector<4x256xf32> to vector<1x256xf32>
    %102 = vector.broadcast %100 : vector<8x1xf32> to vector<8x256xf32>
    %103 = vector.broadcast %101 : vector<1x256xf32> to vector<8x256xf32>
    %104 = arith.mulf %102, %103 : vector<8x256xf32>
    %105 = arith.addf %95, %104 : vector<8x256xf32>
    %106 = vector.extract_strided_slice %1 {offsets = [0, 13], sizes = [8, 1], strides = [1, 1]} : vector<8x36xf32> to vector<8x1xf32>
    %107 = vector.extract_strided_slice %99 {offsets = [1, 0], sizes = [1, 256], strides = [1, 1]} : vector<4x256xf32> to vector<1x256xf32>
    %108 = vector.broadcast %106 : vector<8x1xf32> to vector<8x256xf32>
    %109 = vector.broadcast %107 : vector<1x256xf32> to vector<8x256xf32>
    %110 = arith.mulf %108, %109 : vector<8x256xf32>
    %111 = arith.addf %105, %110 : vector<8x256xf32>
    %112 = vector.extract_strided_slice %1 {offsets = [0, 14], sizes = [8, 1], strides = [1, 1]} : vector<8x36xf32> to vector<8x1xf32>
    %113 = vector.extract_strided_slice %99 {offsets = [2, 0], sizes = [1, 256], strides = [1, 1]} : vector<4x256xf32> to vector<1x256xf32>
    %114 = vector.broadcast %112 : vector<8x1xf32> to vector<8x256xf32>
    %115 = vector.broadcast %113 : vector<1x256xf32> to vector<8x256xf32>
    %116 = arith.mulf %114, %115 : vector<8x256xf32>
    %117 = arith.addf %111, %116 : vector<8x256xf32>
    %118 = vector.extract_strided_slice %1 {offsets = [0, 15], sizes = [8, 1], strides = [1, 1]} : vector<8x36xf32> to vector<8x1xf32>
    %119 = vector.extract_strided_slice %99 {offsets = [3, 0], sizes = [1, 256], strides = [1, 1]} : vector<4x256xf32> to vector<1x256xf32>
    %120 = vector.broadcast %118 : vector<8x1xf32> to vector<8x256xf32>
    %121 = vector.broadcast %119 : vector<1x256xf32> to vector<8x256xf32>
    %122 = arith.mulf %120, %121 : vector<8x256xf32>
    %123 = arith.addf %117, %122 : vector<8x256xf32>
    %124 = vector.extract_strided_slice %1 {offsets = [0, 16], sizes = [8, 1], strides = [1, 1]} : vector<8x36xf32> to vector<8x1xf32>
    %125 = vector.extract_strided_slice %10 {offsets = [0, 0], sizes = [1, 256], strides = [1, 1]} : vector<4x256xf32> to vector<1x256xf32>
    %126 = vector.broadcast %124 : vector<8x1xf32> to vector<8x256xf32>
    %127 = vector.broadcast %125 : vector<1x256xf32> to vector<8x256xf32>
    %128 = arith.mulf %126, %127 : vector<8x256xf32>
    %129 = arith.addf %123, %128 : vector<8x256xf32>
    %130 = vector.extract_strided_slice %1 {offsets = [0, 17], sizes = [8, 1], strides = [1, 1]} : vector<8x36xf32> to vector<8x1xf32>
    %131 = vector.extract_strided_slice %10 {offsets = [1, 0], sizes = [1, 256], strides = [1, 1]} : vector<4x256xf32> to vector<1x256xf32>
    %132 = vector.broadcast %130 : vector<8x1xf32> to vector<8x256xf32>
    %133 = vector.broadcast %131 : vector<1x256xf32> to vector<8x256xf32>
    %134 = arith.mulf %132, %133 : vector<8x256xf32>
    %135 = arith.addf %129, %134 : vector<8x256xf32>
    %136 = vector.extract_strided_slice %1 {offsets = [0, 18], sizes = [8, 1], strides = [1, 1]} : vector<8x36xf32> to vector<8x1xf32>
    %137 = vector.extract_strided_slice %10 {offsets = [2, 0], sizes = [1, 256], strides = [1, 1]} : vector<4x256xf32> to vector<1x256xf32>
    %138 = vector.broadcast %136 : vector<8x1xf32> to vector<8x256xf32>
    %139 = vector.broadcast %137 : vector<1x256xf32> to vector<8x256xf32>
    %140 = arith.mulf %138, %139 : vector<8x256xf32>
    %141 = arith.addf %135, %140 : vector<8x256xf32>
    %142 = vector.extract_strided_slice %1 {offsets = [0, 19], sizes = [8, 1], strides = [1, 1]} : vector<8x36xf32> to vector<8x1xf32>
    %143 = vector.extract_strided_slice %10 {offsets = [3, 0], sizes = [1, 256], strides = [1, 1]} : vector<4x256xf32> to vector<1x256xf32>
    %144 = vector.broadcast %142 : vector<8x1xf32> to vector<8x256xf32>
    %145 = vector.broadcast %143 : vector<1x256xf32> to vector<8x256xf32>
    %146 = arith.mulf %144, %145 : vector<8x256xf32>
    %147 = arith.addf %141, %146 : vector<8x256xf32>
    %c255_i32 = arith.constant 255 : i32
    %148 = tpu.dynamic_rotate %10 by %c255_i32 dim 1 : vector<4x256xf32>, i32 -> vector<4x256xf32>
    %149 = vector.extract_strided_slice %0 {offsets = [5, 0], sizes = [1, 256], strides = [1, 1]} : vector<9x256xf32> to vector<1x256xf32>
    %150 = vector.broadcast %149 : vector<1x256xf32> to vector<4x256xf32>
    %151 = arith.mulf %148, %150 : vector<4x256xf32>
    %152 = vector.extract_strided_slice %1 {offsets = [0, 20], sizes = [8, 1], strides = [1, 1]} : vector<8x36xf32> to vector<8x1xf32>
    %153 = vector.extract_strided_slice %151 {offsets = [0, 0], sizes = [1, 256], strides = [1, 1]} : vector<4x256xf32> to vector<1x256xf32>
    %154 = vector.broadcast %152 : vector<8x1xf32> to vector<8x256xf32>
    %155 = vector.broadcast %153 : vector<1x256xf32> to vector<8x256xf32>
    %156 = arith.mulf %154, %155 : vector<8x256xf32>
    %157 = arith.addf %147, %156 : vector<8x256xf32>
    %158 = vector.extract_strided_slice %1 {offsets = [0, 21], sizes = [8, 1], strides = [1, 1]} : vector<8x36xf32> to vector<8x1xf32>
    %159 = vector.extract_strided_slice %151 {offsets = [1, 0], sizes = [1, 256], strides = [1, 1]} : vector<4x256xf32> to vector<1x256xf32>
    %160 = vector.broadcast %158 : vector<8x1xf32> to vector<8x256xf32>
    %161 = vector.broadcast %159 : vector<1x256xf32> to vector<8x256xf32>
    %162 = arith.mulf %160, %161 : vector<8x256xf32>
    %163 = arith.addf %157, %162 : vector<8x256xf32>
    %164 = vector.extract_strided_slice %1 {offsets = [0, 22], sizes = [8, 1], strides = [1, 1]} : vector<8x36xf32> to vector<8x1xf32>
    %165 = vector.extract_strided_slice %151 {offsets = [2, 0], sizes = [1, 256], strides = [1, 1]} : vector<4x256xf32> to vector<1x256xf32>
    %166 = vector.broadcast %164 : vector<8x1xf32> to vector<8x256xf32>
    %167 = vector.broadcast %165 : vector<1x256xf32> to vector<8x256xf32>
    %168 = arith.mulf %166, %167 : vector<8x256xf32>
    %169 = arith.addf %163, %168 : vector<8x256xf32>
    %170 = vector.extract_strided_slice %1 {offsets = [0, 23], sizes = [8, 1], strides = [1, 1]} : vector<8x36xf32> to vector<8x1xf32>
    %171 = vector.extract_strided_slice %151 {offsets = [3, 0], sizes = [1, 256], strides = [1, 1]} : vector<4x256xf32> to vector<1x256xf32>
    %172 = vector.broadcast %170 : vector<8x1xf32> to vector<8x256xf32>
    %173 = vector.broadcast %171 : vector<1x256xf32> to vector<8x256xf32>
    %174 = arith.mulf %172, %173 : vector<8x256xf32>
    %175 = arith.addf %169, %174 : vector<8x256xf32>
    %c241_i32 = arith.constant 241 : i32
    %176 = tpu.dynamic_rotate %10 by %c241_i32 dim 1 : vector<4x256xf32>, i32 -> vector<4x256xf32>
    %177 = vector.extract_strided_slice %0 {offsets = [6, 0], sizes = [1, 256], strides = [1, 1]} : vector<9x256xf32> to vector<1x256xf32>
    %178 = vector.broadcast %177 : vector<1x256xf32> to vector<4x256xf32>
    %179 = arith.mulf %176, %178 : vector<4x256xf32>
    %180 = vector.extract_strided_slice %1 {offsets = [0, 24], sizes = [8, 1], strides = [1, 1]} : vector<8x36xf32> to vector<8x1xf32>
    %181 = vector.extract_strided_slice %179 {offsets = [0, 0], sizes = [1, 256], strides = [1, 1]} : vector<4x256xf32> to vector<1x256xf32>
    %182 = vector.broadcast %180 : vector<8x1xf32> to vector<8x256xf32>
    %183 = vector.broadcast %181 : vector<1x256xf32> to vector<8x256xf32>
    %184 = arith.mulf %182, %183 : vector<8x256xf32>
    %185 = arith.addf %175, %184 : vector<8x256xf32>
    %186 = vector.extract_strided_slice %1 {offsets = [0, 25], sizes = [8, 1], strides = [1, 1]} : vector<8x36xf32> to vector<8x1xf32>
    %187 = vector.extract_strided_slice %179 {offsets = [1, 0], sizes = [1, 256], strides = [1, 1]} : vector<4x256xf32> to vector<1x256xf32>
    %188 = vector.broadcast %186 : vector<8x1xf32> to vector<8x256xf32>
    %189 = vector.broadcast %187 : vector<1x256xf32> to vector<8x256xf32>
    %190 = arith.mulf %188, %189 : vector<8x256xf32>
    %191 = arith.addf %185, %190 : vector<8x256xf32>
    %192 = vector.extract_strided_slice %1 {offsets = [0, 26], sizes = [8, 1], strides = [1, 1]} : vector<8x36xf32> to vector<8x1xf32>
    %193 = vector.extract_strided_slice %179 {offsets = [2, 0], sizes = [1, 256], strides = [1, 1]} : vector<4x256xf32> to vector<1x256xf32>
    %194 = vector.broadcast %192 : vector<8x1xf32> to vector<8x256xf32>
    %195 = vector.broadcast %193 : vector<1x256xf32> to vector<8x256xf32>
    %196 = arith.mulf %194, %195 : vector<8x256xf32>
    %197 = arith.addf %191, %196 : vector<8x256xf32>
    %198 = vector.extract_strided_slice %1 {offsets = [0, 27], sizes = [8, 1], strides = [1, 1]} : vector<8x36xf32> to vector<8x1xf32>
    %199 = vector.extract_strided_slice %179 {offsets = [3, 0], sizes = [1, 256], strides = [1, 1]} : vector<4x256xf32> to vector<1x256xf32>
    %200 = vector.broadcast %198 : vector<8x1xf32> to vector<8x256xf32>
    %201 = vector.broadcast %199 : vector<1x256xf32> to vector<8x256xf32>
    %202 = arith.mulf %200, %201 : vector<8x256xf32>
    %203 = arith.addf %197, %202 : vector<8x256xf32>
    %c240_i32 = arith.constant 240 : i32
    %204 = tpu.dynamic_rotate %10 by %c240_i32 dim 1 : vector<4x256xf32>, i32 -> vector<4x256xf32>
    %205 = vector.extract_strided_slice %0 {offsets = [7, 0], sizes = [1, 256], strides = [1, 1]} : vector<9x256xf32> to vector<1x256xf32>
    %206 = vector.broadcast %205 : vector<1x256xf32> to vector<4x256xf32>
    %207 = arith.mulf %204, %206 : vector<4x256xf32>
    %208 = vector.extract_strided_slice %1 {offsets = [0, 28], sizes = [8, 1], strides = [1, 1]} : vector<8x36xf32> to vector<8x1xf32>
    %209 = vector.extract_strided_slice %207 {offsets = [0, 0], sizes = [1, 256], strides = [1, 1]} : vector<4x256xf32> to vector<1x256xf32>
    %210 = vector.broadcast %208 : vector<8x1xf32> to vector<8x256xf32>
    %211 = vector.broadcast %209 : vector<1x256xf32> to vector<8x256xf32>
    %212 = arith.mulf %210, %211 : vector<8x256xf32>
    %213 = arith.addf %203, %212 : vector<8x256xf32>
    %214 = vector.extract_strided_slice %1 {offsets = [0, 29], sizes = [8, 1], strides = [1, 1]} : vector<8x36xf32> to vector<8x1xf32>
    %215 = vector.extract_strided_slice %207 {offsets = [1, 0], sizes = [1, 256], strides = [1, 1]} : vector<4x256xf32> to vector<1x256xf32>
    %216 = vector.broadcast %214 : vector<8x1xf32> to vector<8x256xf32>
    %217 = vector.broadcast %215 : vector<1x256xf32> to vector<8x256xf32>
    %218 = arith.mulf %216, %217 : vector<8x256xf32>
    %219 = arith.addf %213, %218 : vector<8x256xf32>
    %220 = vector.extract_strided_slice %1 {offsets = [0, 30], sizes = [8, 1], strides = [1, 1]} : vector<8x36xf32> to vector<8x1xf32>
    %221 = vector.extract_strided_slice %207 {offsets = [2, 0], sizes = [1, 256], strides = [1, 1]} : vector<4x256xf32> to vector<1x256xf32>
    %222 = vector.broadcast %220 : vector<8x1xf32> to vector<8x256xf32>
    %223 = vector.broadcast %221 : vector<1x256xf32> to vector<8x256xf32>
    %224 = arith.mulf %222, %223 : vector<8x256xf32>
    %225 = arith.addf %219, %224 : vector<8x256xf32>
    %226 = vector.extract_strided_slice %1 {offsets = [0, 31], sizes = [8, 1], strides = [1, 1]} : vector<8x36xf32> to vector<8x1xf32>
    %227 = vector.extract_strided_slice %207 {offsets = [3, 0], sizes = [1, 256], strides = [1, 1]} : vector<4x256xf32> to vector<1x256xf32>
    %228 = vector.broadcast %226 : vector<8x1xf32> to vector<8x256xf32>
    %229 = vector.broadcast %227 : vector<1x256xf32> to vector<8x256xf32>
    %230 = arith.mulf %228, %229 : vector<8x256xf32>
    %231 = arith.addf %225, %230 : vector<8x256xf32>
    %c239_i32 = arith.constant 239 : i32
    %232 = tpu.dynamic_rotate %10 by %c239_i32 dim 1 : vector<4x256xf32>, i32 -> vector<4x256xf32>
    %233 = vector.extract_strided_slice %0 {offsets = [8, 0], sizes = [1, 256], strides = [1, 1]} : vector<9x256xf32> to vector<1x256xf32>
    %234 = vector.broadcast %233 : vector<1x256xf32> to vector<4x256xf32>
    %235 = arith.mulf %232, %234 : vector<4x256xf32>
    %236 = vector.extract_strided_slice %1 {offsets = [0, 32], sizes = [8, 1], strides = [1, 1]} : vector<8x36xf32> to vector<8x1xf32>
    %237 = vector.extract_strided_slice %235 {offsets = [0, 0], sizes = [1, 256], strides = [1, 1]} : vector<4x256xf32> to vector<1x256xf32>
    %238 = vector.broadcast %236 : vector<8x1xf32> to vector<8x256xf32>
    %239 = vector.broadcast %237 : vector<1x256xf32> to vector<8x256xf32>
    %240 = arith.mulf %238, %239 : vector<8x256xf32>
    %241 = arith.addf %231, %240 : vector<8x256xf32>
    %242 = vector.extract_strided_slice %1 {offsets = [0, 33], sizes = [8, 1], strides = [1, 1]} : vector<8x36xf32> to vector<8x1xf32>
    %243 = vector.extract_strided_slice %235 {offsets = [1, 0], sizes = [1, 256], strides = [1, 1]} : vector<4x256xf32> to vector<1x256xf32>
    %244 = vector.broadcast %242 : vector<8x1xf32> to vector<8x256xf32>
    %245 = vector.broadcast %243 : vector<1x256xf32> to vector<8x256xf32>
    %246 = arith.mulf %244, %245 : vector<8x256xf32>
    %247 = arith.addf %241, %246 : vector<8x256xf32>
    %248 = vector.extract_strided_slice %1 {offsets = [0, 34], sizes = [8, 1], strides = [1, 1]} : vector<8x36xf32> to vector<8x1xf32>
    %249 = vector.extract_strided_slice %235 {offsets = [2, 0], sizes = [1, 256], strides = [1, 1]} : vector<4x256xf32> to vector<1x256xf32>
    %250 = vector.broadcast %248 : vector<8x1xf32> to vector<8x256xf32>
    %251 = vector.broadcast %249 : vector<1x256xf32> to vector<8x256xf32>
    %252 = arith.mulf %250, %251 : vector<8x256xf32>
    %253 = arith.addf %247, %252 : vector<8x256xf32>
    %254 = vector.extract_strided_slice %1 {offsets = [0, 35], sizes = [8, 1], strides = [1, 1]} : vector<8x36xf32> to vector<8x1xf32>
    %255 = vector.extract_strided_slice %235 {offsets = [3, 0], sizes = [1, 256], strides = [1, 1]} : vector<4x256xf32> to vector<1x256xf32>
    %256 = vector.broadcast %254 : vector<8x1xf32> to vector<8x256xf32>
    %257 = vector.broadcast %255 : vector<1x256xf32> to vector<8x256xf32>
    %258 = arith.mulf %256, %257 : vector<8x256xf32>
    %259 = arith.addf %253, %258 : vector<8x256xf32>
    %260 = vector.broadcast %5 : vector<8x1xf32> to vector<8x256xf32>
    %261 = arith.addf %259, %260 : vector<8x256xf32>
    %cst_11 = arith.constant 0.000000e+00 : f32
    %262 = vector.broadcast %cst_11 : f32 to vector<8x256xf32>
    %263 = arith.maximumf %261, %262 : vector<8x256xf32>
    %cst_12 = arith.constant 0.000000e+00 : f32
    %264 = vector.broadcast %cst_12 : f32 to vector<8x256xf32>
    %c17_i32_13 = arith.constant 17 : i32
    %265 = tpu.dynamic_rotate %263 by %c17_i32_13 dim 1 : vector<8x256xf32>, i32 -> vector<8x256xf32>
    %266 = vector.extract_strided_slice %0 {offsets = [0, 0], sizes = [1, 256], strides = [1, 1]} : vector<9x256xf32> to vector<1x256xf32>
    %267 = vector.broadcast %266 : vector<1x256xf32> to vector<8x256xf32>
    %268 = arith.mulf %265, %267 : vector<8x256xf32>
    %269 = vector.extract_strided_slice %2 {offsets = [0, 0], sizes = [8, 1], strides = [1, 1]} : vector<8x72xf32> to vector<8x1xf32>
    %270 = vector.extract_strided_slice %268 {offsets = [0, 0], sizes = [1, 256], strides = [1, 1]} : vector<8x256xf32> to vector<1x256xf32>
    %271 = vector.broadcast %269 : vector<8x1xf32> to vector<8x256xf32>
    %272 = vector.broadcast %270 : vector<1x256xf32> to vector<8x256xf32>
    %273 = arith.mulf %271, %272 : vector<8x256xf32>
    %274 = arith.addf %264, %273 : vector<8x256xf32>
    %275 = vector.extract_strided_slice %2 {offsets = [0, 1], sizes = [8, 1], strides = [1, 1]} : vector<8x72xf32> to vector<8x1xf32>
    %276 = vector.extract_strided_slice %268 {offsets = [1, 0], sizes = [1, 256], strides = [1, 1]} : vector<8x256xf32> to vector<1x256xf32>
    %277 = vector.broadcast %275 : vector<8x1xf32> to vector<8x256xf32>
    %278 = vector.broadcast %276 : vector<1x256xf32> to vector<8x256xf32>
    %279 = arith.mulf %277, %278 : vector<8x256xf32>
    %280 = arith.addf %274, %279 : vector<8x256xf32>
    %281 = vector.extract_strided_slice %2 {offsets = [0, 2], sizes = [8, 1], strides = [1, 1]} : vector<8x72xf32> to vector<8x1xf32>
    %282 = vector.extract_strided_slice %268 {offsets = [2, 0], sizes = [1, 256], strides = [1, 1]} : vector<8x256xf32> to vector<1x256xf32>
    %283 = vector.broadcast %281 : vector<8x1xf32> to vector<8x256xf32>
    %284 = vector.broadcast %282 : vector<1x256xf32> to vector<8x256xf32>
    %285 = arith.mulf %283, %284 : vector<8x256xf32>
    %286 = arith.addf %280, %285 : vector<8x256xf32>
    %287 = vector.extract_strided_slice %2 {offsets = [0, 3], sizes = [8, 1], strides = [1, 1]} : vector<8x72xf32> to vector<8x1xf32>
    %288 = vector.extract_strided_slice %268 {offsets = [3, 0], sizes = [1, 256], strides = [1, 1]} : vector<8x256xf32> to vector<1x256xf32>
    %289 = vector.broadcast %287 : vector<8x1xf32> to vector<8x256xf32>
    %290 = vector.broadcast %288 : vector<1x256xf32> to vector<8x256xf32>
    %291 = arith.mulf %289, %290 : vector<8x256xf32>
    %292 = arith.addf %286, %291 : vector<8x256xf32>
    %293 = vector.extract_strided_slice %2 {offsets = [0, 4], sizes = [8, 1], strides = [1, 1]} : vector<8x72xf32> to vector<8x1xf32>
    %294 = vector.extract_strided_slice %268 {offsets = [4, 0], sizes = [1, 256], strides = [1, 1]} : vector<8x256xf32> to vector<1x256xf32>
    %295 = vector.broadcast %293 : vector<8x1xf32> to vector<8x256xf32>
    %296 = vector.broadcast %294 : vector<1x256xf32> to vector<8x256xf32>
    %297 = arith.mulf %295, %296 : vector<8x256xf32>
    %298 = arith.addf %292, %297 : vector<8x256xf32>
    %299 = vector.extract_strided_slice %2 {offsets = [0, 5], sizes = [8, 1], strides = [1, 1]} : vector<8x72xf32> to vector<8x1xf32>
    %300 = vector.extract_strided_slice %268 {offsets = [5, 0], sizes = [1, 256], strides = [1, 1]} : vector<8x256xf32> to vector<1x256xf32>
    %301 = vector.broadcast %299 : vector<8x1xf32> to vector<8x256xf32>
    %302 = vector.broadcast %300 : vector<1x256xf32> to vector<8x256xf32>
    %303 = arith.mulf %301, %302 : vector<8x256xf32>
    %304 = arith.addf %298, %303 : vector<8x256xf32>
    %305 = vector.extract_strided_slice %2 {offsets = [0, 6], sizes = [8, 1], strides = [1, 1]} : vector<8x72xf32> to vector<8x1xf32>
    %306 = vector.extract_strided_slice %268 {offsets = [6, 0], sizes = [1, 256], strides = [1, 1]} : vector<8x256xf32> to vector<1x256xf32>
    %307 = vector.broadcast %305 : vector<8x1xf32> to vector<8x256xf32>
    %308 = vector.broadcast %306 : vector<1x256xf32> to vector<8x256xf32>
    %309 = arith.mulf %307, %308 : vector<8x256xf32>
    %310 = arith.addf %304, %309 : vector<8x256xf32>
    %311 = vector.extract_strided_slice %2 {offsets = [0, 7], sizes = [8, 1], strides = [1, 1]} : vector<8x72xf32> to vector<8x1xf32>
    %312 = vector.extract_strided_slice %268 {offsets = [7, 0], sizes = [1, 256], strides = [1, 1]} : vector<8x256xf32> to vector<1x256xf32>
    %313 = vector.broadcast %311 : vector<8x1xf32> to vector<8x256xf32>
    %314 = vector.broadcast %312 : vector<1x256xf32> to vector<8x256xf32>
    %315 = arith.mulf %313, %314 : vector<8x256xf32>
    %316 = arith.addf %310, %315 : vector<8x256xf32>
    %c16_i32_14 = arith.constant 16 : i32
    %317 = tpu.dynamic_rotate %263 by %c16_i32_14 dim 1 : vector<8x256xf32>, i32 -> vector<8x256xf32>
    %318 = vector.extract_strided_slice %0 {offsets = [1, 0], sizes = [1, 256], strides = [1, 1]} : vector<9x256xf32> to vector<1x256xf32>
    %319 = vector.broadcast %318 : vector<1x256xf32> to vector<8x256xf32>
    %320 = arith.mulf %317, %319 : vector<8x256xf32>
    %321 = vector.extract_strided_slice %2 {offsets = [0, 8], sizes = [8, 1], strides = [1, 1]} : vector<8x72xf32> to vector<8x1xf32>
    %322 = vector.extract_strided_slice %320 {offsets = [0, 0], sizes = [1, 256], strides = [1, 1]} : vector<8x256xf32> to vector<1x256xf32>
    %323 = vector.broadcast %321 : vector<8x1xf32> to vector<8x256xf32>
    %324 = vector.broadcast %322 : vector<1x256xf32> to vector<8x256xf32>
    %325 = arith.mulf %323, %324 : vector<8x256xf32>
    %326 = arith.addf %316, %325 : vector<8x256xf32>
    %327 = vector.extract_strided_slice %2 {offsets = [0, 9], sizes = [8, 1], strides = [1, 1]} : vector<8x72xf32> to vector<8x1xf32>
    %328 = vector.extract_strided_slice %320 {offsets = [1, 0], sizes = [1, 256], strides = [1, 1]} : vector<8x256xf32> to vector<1x256xf32>
    %329 = vector.broadcast %327 : vector<8x1xf32> to vector<8x256xf32>
    %330 = vector.broadcast %328 : vector<1x256xf32> to vector<8x256xf32>
    %331 = arith.mulf %329, %330 : vector<8x256xf32>
    %332 = arith.addf %326, %331 : vector<8x256xf32>
    %333 = vector.extract_strided_slice %2 {offsets = [0, 10], sizes = [8, 1], strides = [1, 1]} : vector<8x72xf32> to vector<8x1xf32>
    %334 = vector.extract_strided_slice %320 {offsets = [2, 0], sizes = [1, 256], strides = [1, 1]} : vector<8x256xf32> to vector<1x256xf32>
    %335 = vector.broadcast %333 : vector<8x1xf32> to vector<8x256xf32>
    %336 = vector.broadcast %334 : vector<1x256xf32> to vector<8x256xf32>
    %337 = arith.mulf %335, %336 : vector<8x256xf32>
    %338 = arith.addf %332, %337 : vector<8x256xf32>
    %339 = vector.extract_strided_slice %2 {offsets = [0, 11], sizes = [8, 1], strides = [1, 1]} : vector<8x72xf32> to vector<8x1xf32>
    %340 = vector.extract_strided_slice %320 {offsets = [3, 0], sizes = [1, 256], strides = [1, 1]} : vector<8x256xf32> to vector<1x256xf32>
    %341 = vector.broadcast %339 : vector<8x1xf32> to vector<8x256xf32>
    %342 = vector.broadcast %340 : vector<1x256xf32> to vector<8x256xf32>
    %343 = arith.mulf %341, %342 : vector<8x256xf32>
    %344 = arith.addf %338, %343 : vector<8x256xf32>
    %345 = vector.extract_strided_slice %2 {offsets = [0, 12], sizes = [8, 1], strides = [1, 1]} : vector<8x72xf32> to vector<8x1xf32>
    %346 = vector.extract_strided_slice %320 {offsets = [4, 0], sizes = [1, 256], strides = [1, 1]} : vector<8x256xf32> to vector<1x256xf32>
    %347 = vector.broadcast %345 : vector<8x1xf32> to vector<8x256xf32>
    %348 = vector.broadcast %346 : vector<1x256xf32> to vector<8x256xf32>
    %349 = arith.mulf %347, %348 : vector<8x256xf32>
    %350 = arith.addf %344, %349 : vector<8x256xf32>
    %351 = vector.extract_strided_slice %2 {offsets = [0, 13], sizes = [8, 1], strides = [1, 1]} : vector<8x72xf32> to vector<8x1xf32>
    %352 = vector.extract_strided_slice %320 {offsets = [5, 0], sizes = [1, 256], strides = [1, 1]} : vector<8x256xf32> to vector<1x256xf32>
    %353 = vector.broadcast %351 : vector<8x1xf32> to vector<8x256xf32>
    %354 = vector.broadcast %352 : vector<1x256xf32> to vector<8x256xf32>
    %355 = arith.mulf %353, %354 : vector<8x256xf32>
    %356 = arith.addf %350, %355 : vector<8x256xf32>
    %357 = vector.extract_strided_slice %2 {offsets = [0, 14], sizes = [8, 1], strides = [1, 1]} : vector<8x72xf32> to vector<8x1xf32>
    %358 = vector.extract_strided_slice %320 {offsets = [6, 0], sizes = [1, 256], strides = [1, 1]} : vector<8x256xf32> to vector<1x256xf32>
    %359 = vector.broadcast %357 : vector<8x1xf32> to vector<8x256xf32>
    %360 = vector.broadcast %358 : vector<1x256xf32> to vector<8x256xf32>
    %361 = arith.mulf %359, %360 : vector<8x256xf32>
    %362 = arith.addf %356, %361 : vector<8x256xf32>
    %363 = vector.extract_strided_slice %2 {offsets = [0, 15], sizes = [8, 1], strides = [1, 1]} : vector<8x72xf32> to vector<8x1xf32>
    %364 = vector.extract_strided_slice %320 {offsets = [7, 0], sizes = [1, 256], strides = [1, 1]} : vector<8x256xf32> to vector<1x256xf32>
    %365 = vector.broadcast %363 : vector<8x1xf32> to vector<8x256xf32>
    %366 = vector.broadcast %364 : vector<1x256xf32> to vector<8x256xf32>
    %367 = arith.mulf %365, %366 : vector<8x256xf32>
    %368 = arith.addf %362, %367 : vector<8x256xf32>
    %c15_i32_15 = arith.constant 15 : i32
    %369 = tpu.dynamic_rotate %263 by %c15_i32_15 dim 1 : vector<8x256xf32>, i32 -> vector<8x256xf32>
    %370 = vector.extract_strided_slice %0 {offsets = [2, 0], sizes = [1, 256], strides = [1, 1]} : vector<9x256xf32> to vector<1x256xf32>
    %371 = vector.broadcast %370 : vector<1x256xf32> to vector<8x256xf32>
    %372 = arith.mulf %369, %371 : vector<8x256xf32>
    %373 = vector.extract_strided_slice %2 {offsets = [0, 16], sizes = [8, 1], strides = [1, 1]} : vector<8x72xf32> to vector<8x1xf32>
    %374 = vector.extract_strided_slice %372 {offsets = [0, 0], sizes = [1, 256], strides = [1, 1]} : vector<8x256xf32> to vector<1x256xf32>
    %375 = vector.broadcast %373 : vector<8x1xf32> to vector<8x256xf32>
    %376 = vector.broadcast %374 : vector<1x256xf32> to vector<8x256xf32>
    %377 = arith.mulf %375, %376 : vector<8x256xf32>
    %378 = arith.addf %368, %377 : vector<8x256xf32>
    %379 = vector.extract_strided_slice %2 {offsets = [0, 17], sizes = [8, 1], strides = [1, 1]} : vector<8x72xf32> to vector<8x1xf32>
    %380 = vector.extract_strided_slice %372 {offsets = [1, 0], sizes = [1, 256], strides = [1, 1]} : vector<8x256xf32> to vector<1x256xf32>
    %381 = vector.broadcast %379 : vector<8x1xf32> to vector<8x256xf32>
    %382 = vector.broadcast %380 : vector<1x256xf32> to vector<8x256xf32>
    %383 = arith.mulf %381, %382 : vector<8x256xf32>
    %384 = arith.addf %378, %383 : vector<8x256xf32>
    %385 = vector.extract_strided_slice %2 {offsets = [0, 18], sizes = [8, 1], strides = [1, 1]} : vector<8x72xf32> to vector<8x1xf32>
    %386 = vector.extract_strided_slice %372 {offsets = [2, 0], sizes = [1, 256], strides = [1, 1]} : vector<8x256xf32> to vector<1x256xf32>
    %387 = vector.broadcast %385 : vector<8x1xf32> to vector<8x256xf32>
    %388 = vector.broadcast %386 : vector<1x256xf32> to vector<8x256xf32>
    %389 = arith.mulf %387, %388 : vector<8x256xf32>
    %390 = arith.addf %384, %389 : vector<8x256xf32>
    %391 = vector.extract_strided_slice %2 {offsets = [0, 19], sizes = [8, 1], strides = [1, 1]} : vector<8x72xf32> to vector<8x1xf32>
    %392 = vector.extract_strided_slice %372 {offsets = [3, 0], sizes = [1, 256], strides = [1, 1]} : vector<8x256xf32> to vector<1x256xf32>
    %393 = vector.broadcast %391 : vector<8x1xf32> to vector<8x256xf32>
    %394 = vector.broadcast %392 : vector<1x256xf32> to vector<8x256xf32>
    %395 = arith.mulf %393, %394 : vector<8x256xf32>
    %396 = arith.addf %390, %395 : vector<8x256xf32>
    %397 = vector.extract_strided_slice %2 {offsets = [0, 20], sizes = [8, 1], strides = [1, 1]} : vector<8x72xf32> to vector<8x1xf32>
    %398 = vector.extract_strided_slice %372 {offsets = [4, 0], sizes = [1, 256], strides = [1, 1]} : vector<8x256xf32> to vector<1x256xf32>
    %399 = vector.broadcast %397 : vector<8x1xf32> to vector<8x256xf32>
    %400 = vector.broadcast %398 : vector<1x256xf32> to vector<8x256xf32>
    %401 = arith.mulf %399, %400 : vector<8x256xf32>
    %402 = arith.addf %396, %401 : vector<8x256xf32>
    %403 = vector.extract_strided_slice %2 {offsets = [0, 21], sizes = [8, 1], strides = [1, 1]} : vector<8x72xf32> to vector<8x1xf32>
    %404 = vector.extract_strided_slice %372 {offsets = [5, 0], sizes = [1, 256], strides = [1, 1]} : vector<8x256xf32> to vector<1x256xf32>
    %405 = vector.broadcast %403 : vector<8x1xf32> to vector<8x256xf32>
    %406 = vector.broadcast %404 : vector<1x256xf32> to vector<8x256xf32>
    %407 = arith.mulf %405, %406 : vector<8x256xf32>
    %408 = arith.addf %402, %407 : vector<8x256xf32>
    %409 = vector.extract_strided_slice %2 {offsets = [0, 22], sizes = [8, 1], strides = [1, 1]} : vector<8x72xf32> to vector<8x1xf32>
    %410 = vector.extract_strided_slice %372 {offsets = [6, 0], sizes = [1, 256], strides = [1, 1]} : vector<8x256xf32> to vector<1x256xf32>
    %411 = vector.broadcast %409 : vector<8x1xf32> to vector<8x256xf32>
    %412 = vector.broadcast %410 : vector<1x256xf32> to vector<8x256xf32>
    %413 = arith.mulf %411, %412 : vector<8x256xf32>
    %414 = arith.addf %408, %413 : vector<8x256xf32>
    %415 = vector.extract_strided_slice %2 {offsets = [0, 23], sizes = [8, 1], strides = [1, 1]} : vector<8x72xf32> to vector<8x1xf32>
    %416 = vector.extract_strided_slice %372 {offsets = [7, 0], sizes = [1, 256], strides = [1, 1]} : vector<8x256xf32> to vector<1x256xf32>
    %417 = vector.broadcast %415 : vector<8x1xf32> to vector<8x256xf32>
    %418 = vector.broadcast %416 : vector<1x256xf32> to vector<8x256xf32>
    %419 = arith.mulf %417, %418 : vector<8x256xf32>
    %420 = arith.addf %414, %419 : vector<8x256xf32>
    %c1_i32_16 = arith.constant 1 : i32
    %421 = tpu.dynamic_rotate %263 by %c1_i32_16 dim 1 : vector<8x256xf32>, i32 -> vector<8x256xf32>
    %422 = vector.extract_strided_slice %0 {offsets = [3, 0], sizes = [1, 256], strides = [1, 1]} : vector<9x256xf32> to vector<1x256xf32>
    %423 = vector.broadcast %422 : vector<1x256xf32> to vector<8x256xf32>
    %424 = arith.mulf %421, %423 : vector<8x256xf32>
    %425 = vector.extract_strided_slice %2 {offsets = [0, 24], sizes = [8, 1], strides = [1, 1]} : vector<8x72xf32> to vector<8x1xf32>
    %426 = vector.extract_strided_slice %424 {offsets = [0, 0], sizes = [1, 256], strides = [1, 1]} : vector<8x256xf32> to vector<1x256xf32>
    %427 = vector.broadcast %425 : vector<8x1xf32> to vector<8x256xf32>
    %428 = vector.broadcast %426 : vector<1x256xf32> to vector<8x256xf32>
    %429 = arith.mulf %427, %428 : vector<8x256xf32>
    %430 = arith.addf %420, %429 : vector<8x256xf32>
    %431 = vector.extract_strided_slice %2 {offsets = [0, 25], sizes = [8, 1], strides = [1, 1]} : vector<8x72xf32> to vector<8x1xf32>
    %432 = vector.extract_strided_slice %424 {offsets = [1, 0], sizes = [1, 256], strides = [1, 1]} : vector<8x256xf32> to vector<1x256xf32>
    %433 = vector.broadcast %431 : vector<8x1xf32> to vector<8x256xf32>
    %434 = vector.broadcast %432 : vector<1x256xf32> to vector<8x256xf32>
    %435 = arith.mulf %433, %434 : vector<8x256xf32>
    %436 = arith.addf %430, %435 : vector<8x256xf32>
    %437 = vector.extract_strided_slice %2 {offsets = [0, 26], sizes = [8, 1], strides = [1, 1]} : vector<8x72xf32> to vector<8x1xf32>
    %438 = vector.extract_strided_slice %424 {offsets = [2, 0], sizes = [1, 256], strides = [1, 1]} : vector<8x256xf32> to vector<1x256xf32>
    %439 = vector.broadcast %437 : vector<8x1xf32> to vector<8x256xf32>
    %440 = vector.broadcast %438 : vector<1x256xf32> to vector<8x256xf32>
    %441 = arith.mulf %439, %440 : vector<8x256xf32>
    %442 = arith.addf %436, %441 : vector<8x256xf32>
    %443 = vector.extract_strided_slice %2 {offsets = [0, 27], sizes = [8, 1], strides = [1, 1]} : vector<8x72xf32> to vector<8x1xf32>
    %444 = vector.extract_strided_slice %424 {offsets = [3, 0], sizes = [1, 256], strides = [1, 1]} : vector<8x256xf32> to vector<1x256xf32>
    %445 = vector.broadcast %443 : vector<8x1xf32> to vector<8x256xf32>
    %446 = vector.broadcast %444 : vector<1x256xf32> to vector<8x256xf32>
    %447 = arith.mulf %445, %446 : vector<8x256xf32>
    %448 = arith.addf %442, %447 : vector<8x256xf32>
    %449 = vector.extract_strided_slice %2 {offsets = [0, 28], sizes = [8, 1], strides = [1, 1]} : vector<8x72xf32> to vector<8x1xf32>
    %450 = vector.extract_strided_slice %424 {offsets = [4, 0], sizes = [1, 256], strides = [1, 1]} : vector<8x256xf32> to vector<1x256xf32>
    %451 = vector.broadcast %449 : vector<8x1xf32> to vector<8x256xf32>
    %452 = vector.broadcast %450 : vector<1x256xf32> to vector<8x256xf32>
    %453 = arith.mulf %451, %452 : vector<8x256xf32>
    %454 = arith.addf %448, %453 : vector<8x256xf32>
    %455 = vector.extract_strided_slice %2 {offsets = [0, 29], sizes = [8, 1], strides = [1, 1]} : vector<8x72xf32> to vector<8x1xf32>
    %456 = vector.extract_strided_slice %424 {offsets = [5, 0], sizes = [1, 256], strides = [1, 1]} : vector<8x256xf32> to vector<1x256xf32>
    %457 = vector.broadcast %455 : vector<8x1xf32> to vector<8x256xf32>
    %458 = vector.broadcast %456 : vector<1x256xf32> to vector<8x256xf32>
    %459 = arith.mulf %457, %458 : vector<8x256xf32>
    %460 = arith.addf %454, %459 : vector<8x256xf32>
    %461 = vector.extract_strided_slice %2 {offsets = [0, 30], sizes = [8, 1], strides = [1, 1]} : vector<8x72xf32> to vector<8x1xf32>
    %462 = vector.extract_strided_slice %424 {offsets = [6, 0], sizes = [1, 256], strides = [1, 1]} : vector<8x256xf32> to vector<1x256xf32>
    %463 = vector.broadcast %461 : vector<8x1xf32> to vector<8x256xf32>
    %464 = vector.broadcast %462 : vector<1x256xf32> to vector<8x256xf32>
    %465 = arith.mulf %463, %464 : vector<8x256xf32>
    %466 = arith.addf %460, %465 : vector<8x256xf32>
    %467 = vector.extract_strided_slice %2 {offsets = [0, 31], sizes = [8, 1], strides = [1, 1]} : vector<8x72xf32> to vector<8x1xf32>
    %468 = vector.extract_strided_slice %424 {offsets = [7, 0], sizes = [1, 256], strides = [1, 1]} : vector<8x256xf32> to vector<1x256xf32>
    %469 = vector.broadcast %467 : vector<8x1xf32> to vector<8x256xf32>
    %470 = vector.broadcast %468 : vector<1x256xf32> to vector<8x256xf32>
    %471 = arith.mulf %469, %470 : vector<8x256xf32>
    %472 = arith.addf %466, %471 : vector<8x256xf32>
    %473 = vector.extract_strided_slice %2 {offsets = [0, 32], sizes = [8, 1], strides = [1, 1]} : vector<8x72xf32> to vector<8x1xf32>
    %474 = vector.extract_strided_slice %263 {offsets = [0, 0], sizes = [1, 256], strides = [1, 1]} : vector<8x256xf32> to vector<1x256xf32>
    %475 = vector.broadcast %473 : vector<8x1xf32> to vector<8x256xf32>
    %476 = vector.broadcast %474 : vector<1x256xf32> to vector<8x256xf32>
    %477 = arith.mulf %475, %476 : vector<8x256xf32>
    %478 = arith.addf %472, %477 : vector<8x256xf32>
    %479 = vector.extract_strided_slice %2 {offsets = [0, 33], sizes = [8, 1], strides = [1, 1]} : vector<8x72xf32> to vector<8x1xf32>
    %480 = vector.extract_strided_slice %263 {offsets = [1, 0], sizes = [1, 256], strides = [1, 1]} : vector<8x256xf32> to vector<1x256xf32>
    %481 = vector.broadcast %479 : vector<8x1xf32> to vector<8x256xf32>
    %482 = vector.broadcast %480 : vector<1x256xf32> to vector<8x256xf32>
    %483 = arith.mulf %481, %482 : vector<8x256xf32>
    %484 = arith.addf %478, %483 : vector<8x256xf32>
    %485 = vector.extract_strided_slice %2 {offsets = [0, 34], sizes = [8, 1], strides = [1, 1]} : vector<8x72xf32> to vector<8x1xf32>
    %486 = vector.extract_strided_slice %263 {offsets = [2, 0], sizes = [1, 256], strides = [1, 1]} : vector<8x256xf32> to vector<1x256xf32>
    %487 = vector.broadcast %485 : vector<8x1xf32> to vector<8x256xf32>
    %488 = vector.broadcast %486 : vector<1x256xf32> to vector<8x256xf32>
    %489 = arith.mulf %487, %488 : vector<8x256xf32>
    %490 = arith.addf %484, %489 : vector<8x256xf32>
    %491 = vector.extract_strided_slice %2 {offsets = [0, 35], sizes = [8, 1], strides = [1, 1]} : vector<8x72xf32> to vector<8x1xf32>
    %492 = vector.extract_strided_slice %263 {offsets = [3, 0], sizes = [1, 256], strides = [1, 1]} : vector<8x256xf32> to vector<1x256xf32>
    %493 = vector.broadcast %491 : vector<8x1xf32> to vector<8x256xf32>
    %494 = vector.broadcast %492 : vector<1x256xf32> to vector<8x256xf32>
    %495 = arith.mulf %493, %494 : vector<8x256xf32>
    %496 = arith.addf %490, %495 : vector<8x256xf32>
    %497 = vector.extract_strided_slice %2 {offsets = [0, 36], sizes = [8, 1], strides = [1, 1]} : vector<8x72xf32> to vector<8x1xf32>
    %498 = vector.extract_strided_slice %263 {offsets = [4, 0], sizes = [1, 256], strides = [1, 1]} : vector<8x256xf32> to vector<1x256xf32>
    %499 = vector.broadcast %497 : vector<8x1xf32> to vector<8x256xf32>
    %500 = vector.broadcast %498 : vector<1x256xf32> to vector<8x256xf32>
    %501 = arith.mulf %499, %500 : vector<8x256xf32>
    %502 = arith.addf %496, %501 : vector<8x256xf32>
    %503 = vector.extract_strided_slice %2 {offsets = [0, 37], sizes = [8, 1], strides = [1, 1]} : vector<8x72xf32> to vector<8x1xf32>
    %504 = vector.extract_strided_slice %263 {offsets = [5, 0], sizes = [1, 256], strides = [1, 1]} : vector<8x256xf32> to vector<1x256xf32>
    %505 = vector.broadcast %503 : vector<8x1xf32> to vector<8x256xf32>
    %506 = vector.broadcast %504 : vector<1x256xf32> to vector<8x256xf32>
    %507 = arith.mulf %505, %506 : vector<8x256xf32>
    %508 = arith.addf %502, %507 : vector<8x256xf32>
    %509 = vector.extract_strided_slice %2 {offsets = [0, 38], sizes = [8, 1], strides = [1, 1]} : vector<8x72xf32> to vector<8x1xf32>
    %510 = vector.extract_strided_slice %263 {offsets = [6, 0], sizes = [1, 256], strides = [1, 1]} : vector<8x256xf32> to vector<1x256xf32>
    %511 = vector.broadcast %509 : vector<8x1xf32> to vector<8x256xf32>
    %512 = vector.broadcast %510 : vector<1x256xf32> to vector<8x256xf32>
    %513 = arith.mulf %511, %512 : vector<8x256xf32>
    %514 = arith.addf %508, %513 : vector<8x256xf32>
    %515 = vector.extract_strided_slice %2 {offsets = [0, 39], sizes = [8, 1], strides = [1, 1]} : vector<8x72xf32> to vector<8x1xf32>
    %516 = vector.extract_strided_slice %263 {offsets = [7, 0], sizes = [1, 256], strides = [1, 1]} : vector<8x256xf32> to vector<1x256xf32>
    %517 = vector.broadcast %515 : vector<8x1xf32> to vector<8x256xf32>
    %518 = vector.broadcast %516 : vector<1x256xf32> to vector<8x256xf32>
    %519 = arith.mulf %517, %518 : vector<8x256xf32>
    %520 = arith.addf %514, %519 : vector<8x256xf32>
    %c255_i32_17 = arith.constant 255 : i32
    %521 = tpu.dynamic_rotate %263 by %c255_i32_17 dim 1 : vector<8x256xf32>, i32 -> vector<8x256xf32>
    %522 = vector.extract_strided_slice %0 {offsets = [5, 0], sizes = [1, 256], strides = [1, 1]} : vector<9x256xf32> to vector<1x256xf32>
    %523 = vector.broadcast %522 : vector<1x256xf32> to vector<8x256xf32>
    %524 = arith.mulf %521, %523 : vector<8x256xf32>
    %525 = vector.extract_strided_slice %2 {offsets = [0, 40], sizes = [8, 1], strides = [1, 1]} : vector<8x72xf32> to vector<8x1xf32>
    %526 = vector.extract_strided_slice %524 {offsets = [0, 0], sizes = [1, 256], strides = [1, 1]} : vector<8x256xf32> to vector<1x256xf32>
    %527 = vector.broadcast %525 : vector<8x1xf32> to vector<8x256xf32>
    %528 = vector.broadcast %526 : vector<1x256xf32> to vector<8x256xf32>
    %529 = arith.mulf %527, %528 : vector<8x256xf32>
    %530 = arith.addf %520, %529 : vector<8x256xf32>
    %531 = vector.extract_strided_slice %2 {offsets = [0, 41], sizes = [8, 1], strides = [1, 1]} : vector<8x72xf32> to vector<8x1xf32>
    %532 = vector.extract_strided_slice %524 {offsets = [1, 0], sizes = [1, 256], strides = [1, 1]} : vector<8x256xf32> to vector<1x256xf32>
    %533 = vector.broadcast %531 : vector<8x1xf32> to vector<8x256xf32>
    %534 = vector.broadcast %532 : vector<1x256xf32> to vector<8x256xf32>
    %535 = arith.mulf %533, %534 : vector<8x256xf32>
    %536 = arith.addf %530, %535 : vector<8x256xf32>
    %537 = vector.extract_strided_slice %2 {offsets = [0, 42], sizes = [8, 1], strides = [1, 1]} : vector<8x72xf32> to vector<8x1xf32>
    %538 = vector.extract_strided_slice %524 {offsets = [2, 0], sizes = [1, 256], strides = [1, 1]} : vector<8x256xf32> to vector<1x256xf32>
    %539 = vector.broadcast %537 : vector<8x1xf32> to vector<8x256xf32>
    %540 = vector.broadcast %538 : vector<1x256xf32> to vector<8x256xf32>
    %541 = arith.mulf %539, %540 : vector<8x256xf32>
    %542 = arith.addf %536, %541 : vector<8x256xf32>
    %543 = vector.extract_strided_slice %2 {offsets = [0, 43], sizes = [8, 1], strides = [1, 1]} : vector<8x72xf32> to vector<8x1xf32>
    %544 = vector.extract_strided_slice %524 {offsets = [3, 0], sizes = [1, 256], strides = [1, 1]} : vector<8x256xf32> to vector<1x256xf32>
    %545 = vector.broadcast %543 : vector<8x1xf32> to vector<8x256xf32>
    %546 = vector.broadcast %544 : vector<1x256xf32> to vector<8x256xf32>
    %547 = arith.mulf %545, %546 : vector<8x256xf32>
    %548 = arith.addf %542, %547 : vector<8x256xf32>
    %549 = vector.extract_strided_slice %2 {offsets = [0, 44], sizes = [8, 1], strides = [1, 1]} : vector<8x72xf32> to vector<8x1xf32>
    %550 = vector.extract_strided_slice %524 {offsets = [4, 0], sizes = [1, 256], strides = [1, 1]} : vector<8x256xf32> to vector<1x256xf32>
    %551 = vector.broadcast %549 : vector<8x1xf32> to vector<8x256xf32>
    %552 = vector.broadcast %550 : vector<1x256xf32> to vector<8x256xf32>
    %553 = arith.mulf %551, %552 : vector<8x256xf32>
    %554 = arith.addf %548, %553 : vector<8x256xf32>
    %555 = vector.extract_strided_slice %2 {offsets = [0, 45], sizes = [8, 1], strides = [1, 1]} : vector<8x72xf32> to vector<8x1xf32>
    %556 = vector.extract_strided_slice %524 {offsets = [5, 0], sizes = [1, 256], strides = [1, 1]} : vector<8x256xf32> to vector<1x256xf32>
    %557 = vector.broadcast %555 : vector<8x1xf32> to vector<8x256xf32>
    %558 = vector.broadcast %556 : vector<1x256xf32> to vector<8x256xf32>
    %559 = arith.mulf %557, %558 : vector<8x256xf32>
    %560 = arith.addf %554, %559 : vector<8x256xf32>
    %561 = vector.extract_strided_slice %2 {offsets = [0, 46], sizes = [8, 1], strides = [1, 1]} : vector<8x72xf32> to vector<8x1xf32>
    %562 = vector.extract_strided_slice %524 {offsets = [6, 0], sizes = [1, 256], strides = [1, 1]} : vector<8x256xf32> to vector<1x256xf32>
    %563 = vector.broadcast %561 : vector<8x1xf32> to vector<8x256xf32>
    %564 = vector.broadcast %562 : vector<1x256xf32> to vector<8x256xf32>
    %565 = arith.mulf %563, %564 : vector<8x256xf32>
    %566 = arith.addf %560, %565 : vector<8x256xf32>
    %567 = vector.extract_strided_slice %2 {offsets = [0, 47], sizes = [8, 1], strides = [1, 1]} : vector<8x72xf32> to vector<8x1xf32>
    %568 = vector.extract_strided_slice %524 {offsets = [7, 0], sizes = [1, 256], strides = [1, 1]} : vector<8x256xf32> to vector<1x256xf32>
    %569 = vector.broadcast %567 : vector<8x1xf32> to vector<8x256xf32>
    %570 = vector.broadcast %568 : vector<1x256xf32> to vector<8x256xf32>
    %571 = arith.mulf %569, %570 : vector<8x256xf32>
    %572 = arith.addf %566, %571 : vector<8x256xf32>
    %c241_i32_18 = arith.constant 241 : i32
    %573 = tpu.dynamic_rotate %263 by %c241_i32_18 dim 1 : vector<8x256xf32>, i32 -> vector<8x256xf32>
    %574 = vector.extract_strided_slice %0 {offsets = [6, 0], sizes = [1, 256], strides = [1, 1]} : vector<9x256xf32> to vector<1x256xf32>
    %575 = vector.broadcast %574 : vector<1x256xf32> to vector<8x256xf32>
    %576 = arith.mulf %573, %575 : vector<8x256xf32>
    %577 = vector.extract_strided_slice %2 {offsets = [0, 48], sizes = [8, 1], strides = [1, 1]} : vector<8x72xf32> to vector<8x1xf32>
    %578 = vector.extract_strided_slice %576 {offsets = [0, 0], sizes = [1, 256], strides = [1, 1]} : vector<8x256xf32> to vector<1x256xf32>
    %579 = vector.broadcast %577 : vector<8x1xf32> to vector<8x256xf32>
    %580 = vector.broadcast %578 : vector<1x256xf32> to vector<8x256xf32>
    %581 = arith.mulf %579, %580 : vector<8x256xf32>
    %582 = arith.addf %572, %581 : vector<8x256xf32>
    %583 = vector.extract_strided_slice %2 {offsets = [0, 49], sizes = [8, 1], strides = [1, 1]} : vector<8x72xf32> to vector<8x1xf32>
    %584 = vector.extract_strided_slice %576 {offsets = [1, 0], sizes = [1, 256], strides = [1, 1]} : vector<8x256xf32> to vector<1x256xf32>
    %585 = vector.broadcast %583 : vector<8x1xf32> to vector<8x256xf32>
    %586 = vector.broadcast %584 : vector<1x256xf32> to vector<8x256xf32>
    %587 = arith.mulf %585, %586 : vector<8x256xf32>
    %588 = arith.addf %582, %587 : vector<8x256xf32>
    %589 = vector.extract_strided_slice %2 {offsets = [0, 50], sizes = [8, 1], strides = [1, 1]} : vector<8x72xf32> to vector<8x1xf32>
    %590 = vector.extract_strided_slice %576 {offsets = [2, 0], sizes = [1, 256], strides = [1, 1]} : vector<8x256xf32> to vector<1x256xf32>
    %591 = vector.broadcast %589 : vector<8x1xf32> to vector<8x256xf32>
    %592 = vector.broadcast %590 : vector<1x256xf32> to vector<8x256xf32>
    %593 = arith.mulf %591, %592 : vector<8x256xf32>
    %594 = arith.addf %588, %593 : vector<8x256xf32>
    %595 = vector.extract_strided_slice %2 {offsets = [0, 51], sizes = [8, 1], strides = [1, 1]} : vector<8x72xf32> to vector<8x1xf32>
    %596 = vector.extract_strided_slice %576 {offsets = [3, 0], sizes = [1, 256], strides = [1, 1]} : vector<8x256xf32> to vector<1x256xf32>
    %597 = vector.broadcast %595 : vector<8x1xf32> to vector<8x256xf32>
    %598 = vector.broadcast %596 : vector<1x256xf32> to vector<8x256xf32>
    %599 = arith.mulf %597, %598 : vector<8x256xf32>
    %600 = arith.addf %594, %599 : vector<8x256xf32>
    %601 = vector.extract_strided_slice %2 {offsets = [0, 52], sizes = [8, 1], strides = [1, 1]} : vector<8x72xf32> to vector<8x1xf32>
    %602 = vector.extract_strided_slice %576 {offsets = [4, 0], sizes = [1, 256], strides = [1, 1]} : vector<8x256xf32> to vector<1x256xf32>
    %603 = vector.broadcast %601 : vector<8x1xf32> to vector<8x256xf32>
    %604 = vector.broadcast %602 : vector<1x256xf32> to vector<8x256xf32>
    %605 = arith.mulf %603, %604 : vector<8x256xf32>
    %606 = arith.addf %600, %605 : vector<8x256xf32>
    %607 = vector.extract_strided_slice %2 {offsets = [0, 53], sizes = [8, 1], strides = [1, 1]} : vector<8x72xf32> to vector<8x1xf32>
    %608 = vector.extract_strided_slice %576 {offsets = [5, 0], sizes = [1, 256], strides = [1, 1]} : vector<8x256xf32> to vector<1x256xf32>
    %609 = vector.broadcast %607 : vector<8x1xf32> to vector<8x256xf32>
    %610 = vector.broadcast %608 : vector<1x256xf32> to vector<8x256xf32>
    %611 = arith.mulf %609, %610 : vector<8x256xf32>
    %612 = arith.addf %606, %611 : vector<8x256xf32>
    %613 = vector.extract_strided_slice %2 {offsets = [0, 54], sizes = [8, 1], strides = [1, 1]} : vector<8x72xf32> to vector<8x1xf32>
    %614 = vector.extract_strided_slice %576 {offsets = [6, 0], sizes = [1, 256], strides = [1, 1]} : vector<8x256xf32> to vector<1x256xf32>
    %615 = vector.broadcast %613 : vector<8x1xf32> to vector<8x256xf32>
    %616 = vector.broadcast %614 : vector<1x256xf32> to vector<8x256xf32>
    %617 = arith.mulf %615, %616 : vector<8x256xf32>
    %618 = arith.addf %612, %617 : vector<8x256xf32>
    %619 = vector.extract_strided_slice %2 {offsets = [0, 55], sizes = [8, 1], strides = [1, 1]} : vector<8x72xf32> to vector<8x1xf32>
    %620 = vector.extract_strided_slice %576 {offsets = [7, 0], sizes = [1, 256], strides = [1, 1]} : vector<8x256xf32> to vector<1x256xf32>
    %621 = vector.broadcast %619 : vector<8x1xf32> to vector<8x256xf32>
    %622 = vector.broadcast %620 : vector<1x256xf32> to vector<8x256xf32>
    %623 = arith.mulf %621, %622 : vector<8x256xf32>
    %624 = arith.addf %618, %623 : vector<8x256xf32>
    %c240_i32_19 = arith.constant 240 : i32
    %625 = tpu.dynamic_rotate %263 by %c240_i32_19 dim 1 : vector<8x256xf32>, i32 -> vector<8x256xf32>
    %626 = vector.extract_strided_slice %0 {offsets = [7, 0], sizes = [1, 256], strides = [1, 1]} : vector<9x256xf32> to vector<1x256xf32>
    %627 = vector.broadcast %626 : vector<1x256xf32> to vector<8x256xf32>
    %628 = arith.mulf %625, %627 : vector<8x256xf32>
    %629 = vector.extract_strided_slice %2 {offsets = [0, 56], sizes = [8, 1], strides = [1, 1]} : vector<8x72xf32> to vector<8x1xf32>
    %630 = vector.extract_strided_slice %628 {offsets = [0, 0], sizes = [1, 256], strides = [1, 1]} : vector<8x256xf32> to vector<1x256xf32>
    %631 = vector.broadcast %629 : vector<8x1xf32> to vector<8x256xf32>
    %632 = vector.broadcast %630 : vector<1x256xf32> to vector<8x256xf32>
    %633 = arith.mulf %631, %632 : vector<8x256xf32>
    %634 = arith.addf %624, %633 : vector<8x256xf32>
    %635 = vector.extract_strided_slice %2 {offsets = [0, 57], sizes = [8, 1], strides = [1, 1]} : vector<8x72xf32> to vector<8x1xf32>
    %636 = vector.extract_strided_slice %628 {offsets = [1, 0], sizes = [1, 256], strides = [1, 1]} : vector<8x256xf32> to vector<1x256xf32>
    %637 = vector.broadcast %635 : vector<8x1xf32> to vector<8x256xf32>
    %638 = vector.broadcast %636 : vector<1x256xf32> to vector<8x256xf32>
    %639 = arith.mulf %637, %638 : vector<8x256xf32>
    %640 = arith.addf %634, %639 : vector<8x256xf32>
    %641 = vector.extract_strided_slice %2 {offsets = [0, 58], sizes = [8, 1], strides = [1, 1]} : vector<8x72xf32> to vector<8x1xf32>
    %642 = vector.extract_strided_slice %628 {offsets = [2, 0], sizes = [1, 256], strides = [1, 1]} : vector<8x256xf32> to vector<1x256xf32>
    %643 = vector.broadcast %641 : vector<8x1xf32> to vector<8x256xf32>
    %644 = vector.broadcast %642 : vector<1x256xf32> to vector<8x256xf32>
    %645 = arith.mulf %643, %644 : vector<8x256xf32>
    %646 = arith.addf %640, %645 : vector<8x256xf32>
    %647 = vector.extract_strided_slice %2 {offsets = [0, 59], sizes = [8, 1], strides = [1, 1]} : vector<8x72xf32> to vector<8x1xf32>
    %648 = vector.extract_strided_slice %628 {offsets = [3, 0], sizes = [1, 256], strides = [1, 1]} : vector<8x256xf32> to vector<1x256xf32>
    %649 = vector.broadcast %647 : vector<8x1xf32> to vector<8x256xf32>
    %650 = vector.broadcast %648 : vector<1x256xf32> to vector<8x256xf32>
    %651 = arith.mulf %649, %650 : vector<8x256xf32>
    %652 = arith.addf %646, %651 : vector<8x256xf32>
    %653 = vector.extract_strided_slice %2 {offsets = [0, 60], sizes = [8, 1], strides = [1, 1]} : vector<8x72xf32> to vector<8x1xf32>
    %654 = vector.extract_strided_slice %628 {offsets = [4, 0], sizes = [1, 256], strides = [1, 1]} : vector<8x256xf32> to vector<1x256xf32>
    %655 = vector.broadcast %653 : vector<8x1xf32> to vector<8x256xf32>
    %656 = vector.broadcast %654 : vector<1x256xf32> to vector<8x256xf32>
    %657 = arith.mulf %655, %656 : vector<8x256xf32>
    %658 = arith.addf %652, %657 : vector<8x256xf32>
    %659 = vector.extract_strided_slice %2 {offsets = [0, 61], sizes = [8, 1], strides = [1, 1]} : vector<8x72xf32> to vector<8x1xf32>
    %660 = vector.extract_strided_slice %628 {offsets = [5, 0], sizes = [1, 256], strides = [1, 1]} : vector<8x256xf32> to vector<1x256xf32>
    %661 = vector.broadcast %659 : vector<8x1xf32> to vector<8x256xf32>
    %662 = vector.broadcast %660 : vector<1x256xf32> to vector<8x256xf32>
    %663 = arith.mulf %661, %662 : vector<8x256xf32>
    %664 = arith.addf %658, %663 : vector<8x256xf32>
    %665 = vector.extract_strided_slice %2 {offsets = [0, 62], sizes = [8, 1], strides = [1, 1]} : vector<8x72xf32> to vector<8x1xf32>
    %666 = vector.extract_strided_slice %628 {offsets = [6, 0], sizes = [1, 256], strides = [1, 1]} : vector<8x256xf32> to vector<1x256xf32>
    %667 = vector.broadcast %665 : vector<8x1xf32> to vector<8x256xf32>
    %668 = vector.broadcast %666 : vector<1x256xf32> to vector<8x256xf32>
    %669 = arith.mulf %667, %668 : vector<8x256xf32>
    %670 = arith.addf %664, %669 : vector<8x256xf32>
    %671 = vector.extract_strided_slice %2 {offsets = [0, 63], sizes = [8, 1], strides = [1, 1]} : vector<8x72xf32> to vector<8x1xf32>
    %672 = vector.extract_strided_slice %628 {offsets = [7, 0], sizes = [1, 256], strides = [1, 1]} : vector<8x256xf32> to vector<1x256xf32>
    %673 = vector.broadcast %671 : vector<8x1xf32> to vector<8x256xf32>
    %674 = vector.broadcast %672 : vector<1x256xf32> to vector<8x256xf32>
    %675 = arith.mulf %673, %674 : vector<8x256xf32>
    %676 = arith.addf %670, %675 : vector<8x256xf32>
    %c239_i32_20 = arith.constant 239 : i32
    %677 = tpu.dynamic_rotate %263 by %c239_i32_20 dim 1 : vector<8x256xf32>, i32 -> vector<8x256xf32>
    %678 = vector.extract_strided_slice %0 {offsets = [8, 0], sizes = [1, 256], strides = [1, 1]} : vector<9x256xf32> to vector<1x256xf32>
    %679 = vector.broadcast %678 : vector<1x256xf32> to vector<8x256xf32>
    %680 = arith.mulf %677, %679 : vector<8x256xf32>
    %681 = vector.extract_strided_slice %2 {offsets = [0, 64], sizes = [8, 1], strides = [1, 1]} : vector<8x72xf32> to vector<8x1xf32>
    %682 = vector.extract_strided_slice %680 {offsets = [0, 0], sizes = [1, 256], strides = [1, 1]} : vector<8x256xf32> to vector<1x256xf32>
    %683 = vector.broadcast %681 : vector<8x1xf32> to vector<8x256xf32>
    %684 = vector.broadcast %682 : vector<1x256xf32> to vector<8x256xf32>
    %685 = arith.mulf %683, %684 : vector<8x256xf32>
    %686 = arith.addf %676, %685 : vector<8x256xf32>
    %687 = vector.extract_strided_slice %2 {offsets = [0, 65], sizes = [8, 1], strides = [1, 1]} : vector<8x72xf32> to vector<8x1xf32>
    %688 = vector.extract_strided_slice %680 {offsets = [1, 0], sizes = [1, 256], strides = [1, 1]} : vector<8x256xf32> to vector<1x256xf32>
    %689 = vector.broadcast %687 : vector<8x1xf32> to vector<8x256xf32>
    %690 = vector.broadcast %688 : vector<1x256xf32> to vector<8x256xf32>
    %691 = arith.mulf %689, %690 : vector<8x256xf32>
    %692 = arith.addf %686, %691 : vector<8x256xf32>
    %693 = vector.extract_strided_slice %2 {offsets = [0, 66], sizes = [8, 1], strides = [1, 1]} : vector<8x72xf32> to vector<8x1xf32>
    %694 = vector.extract_strided_slice %680 {offsets = [2, 0], sizes = [1, 256], strides = [1, 1]} : vector<8x256xf32> to vector<1x256xf32>
    %695 = vector.broadcast %693 : vector<8x1xf32> to vector<8x256xf32>
    %696 = vector.broadcast %694 : vector<1x256xf32> to vector<8x256xf32>
    %697 = arith.mulf %695, %696 : vector<8x256xf32>
    %698 = arith.addf %692, %697 : vector<8x256xf32>
    %699 = vector.extract_strided_slice %2 {offsets = [0, 67], sizes = [8, 1], strides = [1, 1]} : vector<8x72xf32> to vector<8x1xf32>
    %700 = vector.extract_strided_slice %680 {offsets = [3, 0], sizes = [1, 256], strides = [1, 1]} : vector<8x256xf32> to vector<1x256xf32>
    %701 = vector.broadcast %699 : vector<8x1xf32> to vector<8x256xf32>
    %702 = vector.broadcast %700 : vector<1x256xf32> to vector<8x256xf32>
    %703 = arith.mulf %701, %702 : vector<8x256xf32>
    %704 = arith.addf %698, %703 : vector<8x256xf32>
    %705 = vector.extract_strided_slice %2 {offsets = [0, 68], sizes = [8, 1], strides = [1, 1]} : vector<8x72xf32> to vector<8x1xf32>
    %706 = vector.extract_strided_slice %680 {offsets = [4, 0], sizes = [1, 256], strides = [1, 1]} : vector<8x256xf32> to vector<1x256xf32>
    %707 = vector.broadcast %705 : vector<8x1xf32> to vector<8x256xf32>
    %708 = vector.broadcast %706 : vector<1x256xf32> to vector<8x256xf32>
    %709 = arith.mulf %707, %708 : vector<8x256xf32>
    %710 = arith.addf %704, %709 : vector<8x256xf32>
    %711 = vector.extract_strided_slice %2 {offsets = [0, 69], sizes = [8, 1], strides = [1, 1]} : vector<8x72xf32> to vector<8x1xf32>
    %712 = vector.extract_strided_slice %680 {offsets = [5, 0], sizes = [1, 256], strides = [1, 1]} : vector<8x256xf32> to vector<1x256xf32>
    %713 = vector.broadcast %711 : vector<8x1xf32> to vector<8x256xf32>
    %714 = vector.broadcast %712 : vector<1x256xf32> to vector<8x256xf32>
    %715 = arith.mulf %713, %714 : vector<8x256xf32>
    %716 = arith.addf %710, %715 : vector<8x256xf32>
    %717 = vector.extract_strided_slice %2 {offsets = [0, 70], sizes = [8, 1], strides = [1, 1]} : vector<8x72xf32> to vector<8x1xf32>
    %718 = vector.extract_strided_slice %680 {offsets = [6, 0], sizes = [1, 256], strides = [1, 1]} : vector<8x256xf32> to vector<1x256xf32>
    %719 = vector.broadcast %717 : vector<8x1xf32> to vector<8x256xf32>
    %720 = vector.broadcast %718 : vector<1x256xf32> to vector<8x256xf32>
    %721 = arith.mulf %719, %720 : vector<8x256xf32>
    %722 = arith.addf %716, %721 : vector<8x256xf32>
    %723 = vector.extract_strided_slice %2 {offsets = [0, 71], sizes = [8, 1], strides = [1, 1]} : vector<8x72xf32> to vector<8x1xf32>
    %724 = vector.extract_strided_slice %680 {offsets = [7, 0], sizes = [1, 256], strides = [1, 1]} : vector<8x256xf32> to vector<1x256xf32>
    %725 = vector.broadcast %723 : vector<8x1xf32> to vector<8x256xf32>
    %726 = vector.broadcast %724 : vector<1x256xf32> to vector<8x256xf32>
    %727 = arith.mulf %725, %726 : vector<8x256xf32>
    %728 = arith.addf %722, %727 : vector<8x256xf32>
    %729 = vector.broadcast %7 : vector<8x1xf32> to vector<8x256xf32>
    %730 = arith.addf %728, %729 : vector<8x256xf32>
    %cst_21 = arith.constant 0.000000e+00 : f32
    %731 = vector.broadcast %cst_21 : f32 to vector<8x256xf32>
    %732 = arith.maximumf %730, %731 : vector<8x256xf32>
    %c0_22 = arith.constant 0 : index
    %c0_23 = arith.constant 0 : index
    %c0_24 = arith.constant 0 : index
    %733 = vector.load %arg6[%c0_22, %c0_23, %c0_24] : memref<2x8x256xf32, #tpu.memory_space<vmem>>, vector<1x8x256xf32>
    %734 = vector.shape_cast %733 : vector<1x8x256xf32> to vector<8x256xf32>
    %735 = vector.shape_cast %732 : vector<8x256xf32> to vector<1x8x256xf32>
    tpu.vector_store %arg6[%c0_22, %c0_23, %c0_24], %735 {strides = array<i32>} : memref<2x8x256xf32, #tpu.memory_space<vmem>>, vector<1x8x256xf32>,
    %736 = vector.extract_strided_slice %8 {offsets = [1, 0, 0], sizes = [1, 4, 256], strides = [1, 1, 1]} : vector<2x4x256xf32> to vector<1x4x256xf32>
    %737 = vector.shape_cast %736 : vector<1x4x256xf32> to vector<4x256xf32>
    %cst_25 = arith.constant 0.000000e+00 : f32
    %738 = vector.broadcast %cst_25 : f32 to vector<8x256xf32>
    %c17_i32_26 = arith.constant 17 : i32
    %739 = tpu.dynamic_rotate %737 by %c17_i32_26 dim 1 : vector<4x256xf32>, i32 -> vector<4x256xf32>
    %740 = vector.extract_strided_slice %0 {offsets = [0, 0], sizes = [1, 256], strides = [1, 1]} : vector<9x256xf32> to vector<1x256xf32>
    %741 = vector.broadcast %740 : vector<1x256xf32> to vector<4x256xf32>
    %742 = arith.mulf %739, %741 : vector<4x256xf32>
    %743 = vector.extract_strided_slice %1 {offsets = [0, 0], sizes = [8, 1], strides = [1, 1]} : vector<8x36xf32> to vector<8x1xf32>
    %744 = vector.extract_strided_slice %742 {offsets = [0, 0], sizes = [1, 256], strides = [1, 1]} : vector<4x256xf32> to vector<1x256xf32>
    %745 = vector.broadcast %743 : vector<8x1xf32> to vector<8x256xf32>
    %746 = vector.broadcast %744 : vector<1x256xf32> to vector<8x256xf32>
    %747 = arith.mulf %745, %746 : vector<8x256xf32>
    %748 = arith.addf %738, %747 : vector<8x256xf32>
    %749 = vector.extract_strided_slice %1 {offsets = [0, 1], sizes = [8, 1], strides = [1, 1]} : vector<8x36xf32> to vector<8x1xf32>
    %750 = vector.extract_strided_slice %742 {offsets = [1, 0], sizes = [1, 256], strides = [1, 1]} : vector<4x256xf32> to vector<1x256xf32>
    %751 = vector.broadcast %749 : vector<8x1xf32> to vector<8x256xf32>
    %752 = vector.broadcast %750 : vector<1x256xf32> to vector<8x256xf32>
    %753 = arith.mulf %751, %752 : vector<8x256xf32>
    %754 = arith.addf %748, %753 : vector<8x256xf32>
    %755 = vector.extract_strided_slice %1 {offsets = [0, 2], sizes = [8, 1], strides = [1, 1]} : vector<8x36xf32> to vector<8x1xf32>
    %756 = vector.extract_strided_slice %742 {offsets = [2, 0], sizes = [1, 256], strides = [1, 1]} : vector<4x256xf32> to vector<1x256xf32>
    %757 = vector.broadcast %755 : vector<8x1xf32> to vector<8x256xf32>
    %758 = vector.broadcast %756 : vector<1x256xf32> to vector<8x256xf32>
    %759 = arith.mulf %757, %758 : vector<8x256xf32>
    %760 = arith.addf %754, %759 : vector<8x256xf32>
    %761 = vector.extract_strided_slice %1 {offsets = [0, 3], sizes = [8, 1], strides = [1, 1]} : vector<8x36xf32> to vector<8x1xf32>
    %762 = vector.extract_strided_slice %742 {offsets = [3, 0], sizes = [1, 256], strides = [1, 1]} : vector<4x256xf32> to vector<1x256xf32>
    %763 = vector.broadcast %761 : vector<8x1xf32> to vector<8x256xf32>
    %764 = vector.broadcast %762 : vector<1x256xf32> to vector<8x256xf32>
    %765 = arith.mulf %763, %764 : vector<8x256xf32>
    %766 = arith.addf %760, %765 : vector<8x256xf32>
    %c16_i32_27 = arith.constant 16 : i32
    %767 = tpu.dynamic_rotate %737 by %c16_i32_27 dim 1 : vector<4x256xf32>, i32 -> vector<4x256xf32>
    %768 = vector.extract_strided_slice %0 {offsets = [1, 0], sizes = [1, 256], strides = [1, 1]} : vector<9x256xf32> to vector<1x256xf32>
    %769 = vector.broadcast %768 : vector<1x256xf32> to vector<4x256xf32>
    %770 = arith.mulf %767, %769 : vector<4x256xf32>
    %771 = vector.extract_strided_slice %1 {offsets = [0, 4], sizes = [8, 1], strides = [1, 1]} : vector<8x36xf32> to vector<8x1xf32>
    %772 = vector.extract_strided_slice %770 {offsets = [0, 0], sizes = [1, 256], strides = [1, 1]} : vector<4x256xf32> to vector<1x256xf32>
    %773 = vector.broadcast %771 : vector<8x1xf32> to vector<8x256xf32>
    %774 = vector.broadcast %772 : vector<1x256xf32> to vector<8x256xf32>
    %775 = arith.mulf %773, %774 : vector<8x256xf32>
    %776 = arith.addf %766, %775 : vector<8x256xf32>
    %777 = vector.extract_strided_slice %1 {offsets = [0, 5], sizes = [8, 1], strides = [1, 1]} : vector<8x36xf32> to vector<8x1xf32>
    %778 = vector.extract_strided_slice %770 {offsets = [1, 0], sizes = [1, 256], strides = [1, 1]} : vector<4x256xf32> to vector<1x256xf32>
    %779 = vector.broadcast %777 : vector<8x1xf32> to vector<8x256xf32>
    %780 = vector.broadcast %778 : vector<1x256xf32> to vector<8x256xf32>
    %781 = arith.mulf %779, %780 : vector<8x256xf32>
    %782 = arith.addf %776, %781 : vector<8x256xf32>
    %783 = vector.extract_strided_slice %1 {offsets = [0, 6], sizes = [8, 1], strides = [1, 1]} : vector<8x36xf32> to vector<8x1xf32>
    %784 = vector.extract_strided_slice %770 {offsets = [2, 0], sizes = [1, 256], strides = [1, 1]} : vector<4x256xf32> to vector<1x256xf32>
    %785 = vector.broadcast %783 : vector<8x1xf32> to vector<8x256xf32>
    %786 = vector.broadcast %784 : vector<1x256xf32> to vector<8x256xf32>
    %787 = arith.mulf %785, %786 : vector<8x256xf32>
    %788 = arith.addf %782, %787 : vector<8x256xf32>
    %789 = vector.extract_strided_slice %1 {offsets = [0, 7], sizes = [8, 1], strides = [1, 1]} : vector<8x36xf32> to vector<8x1xf32>
    %790 = vector.extract_strided_slice %770 {offsets = [3, 0], sizes = [1, 256], strides = [1, 1]} : vector<4x256xf32> to vector<1x256xf32>
    %791 = vector.broadcast %789 : vector<8x1xf32> to vector<8x256xf32>
    %792 = vector.broadcast %790 : vector<1x256xf32> to vector<8x256xf32>
    %793 = arith.mulf %791, %792 : vector<8x256xf32>
    %794 = arith.addf %788, %793 : vector<8x256xf32>
    %c15_i32_28 = arith.constant 15 : i32
    %795 = tpu.dynamic_rotate %737 by %c15_i32_28 dim 1 : vector<4x256xf32>, i32 -> vector<4x256xf32>
    %796 = vector.extract_strided_slice %0 {offsets = [2, 0], sizes = [1, 256], strides = [1, 1]} : vector<9x256xf32> to vector<1x256xf32>
    %797 = vector.broadcast %796 : vector<1x256xf32> to vector<4x256xf32>
    %798 = arith.mulf %795, %797 : vector<4x256xf32>
    %799 = vector.extract_strided_slice %1 {offsets = [0, 8], sizes = [8, 1], strides = [1, 1]} : vector<8x36xf32> to vector<8x1xf32>
    %800 = vector.extract_strided_slice %798 {offsets = [0, 0], sizes = [1, 256], strides = [1, 1]} : vector<4x256xf32> to vector<1x256xf32>
    %801 = vector.broadcast %799 : vector<8x1xf32> to vector<8x256xf32>
    %802 = vector.broadcast %800 : vector<1x256xf32> to vector<8x256xf32>
    %803 = arith.mulf %801, %802 : vector<8x256xf32>
    %804 = arith.addf %794, %803 : vector<8x256xf32>
    %805 = vector.extract_strided_slice %1 {offsets = [0, 9], sizes = [8, 1], strides = [1, 1]} : vector<8x36xf32> to vector<8x1xf32>
    %806 = vector.extract_strided_slice %798 {offsets = [1, 0], sizes = [1, 256], strides = [1, 1]} : vector<4x256xf32> to vector<1x256xf32>
    %807 = vector.broadcast %805 : vector<8x1xf32> to vector<8x256xf32>
    %808 = vector.broadcast %806 : vector<1x256xf32> to vector<8x256xf32>
    %809 = arith.mulf %807, %808 : vector<8x256xf32>
    %810 = arith.addf %804, %809 : vector<8x256xf32>
    %811 = vector.extract_strided_slice %1 {offsets = [0, 10], sizes = [8, 1], strides = [1, 1]} : vector<8x36xf32> to vector<8x1xf32>
    %812 = vector.extract_strided_slice %798 {offsets = [2, 0], sizes = [1, 256], strides = [1, 1]} : vector<4x256xf32> to vector<1x256xf32>
    %813 = vector.broadcast %811 : vector<8x1xf32> to vector<8x256xf32>
    %814 = vector.broadcast %812 : vector<1x256xf32> to vector<8x256xf32>
    %815 = arith.mulf %813, %814 : vector<8x256xf32>
    %816 = arith.addf %810, %815 : vector<8x256xf32>
    %817 = vector.extract_strided_slice %1 {offsets = [0, 11], sizes = [8, 1], strides = [1, 1]} : vector<8x36xf32> to vector<8x1xf32>
    %818 = vector.extract_strided_slice %798 {offsets = [3, 0], sizes = [1, 256], strides = [1, 1]} : vector<4x256xf32> to vector<1x256xf32>
    %819 = vector.broadcast %817 : vector<8x1xf32> to vector<8x256xf32>
    %820 = vector.broadcast %818 : vector<1x256xf32> to vector<8x256xf32>
    %821 = arith.mulf %819, %820 : vector<8x256xf32>
    %822 = arith.addf %816, %821 : vector<8x256xf32>
    %c1_i32_29 = arith.constant 1 : i32
    %823 = tpu.dynamic_rotate %737 by %c1_i32_29 dim 1 : vector<4x256xf32>, i32 -> vector<4x256xf32>
    %824 = vector.extract_strided_slice %0 {offsets = [3, 0], sizes = [1, 256], strides = [1, 1]} : vector<9x256xf32> to vector<1x256xf32>
    %825 = vector.broadcast %824 : vector<1x256xf32> to vector<4x256xf32>
    %826 = arith.mulf %823, %825 : vector<4x256xf32>
    %827 = vector.extract_strided_slice %1 {offsets = [0, 12], sizes = [8, 1], strides = [1, 1]} : vector<8x36xf32> to vector<8x1xf32>
    %828 = vector.extract_strided_slice %826 {offsets = [0, 0], sizes = [1, 256], strides = [1, 1]} : vector<4x256xf32> to vector<1x256xf32>
    %829 = vector.broadcast %827 : vector<8x1xf32> to vector<8x256xf32>
    %830 = vector.broadcast %828 : vector<1x256xf32> to vector<8x256xf32>
    %831 = arith.mulf %829, %830 : vector<8x256xf32>
    %832 = arith.addf %822, %831 : vector<8x256xf32>
    %833 = vector.extract_strided_slice %1 {offsets = [0, 13], sizes = [8, 1], strides = [1, 1]} : vector<8x36xf32> to vector<8x1xf32>
    %834 = vector.extract_strided_slice %826 {offsets = [1, 0], sizes = [1, 256], strides = [1, 1]} : vector<4x256xf32> to vector<1x256xf32>
    %835 = vector.broadcast %833 : vector<8x1xf32> to vector<8x256xf32>
    %836 = vector.broadcast %834 : vector<1x256xf32> to vector<8x256xf32>
    %837 = arith.mulf %835, %836 : vector<8x256xf32>
    %838 = arith.addf %832, %837 : vector<8x256xf32>
    %839 = vector.extract_strided_slice %1 {offsets = [0, 14], sizes = [8, 1], strides = [1, 1]} : vector<8x36xf32> to vector<8x1xf32>
    %840 = vector.extract_strided_slice %826 {offsets = [2, 0], sizes = [1, 256], strides = [1, 1]} : vector<4x256xf32> to vector<1x256xf32>
    %841 = vector.broadcast %839 : vector<8x1xf32> to vector<8x256xf32>
    %842 = vector.broadcast %840 : vector<1x256xf32> to vector<8x256xf32>
    %843 = arith.mulf %841, %842 : vector<8x256xf32>
    %844 = arith.addf %838, %843 : vector<8x256xf32>
    %845 = vector.extract_strided_slice %1 {offsets = [0, 15], sizes = [8, 1], strides = [1, 1]} : vector<8x36xf32> to vector<8x1xf32>
    %846 = vector.extract_strided_slice %826 {offsets = [3, 0], sizes = [1, 256], strides = [1, 1]} : vector<4x256xf32> to vector<1x256xf32>
    %847 = vector.broadcast %845 : vector<8x1xf32> to vector<8x256xf32>
    %848 = vector.broadcast %846 : vector<1x256xf32> to vector<8x256xf32>
    %849 = arith.mulf %847, %848 : vector<8x256xf32>
    %850 = arith.addf %844, %849 : vector<8x256xf32>
    %851 = vector.extract_strided_slice %1 {offsets = [0, 16], sizes = [8, 1], strides = [1, 1]} : vector<8x36xf32> to vector<8x1xf32>
    %852 = vector.extract_strided_slice %737 {offsets = [0, 0], sizes = [1, 256], strides = [1, 1]} : vector<4x256xf32> to vector<1x256xf32>
    %853 = vector.broadcast %851 : vector<8x1xf32> to vector<8x256xf32>
    %854 = vector.broadcast %852 : vector<1x256xf32> to vector<8x256xf32>
    %855 = arith.mulf %853, %854 : vector<8x256xf32>
    %856 = arith.addf %850, %855 : vector<8x256xf32>
    %857 = vector.extract_strided_slice %1 {offsets = [0, 17], sizes = [8, 1], strides = [1, 1]} : vector<8x36xf32> to vector<8x1xf32>
    %858 = vector.extract_strided_slice %737 {offsets = [1, 0], sizes = [1, 256], strides = [1, 1]} : vector<4x256xf32> to vector<1x256xf32>
    %859 = vector.broadcast %857 : vector<8x1xf32> to vector<8x256xf32>
    %860 = vector.broadcast %858 : vector<1x256xf32> to vector<8x256xf32>
    %861 = arith.mulf %859, %860 : vector<8x256xf32>
    %862 = arith.addf %856, %861 : vector<8x256xf32>
    %863 = vector.extract_strided_slice %1 {offsets = [0, 18], sizes = [8, 1], strides = [1, 1]} : vector<8x36xf32> to vector<8x1xf32>
    %864 = vector.extract_strided_slice %737 {offsets = [2, 0], sizes = [1, 256], strides = [1, 1]} : vector<4x256xf32> to vector<1x256xf32>
    %865 = vector.broadcast %863 : vector<8x1xf32> to vector<8x256xf32>
    %866 = vector.broadcast %864 : vector<1x256xf32> to vector<8x256xf32>
    %867 = arith.mulf %865, %866 : vector<8x256xf32>
    %868 = arith.addf %862, %867 : vector<8x256xf32>
    %869 = vector.extract_strided_slice %1 {offsets = [0, 19], sizes = [8, 1], strides = [1, 1]} : vector<8x36xf32> to vector<8x1xf32>
    %870 = vector.extract_strided_slice %737 {offsets = [3, 0], sizes = [1, 256], strides = [1, 1]} : vector<4x256xf32> to vector<1x256xf32>
    %871 = vector.broadcast %869 : vector<8x1xf32> to vector<8x256xf32>
    %872 = vector.broadcast %870 : vector<1x256xf32> to vector<8x256xf32>
    %873 = arith.mulf %871, %872 : vector<8x256xf32>
    %874 = arith.addf %868, %873 : vector<8x256xf32>
    %c255_i32_30 = arith.constant 255 : i32
    %875 = tpu.dynamic_rotate %737 by %c255_i32_30 dim 1 : vector<4x256xf32>, i32 -> vector<4x256xf32>
    %876 = vector.extract_strided_slice %0 {offsets = [5, 0], sizes = [1, 256], strides = [1, 1]} : vector<9x256xf32> to vector<1x256xf32>
    %877 = vector.broadcast %876 : vector<1x256xf32> to vector<4x256xf32>
    %878 = arith.mulf %875, %877 : vector<4x256xf32>
    %879 = vector.extract_strided_slice %1 {offsets = [0, 20], sizes = [8, 1], strides = [1, 1]} : vector<8x36xf32> to vector<8x1xf32>
    %880 = vector.extract_strided_slice %878 {offsets = [0, 0], sizes = [1, 256], strides = [1, 1]} : vector<4x256xf32> to vector<1x256xf32>
    %881 = vector.broadcast %879 : vector<8x1xf32> to vector<8x256xf32>
    %882 = vector.broadcast %880 : vector<1x256xf32> to vector<8x256xf32>
    %883 = arith.mulf %881, %882 : vector<8x256xf32>
    %884 = arith.addf %874, %883 : vector<8x256xf32>
    %885 = vector.extract_strided_slice %1 {offsets = [0, 21], sizes = [8, 1], strides = [1, 1]} : vector<8x36xf32> to vector<8x1xf32>
    %886 = vector.extract_strided_slice %878 {offsets = [1, 0], sizes = [1, 256], strides = [1, 1]} : vector<4x256xf32> to vector<1x256xf32>
    %887 = vector.broadcast %885 : vector<8x1xf32> to vector<8x256xf32>
    %888 = vector.broadcast %886 : vector<1x256xf32> to vector<8x256xf32>
    %889 = arith.mulf %887, %888 : vector<8x256xf32>
    %890 = arith.addf %884, %889 : vector<8x256xf32>
    %891 = vector.extract_strided_slice %1 {offsets = [0, 22], sizes = [8, 1], strides = [1, 1]} : vector<8x36xf32> to vector<8x1xf32>
    %892 = vector.extract_strided_slice %878 {offsets = [2, 0], sizes = [1, 256], strides = [1, 1]} : vector<4x256xf32> to vector<1x256xf32>
    %893 = vector.broadcast %891 : vector<8x1xf32> to vector<8x256xf32>
    %894 = vector.broadcast %892 : vector<1x256xf32> to vector<8x256xf32>
    %895 = arith.mulf %893, %894 : vector<8x256xf32>
    %896 = arith.addf %890, %895 : vector<8x256xf32>
    %897 = vector.extract_strided_slice %1 {offsets = [0, 23], sizes = [8, 1], strides = [1, 1]} : vector<8x36xf32> to vector<8x1xf32>
    %898 = vector.extract_strided_slice %878 {offsets = [3, 0], sizes = [1, 256], strides = [1, 1]} : vector<4x256xf32> to vector<1x256xf32>
    %899 = vector.broadcast %897 : vector<8x1xf32> to vector<8x256xf32>
    %900 = vector.broadcast %898 : vector<1x256xf32> to vector<8x256xf32>
    %901 = arith.mulf %899, %900 : vector<8x256xf32>
    %902 = arith.addf %896, %901 : vector<8x256xf32>
    %c241_i32_31 = arith.constant 241 : i32
    %903 = tpu.dynamic_rotate %737 by %c241_i32_31 dim 1 : vector<4x256xf32>, i32 -> vector<4x256xf32>
    %904 = vector.extract_strided_slice %0 {offsets = [6, 0], sizes = [1, 256], strides = [1, 1]} : vector<9x256xf32> to vector<1x256xf32>
    %905 = vector.broadcast %904 : vector<1x256xf32> to vector<4x256xf32>
    %906 = arith.mulf %903, %905 : vector<4x256xf32>
    %907 = vector.extract_strided_slice %1 {offsets = [0, 24], sizes = [8, 1], strides = [1, 1]} : vector<8x36xf32> to vector<8x1xf32>
    %908 = vector.extract_strided_slice %906 {offsets = [0, 0], sizes = [1, 256], strides = [1, 1]} : vector<4x256xf32> to vector<1x256xf32>
    %909 = vector.broadcast %907 : vector<8x1xf32> to vector<8x256xf32>
    %910 = vector.broadcast %908 : vector<1x256xf32> to vector<8x256xf32>
    %911 = arith.mulf %909, %910 : vector<8x256xf32>
    %912 = arith.addf %902, %911 : vector<8x256xf32>
    %913 = vector.extract_strided_slice %1 {offsets = [0, 25], sizes = [8, 1], strides = [1, 1]} : vector<8x36xf32> to vector<8x1xf32>
    %914 = vector.extract_strided_slice %906 {offsets = [1, 0], sizes = [1, 256], strides = [1, 1]} : vector<4x256xf32> to vector<1x256xf32>
    %915 = vector.broadcast %913 : vector<8x1xf32> to vector<8x256xf32>
    %916 = vector.broadcast %914 : vector<1x256xf32> to vector<8x256xf32>
    %917 = arith.mulf %915, %916 : vector<8x256xf32>
    %918 = arith.addf %912, %917 : vector<8x256xf32>
    %919 = vector.extract_strided_slice %1 {offsets = [0, 26], sizes = [8, 1], strides = [1, 1]} : vector<8x36xf32> to vector<8x1xf32>
    %920 = vector.extract_strided_slice %906 {offsets = [2, 0], sizes = [1, 256], strides = [1, 1]} : vector<4x256xf32> to vector<1x256xf32>
    %921 = vector.broadcast %919 : vector<8x1xf32> to vector<8x256xf32>
    %922 = vector.broadcast %920 : vector<1x256xf32> to vector<8x256xf32>
    %923 = arith.mulf %921, %922 : vector<8x256xf32>
    %924 = arith.addf %918, %923 : vector<8x256xf32>
    %925 = vector.extract_strided_slice %1 {offsets = [0, 27], sizes = [8, 1], strides = [1, 1]} : vector<8x36xf32> to vector<8x1xf32>
    %926 = vector.extract_strided_slice %906 {offsets = [3, 0], sizes = [1, 256], strides = [1, 1]} : vector<4x256xf32> to vector<1x256xf32>
    %927 = vector.broadcast %925 : vector<8x1xf32> to vector<8x256xf32>
    %928 = vector.broadcast %926 : vector<1x256xf32> to vector<8x256xf32>
    %929 = arith.mulf %927, %928 : vector<8x256xf32>
    %930 = arith.addf %924, %929 : vector<8x256xf32>
    %c240_i32_32 = arith.constant 240 : i32
    %931 = tpu.dynamic_rotate %737 by %c240_i32_32 dim 1 : vector<4x256xf32>, i32 -> vector<4x256xf32>
    %932 = vector.extract_strided_slice %0 {offsets = [7, 0], sizes = [1, 256], strides = [1, 1]} : vector<9x256xf32> to vector<1x256xf32>
    %933 = vector.broadcast %932 : vector<1x256xf32> to vector<4x256xf32>
    %934 = arith.mulf %931, %933 : vector<4x256xf32>
    %935 = vector.extract_strided_slice %1 {offsets = [0, 28], sizes = [8, 1], strides = [1, 1]} : vector<8x36xf32> to vector<8x1xf32>
    %936 = vector.extract_strided_slice %934 {offsets = [0, 0], sizes = [1, 256], strides = [1, 1]} : vector<4x256xf32> to vector<1x256xf32>
    %937 = vector.broadcast %935 : vector<8x1xf32> to vector<8x256xf32>
    %938 = vector.broadcast %936 : vector<1x256xf32> to vector<8x256xf32>
    %939 = arith.mulf %937, %938 : vector<8x256xf32>
    %940 = arith.addf %930, %939 : vector<8x256xf32>
    %941 = vector.extract_strided_slice %1 {offsets = [0, 29], sizes = [8, 1], strides = [1, 1]} : vector<8x36xf32> to vector<8x1xf32>
    %942 = vector.extract_strided_slice %934 {offsets = [1, 0], sizes = [1, 256], strides = [1, 1]} : vector<4x256xf32> to vector<1x256xf32>
    %943 = vector.broadcast %941 : vector<8x1xf32> to vector<8x256xf32>
    %944 = vector.broadcast %942 : vector<1x256xf32> to vector<8x256xf32>
    %945 = arith.mulf %943, %944 : vector<8x256xf32>
    %946 = arith.addf %940, %945 : vector<8x256xf32>
    %947 = vector.extract_strided_slice %1 {offsets = [0, 30], sizes = [8, 1], strides = [1, 1]} : vector<8x36xf32> to vector<8x1xf32>
    %948 = vector.extract_strided_slice %934 {offsets = [2, 0], sizes = [1, 256], strides = [1, 1]} : vector<4x256xf32> to vector<1x256xf32>
    %949 = vector.broadcast %947 : vector<8x1xf32> to vector<8x256xf32>
    %950 = vector.broadcast %948 : vector<1x256xf32> to vector<8x256xf32>
    %951 = arith.mulf %949, %950 : vector<8x256xf32>
    %952 = arith.addf %946, %951 : vector<8x256xf32>
    %953 = vector.extract_strided_slice %1 {offsets = [0, 31], sizes = [8, 1], strides = [1, 1]} : vector<8x36xf32> to vector<8x1xf32>
    %954 = vector.extract_strided_slice %934 {offsets = [3, 0], sizes = [1, 256], strides = [1, 1]} : vector<4x256xf32> to vector<1x256xf32>
    %955 = vector.broadcast %953 : vector<8x1xf32> to vector<8x256xf32>
    %956 = vector.broadcast %954 : vector<1x256xf32> to vector<8x256xf32>
    %957 = arith.mulf %955, %956 : vector<8x256xf32>
    %958 = arith.addf %952, %957 : vector<8x256xf32>
    %c239_i32_33 = arith.constant 239 : i32
    %959 = tpu.dynamic_rotate %737 by %c239_i32_33 dim 1 : vector<4x256xf32>, i32 -> vector<4x256xf32>
    %960 = vector.extract_strided_slice %0 {offsets = [8, 0], sizes = [1, 256], strides = [1, 1]} : vector<9x256xf32> to vector<1x256xf32>
    %961 = vector.broadcast %960 : vector<1x256xf32> to vector<4x256xf32>
    %962 = arith.mulf %959, %961 : vector<4x256xf32>
    %963 = vector.extract_strided_slice %1 {offsets = [0, 32], sizes = [8, 1], strides = [1, 1]} : vector<8x36xf32> to vector<8x1xf32>
    %964 = vector.extract_strided_slice %962 {offsets = [0, 0], sizes = [1, 256], strides = [1, 1]} : vector<4x256xf32> to vector<1x256xf32>
    %965 = vector.broadcast %963 : vector<8x1xf32> to vector<8x256xf32>
    %966 = vector.broadcast %964 : vector<1x256xf32> to vector<8x256xf32>
    %967 = arith.mulf %965, %966 : vector<8x256xf32>
    %968 = arith.addf %958, %967 : vector<8x256xf32>
    %969 = vector.extract_strided_slice %1 {offsets = [0, 33], sizes = [8, 1], strides = [1, 1]} : vector<8x36xf32> to vector<8x1xf32>
    %970 = vector.extract_strided_slice %962 {offsets = [1, 0], sizes = [1, 256], strides = [1, 1]} : vector<4x256xf32> to vector<1x256xf32>
    %971 = vector.broadcast %969 : vector<8x1xf32> to vector<8x256xf32>
    %972 = vector.broadcast %970 : vector<1x256xf32> to vector<8x256xf32>
    %973 = arith.mulf %971, %972 : vector<8x256xf32>
    %974 = arith.addf %968, %973 : vector<8x256xf32>
    %975 = vector.extract_strided_slice %1 {offsets = [0, 34], sizes = [8, 1], strides = [1, 1]} : vector<8x36xf32> to vector<8x1xf32>
    %976 = vector.extract_strided_slice %962 {offsets = [2, 0], sizes = [1, 256], strides = [1, 1]} : vector<4x256xf32> to vector<1x256xf32>
    %977 = vector.broadcast %975 : vector<8x1xf32> to vector<8x256xf32>
    %978 = vector.broadcast %976 : vector<1x256xf32> to vector<8x256xf32>
    %979 = arith.mulf %977, %978 : vector<8x256xf32>
    %980 = arith.addf %974, %979 : vector<8x256xf32>
    %981 = vector.extract_strided_slice %1 {offsets = [0, 35], sizes = [8, 1], strides = [1, 1]} : vector<8x36xf32> to vector<8x1xf32>
    %982 = vector.extract_strided_slice %962 {offsets = [3, 0], sizes = [1, 256], strides = [1, 1]} : vector<4x256xf32> to vector<1x256xf32>
    %983 = vector.broadcast %981 : vector<8x1xf32> to vector<8x256xf32>
    %984 = vector.broadcast %982 : vector<1x256xf32> to vector<8x256xf32>
    %985 = arith.mulf %983, %984 : vector<8x256xf32>
    %986 = arith.addf %980, %985 : vector<8x256xf32>
    %987 = vector.broadcast %5 : vector<8x1xf32> to vector<8x256xf32>
    %988 = arith.addf %986, %987 : vector<8x256xf32>
    %cst_34 = arith.constant 0.000000e+00 : f32
    %989 = vector.broadcast %cst_34 : f32 to vector<8x256xf32>
    %990 = arith.maximumf %988, %989 : vector<8x256xf32>
    %cst_35 = arith.constant 0.000000e+00 : f32
    %991 = vector.broadcast %cst_35 : f32 to vector<8x256xf32>
    %c17_i32_36 = arith.constant 17 : i32
    %992 = tpu.dynamic_rotate %990 by %c17_i32_36 dim 1 : vector<8x256xf32>, i32 -> vector<8x256xf32>
    %993 = vector.extract_strided_slice %0 {offsets = [0, 0], sizes = [1, 256], strides = [1, 1]} : vector<9x256xf32> to vector<1x256xf32>
    %994 = vector.broadcast %993 : vector<1x256xf32> to vector<8x256xf32>
    %995 = arith.mulf %992, %994 : vector<8x256xf32>
    %996 = vector.extract_strided_slice %2 {offsets = [0, 0], sizes = [8, 1], strides = [1, 1]} : vector<8x72xf32> to vector<8x1xf32>
    %997 = vector.extract_strided_slice %995 {offsets = [0, 0], sizes = [1, 256], strides = [1, 1]} : vector<8x256xf32> to vector<1x256xf32>
    %998 = vector.broadcast %996 : vector<8x1xf32> to vector<8x256xf32>
    %999 = vector.broadcast %997 : vector<1x256xf32> to vector<8x256xf32>
    %1000 = arith.mulf %998, %999 : vector<8x256xf32>
    %1001 = arith.addf %991, %1000 : vector<8x256xf32>
    %1002 = vector.extract_strided_slice %2 {offsets = [0, 1], sizes = [8, 1], strides = [1, 1]} : vector<8x72xf32> to vector<8x1xf32>
    %1003 = vector.extract_strided_slice %995 {offsets = [1, 0], sizes = [1, 256], strides = [1, 1]} : vector<8x256xf32> to vector<1x256xf32>
    %1004 = vector.broadcast %1002 : vector<8x1xf32> to vector<8x256xf32>
    %1005 = vector.broadcast %1003 : vector<1x256xf32> to vector<8x256xf32>
    %1006 = arith.mulf %1004, %1005 : vector<8x256xf32>
    %1007 = arith.addf %1001, %1006 : vector<8x256xf32>
    %1008 = vector.extract_strided_slice %2 {offsets = [0, 2], sizes = [8, 1], strides = [1, 1]} : vector<8x72xf32> to vector<8x1xf32>
    %1009 = vector.extract_strided_slice %995 {offsets = [2, 0], sizes = [1, 256], strides = [1, 1]} : vector<8x256xf32> to vector<1x256xf32>
    %1010 = vector.broadcast %1008 : vector<8x1xf32> to vector<8x256xf32>
    %1011 = vector.broadcast %1009 : vector<1x256xf32> to vector<8x256xf32>
    %1012 = arith.mulf %1010, %1011 : vector<8x256xf32>
    %1013 = arith.addf %1007, %1012 : vector<8x256xf32>
    %1014 = vector.extract_strided_slice %2 {offsets = [0, 3], sizes = [8, 1], strides = [1, 1]} : vector<8x72xf32> to vector<8x1xf32>
    %1015 = vector.extract_strided_slice %995 {offsets = [3, 0], sizes = [1, 256], strides = [1, 1]} : vector<8x256xf32> to vector<1x256xf32>
    %1016 = vector.broadcast %1014 : vector<8x1xf32> to vector<8x256xf32>
    %1017 = vector.broadcast %1015 : vector<1x256xf32> to vector<8x256xf32>
    %1018 = arith.mulf %1016, %1017 : vector<8x256xf32>
    %1019 = arith.addf %1013, %1018 : vector<8x256xf32>
    %1020 = vector.extract_strided_slice %2 {offsets = [0, 4], sizes = [8, 1], strides = [1, 1]} : vector<8x72xf32> to vector<8x1xf32>
    %1021 = vector.extract_strided_slice %995 {offsets = [4, 0], sizes = [1, 256], strides = [1, 1]} : vector<8x256xf32> to vector<1x256xf32>
    %1022 = vector.broadcast %1020 : vector<8x1xf32> to vector<8x256xf32>
    %1023 = vector.broadcast %1021 : vector<1x256xf32> to vector<8x256xf32>
    %1024 = arith.mulf %1022, %1023 : vector<8x256xf32>
    %1025 = arith.addf %1019, %1024 : vector<8x256xf32>
    %1026 = vector.extract_strided_slice %2 {offsets = [0, 5], sizes = [8, 1], strides = [1, 1]} : vector<8x72xf32> to vector<8x1xf32>
    %1027 = vector.extract_strided_slice %995 {offsets = [5, 0], sizes = [1, 256], strides = [1, 1]} : vector<8x256xf32> to vector<1x256xf32>
    %1028 = vector.broadcast %1026 : vector<8x1xf32> to vector<8x256xf32>
    %1029 = vector.broadcast %1027 : vector<1x256xf32> to vector<8x256xf32>
    %1030 = arith.mulf %1028, %1029 : vector<8x256xf32>
    %1031 = arith.addf %1025, %1030 : vector<8x256xf32>
    %1032 = vector.extract_strided_slice %2 {offsets = [0, 6], sizes = [8, 1], strides = [1, 1]} : vector<8x72xf32> to vector<8x1xf32>
    %1033 = vector.extract_strided_slice %995 {offsets = [6, 0], sizes = [1, 256], strides = [1, 1]} : vector<8x256xf32> to vector<1x256xf32>
    %1034 = vector.broadcast %1032 : vector<8x1xf32> to vector<8x256xf32>
    %1035 = vector.broadcast %1033 : vector<1x256xf32> to vector<8x256xf32>
    %1036 = arith.mulf %1034, %1035 : vector<8x256xf32>
    %1037 = arith.addf %1031, %1036 : vector<8x256xf32>
    %1038 = vector.extract_strided_slice %2 {offsets = [0, 7], sizes = [8, 1], strides = [1, 1]} : vector<8x72xf32> to vector<8x1xf32>
    %1039 = vector.extract_strided_slice %995 {offsets = [7, 0], sizes = [1, 256], strides = [1, 1]} : vector<8x256xf32> to vector<1x256xf32>
    %1040 = vector.broadcast %1038 : vector<8x1xf32> to vector<8x256xf32>
    %1041 = vector.broadcast %1039 : vector<1x256xf32> to vector<8x256xf32>
    %1042 = arith.mulf %1040, %1041 : vector<8x256xf32>
    %1043 = arith.addf %1037, %1042 : vector<8x256xf32>
    %c16_i32_37 = arith.constant 16 : i32
    %1044 = tpu.dynamic_rotate %990 by %c16_i32_37 dim 1 : vector<8x256xf32>, i32 -> vector<8x256xf32>
    %1045 = vector.extract_strided_slice %0 {offsets = [1, 0], sizes = [1, 256], strides = [1, 1]} : vector<9x256xf32> to vector<1x256xf32>
    %1046 = vector.broadcast %1045 : vector<1x256xf32> to vector<8x256xf32>
    %1047 = arith.mulf %1044, %1046 : vector<8x256xf32>
    %1048 = vector.extract_strided_slice %2 {offsets = [0, 8], sizes = [8, 1], strides = [1, 1]} : vector<8x72xf32> to vector<8x1xf32>
    %1049 = vector.extract_strided_slice %1047 {offsets = [0, 0], sizes = [1, 256], strides = [1, 1]} : vector<8x256xf32> to vector<1x256xf32>
    %1050 = vector.broadcast %1048 : vector<8x1xf32> to vector<8x256xf32>
    %1051 = vector.broadcast %1049 : vector<1x256xf32> to vector<8x256xf32>
    %1052 = arith.mulf %1050, %1051 : vector<8x256xf32>
    %1053 = arith.addf %1043, %1052 : vector<8x256xf32>
    %1054 = vector.extract_strided_slice %2 {offsets = [0, 9], sizes = [8, 1], strides = [1, 1]} : vector<8x72xf32> to vector<8x1xf32>
    %1055 = vector.extract_strided_slice %1047 {offsets = [1, 0], sizes = [1, 256], strides = [1, 1]} : vector<8x256xf32> to vector<1x256xf32>
    %1056 = vector.broadcast %1054 : vector<8x1xf32> to vector<8x256xf32>
    %1057 = vector.broadcast %1055 : vector<1x256xf32> to vector<8x256xf32>
    %1058 = arith.mulf %1056, %1057 : vector<8x256xf32>
    %1059 = arith.addf %1053, %1058 : vector<8x256xf32>
    %1060 = vector.extract_strided_slice %2 {offsets = [0, 10], sizes = [8, 1], strides = [1, 1]} : vector<8x72xf32> to vector<8x1xf32>
    %1061 = vector.extract_strided_slice %1047 {offsets = [2, 0], sizes = [1, 256], strides = [1, 1]} : vector<8x256xf32> to vector<1x256xf32>
    %1062 = vector.broadcast %1060 : vector<8x1xf32> to vector<8x256xf32>
    %1063 = vector.broadcast %1061 : vector<1x256xf32> to vector<8x256xf32>
    %1064 = arith.mulf %1062, %1063 : vector<8x256xf32>
    %1065 = arith.addf %1059, %1064 : vector<8x256xf32>
    %1066 = vector.extract_strided_slice %2 {offsets = [0, 11], sizes = [8, 1], strides = [1, 1]} : vector<8x72xf32> to vector<8x1xf32>
    %1067 = vector.extract_strided_slice %1047 {offsets = [3, 0], sizes = [1, 256], strides = [1, 1]} : vector<8x256xf32> to vector<1x256xf32>
    %1068 = vector.broadcast %1066 : vector<8x1xf32> to vector<8x256xf32>
    %1069 = vector.broadcast %1067 : vector<1x256xf32> to vector<8x256xf32>
    %1070 = arith.mulf %1068, %1069 : vector<8x256xf32>
    %1071 = arith.addf %1065, %1070 : vector<8x256xf32>
    %1072 = vector.extract_strided_slice %2 {offsets = [0, 12], sizes = [8, 1], strides = [1, 1]} : vector<8x72xf32> to vector<8x1xf32>
    %1073 = vector.extract_strided_slice %1047 {offsets = [4, 0], sizes = [1, 256], strides = [1, 1]} : vector<8x256xf32> to vector<1x256xf32>
    %1074 = vector.broadcast %1072 : vector<8x1xf32> to vector<8x256xf32>
    %1075 = vector.broadcast %1073 : vector<1x256xf32> to vector<8x256xf32>
    %1076 = arith.mulf %1074, %1075 : vector<8x256xf32>
    %1077 = arith.addf %1071, %1076 : vector<8x256xf32>
    %1078 = vector.extract_strided_slice %2 {offsets = [0, 13], sizes = [8, 1], strides = [1, 1]} : vector<8x72xf32> to vector<8x1xf32>
    %1079 = vector.extract_strided_slice %1047 {offsets = [5, 0], sizes = [1, 256], strides = [1, 1]} : vector<8x256xf32> to vector<1x256xf32>
    %1080 = vector.broadcast %1078 : vector<8x1xf32> to vector<8x256xf32>
    %1081 = vector.broadcast %1079 : vector<1x256xf32> to vector<8x256xf32>
    %1082 = arith.mulf %1080, %1081 : vector<8x256xf32>
    %1083 = arith.addf %1077, %1082 : vector<8x256xf32>
    %1084 = vector.extract_strided_slice %2 {offsets = [0, 14], sizes = [8, 1], strides = [1, 1]} : vector<8x72xf32> to vector<8x1xf32>
    %1085 = vector.extract_strided_slice %1047 {offsets = [6, 0], sizes = [1, 256], strides = [1, 1]} : vector<8x256xf32> to vector<1x256xf32>
    %1086 = vector.broadcast %1084 : vector<8x1xf32> to vector<8x256xf32>
    %1087 = vector.broadcast %1085 : vector<1x256xf32> to vector<8x256xf32>
    %1088 = arith.mulf %1086, %1087 : vector<8x256xf32>
    %1089 = arith.addf %1083, %1088 : vector<8x256xf32>
    %1090 = vector.extract_strided_slice %2 {offsets = [0, 15], sizes = [8, 1], strides = [1, 1]} : vector<8x72xf32> to vector<8x1xf32>
    %1091 = vector.extract_strided_slice %1047 {offsets = [7, 0], sizes = [1, 256], strides = [1, 1]} : vector<8x256xf32> to vector<1x256xf32>
    %1092 = vector.broadcast %1090 : vector<8x1xf32> to vector<8x256xf32>
    %1093 = vector.broadcast %1091 : vector<1x256xf32> to vector<8x256xf32>
    %1094 = arith.mulf %1092, %1093 : vector<8x256xf32>
    %1095 = arith.addf %1089, %1094 : vector<8x256xf32>
    %c15_i32_38 = arith.constant 15 : i32
    %1096 = tpu.dynamic_rotate %990 by %c15_i32_38 dim 1 : vector<8x256xf32>, i32 -> vector<8x256xf32>
    %1097 = vector.extract_strided_slice %0 {offsets = [2, 0], sizes = [1, 256], strides = [1, 1]} : vector<9x256xf32> to vector<1x256xf32>
    %1098 = vector.broadcast %1097 : vector<1x256xf32> to vector<8x256xf32>
    %1099 = arith.mulf %1096, %1098 : vector<8x256xf32>
    %1100 = vector.extract_strided_slice %2 {offsets = [0, 16], sizes = [8, 1], strides = [1, 1]} : vector<8x72xf32> to vector<8x1xf32>
    %1101 = vector.extract_strided_slice %1099 {offsets = [0, 0], sizes = [1, 256], strides = [1, 1]} : vector<8x256xf32> to vector<1x256xf32>
    %1102 = vector.broadcast %1100 : vector<8x1xf32> to vector<8x256xf32>
    %1103 = vector.broadcast %1101 : vector<1x256xf32> to vector<8x256xf32>
    %1104 = arith.mulf %1102, %1103 : vector<8x256xf32>
    %1105 = arith.addf %1095, %1104 : vector<8x256xf32>
    %1106 = vector.extract_strided_slice %2 {offsets = [0, 17], sizes = [8, 1], strides = [1, 1]} : vector<8x72xf32> to vector<8x1xf32>
    %1107 = vector.extract_strided_slice %1099 {offsets = [1, 0], sizes = [1, 256], strides = [1, 1]} : vector<8x256xf32> to vector<1x256xf32>
    %1108 = vector.broadcast %1106 : vector<8x1xf32> to vector<8x256xf32>
    %1109 = vector.broadcast %1107 : vector<1x256xf32> to vector<8x256xf32>
    %1110 = arith.mulf %1108, %1109 : vector<8x256xf32>
    %1111 = arith.addf %1105, %1110 : vector<8x256xf32>
    %1112 = vector.extract_strided_slice %2 {offsets = [0, 18], sizes = [8, 1], strides = [1, 1]} : vector<8x72xf32> to vector<8x1xf32>
    %1113 = vector.extract_strided_slice %1099 {offsets = [2, 0], sizes = [1, 256], strides = [1, 1]} : vector<8x256xf32> to vector<1x256xf32>
    %1114 = vector.broadcast %1112 : vector<8x1xf32> to vector<8x256xf32>
    %1115 = vector.broadcast %1113 : vector<1x256xf32> to vector<8x256xf32>
    %1116 = arith.mulf %1114, %1115 : vector<8x256xf32>
    %1117 = arith.addf %1111, %1116 : vector<8x256xf32>
    %1118 = vector.extract_strided_slice %2 {offsets = [0, 19], sizes = [8, 1], strides = [1, 1]} : vector<8x72xf32> to vector<8x1xf32>
    %1119 = vector.extract_strided_slice %1099 {offsets = [3, 0], sizes = [1, 256], strides = [1, 1]} : vector<8x256xf32> to vector<1x256xf32>
    %1120 = vector.broadcast %1118 : vector<8x1xf32> to vector<8x256xf32>
    %1121 = vector.broadcast %1119 : vector<1x256xf32> to vector<8x256xf32>
    %1122 = arith.mulf %1120, %1121 : vector<8x256xf32>
    %1123 = arith.addf %1117, %1122 : vector<8x256xf32>
    %1124 = vector.extract_strided_slice %2 {offsets = [0, 20], sizes = [8, 1], strides = [1, 1]} : vector<8x72xf32> to vector<8x1xf32>
    %1125 = vector.extract_strided_slice %1099 {offsets = [4, 0], sizes = [1, 256], strides = [1, 1]} : vector<8x256xf32> to vector<1x256xf32>
    %1126 = vector.broadcast %1124 : vector<8x1xf32> to vector<8x256xf32>
    %1127 = vector.broadcast %1125 : vector<1x256xf32> to vector<8x256xf32>
    %1128 = arith.mulf %1126, %1127 : vector<8x256xf32>
    %1129 = arith.addf %1123, %1128 : vector<8x256xf32>
    %1130 = vector.extract_strided_slice %2 {offsets = [0, 21], sizes = [8, 1], strides = [1, 1]} : vector<8x72xf32> to vector<8x1xf32>
    %1131 = vector.extract_strided_slice %1099 {offsets = [5, 0], sizes = [1, 256], strides = [1, 1]} : vector<8x256xf32> to vector<1x256xf32>
    %1132 = vector.broadcast %1130 : vector<8x1xf32> to vector<8x256xf32>
    %1133 = vector.broadcast %1131 : vector<1x256xf32> to vector<8x256xf32>
    %1134 = arith.mulf %1132, %1133 : vector<8x256xf32>
    %1135 = arith.addf %1129, %1134 : vector<8x256xf32>
    %1136 = vector.extract_strided_slice %2 {offsets = [0, 22], sizes = [8, 1], strides = [1, 1]} : vector<8x72xf32> to vector<8x1xf32>
    %1137 = vector.extract_strided_slice %1099 {offsets = [6, 0], sizes = [1, 256], strides = [1, 1]} : vector<8x256xf32> to vector<1x256xf32>
    %1138 = vector.broadcast %1136 : vector<8x1xf32> to vector<8x256xf32>
    %1139 = vector.broadcast %1137 : vector<1x256xf32> to vector<8x256xf32>
    %1140 = arith.mulf %1138, %1139 : vector<8x256xf32>
    %1141 = arith.addf %1135, %1140 : vector<8x256xf32>
    %1142 = vector.extract_strided_slice %2 {offsets = [0, 23], sizes = [8, 1], strides = [1, 1]} : vector<8x72xf32> to vector<8x1xf32>
    %1143 = vector.extract_strided_slice %1099 {offsets = [7, 0], sizes = [1, 256], strides = [1, 1]} : vector<8x256xf32> to vector<1x256xf32>
    %1144 = vector.broadcast %1142 : vector<8x1xf32> to vector<8x256xf32>
    %1145 = vector.broadcast %1143 : vector<1x256xf32> to vector<8x256xf32>
    %1146 = arith.mulf %1144, %1145 : vector<8x256xf32>
    %1147 = arith.addf %1141, %1146 : vector<8x256xf32>
    %c1_i32_39 = arith.constant 1 : i32
    %1148 = tpu.dynamic_rotate %990 by %c1_i32_39 dim 1 : vector<8x256xf32>, i32 -> vector<8x256xf32>
    %1149 = vector.extract_strided_slice %0 {offsets = [3, 0], sizes = [1, 256], strides = [1, 1]} : vector<9x256xf32> to vector<1x256xf32>
    %1150 = vector.broadcast %1149 : vector<1x256xf32> to vector<8x256xf32>
    %1151 = arith.mulf %1148, %1150 : vector<8x256xf32>
    %1152 = vector.extract_strided_slice %2 {offsets = [0, 24], sizes = [8, 1], strides = [1, 1]} : vector<8x72xf32> to vector<8x1xf32>
    %1153 = vector.extract_strided_slice %1151 {offsets = [0, 0], sizes = [1, 256], strides = [1, 1]} : vector<8x256xf32> to vector<1x256xf32>
    %1154 = vector.broadcast %1152 : vector<8x1xf32> to vector<8x256xf32>
    %1155 = vector.broadcast %1153 : vector<1x256xf32> to vector<8x256xf32>
    %1156 = arith.mulf %1154, %1155 : vector<8x256xf32>
    %1157 = arith.addf %1147, %1156 : vector<8x256xf32>
    %1158 = vector.extract_strided_slice %2 {offsets = [0, 25], sizes = [8, 1], strides = [1, 1]} : vector<8x72xf32> to vector<8x1xf32>
    %1159 = vector.extract_strided_slice %1151 {offsets = [1, 0], sizes = [1, 256], strides = [1, 1]} : vector<8x256xf32> to vector<1x256xf32>
    %1160 = vector.broadcast %1158 : vector<8x1xf32> to vector<8x256xf32>
    %1161 = vector.broadcast %1159 : vector<1x256xf32> to vector<8x256xf32>
    %1162 = arith.mulf %1160, %1161 : vector<8x256xf32>
    %1163 = arith.addf %1157, %1162 : vector<8x256xf32>
    %1164 = vector.extract_strided_slice %2 {offsets = [0, 26], sizes = [8, 1], strides = [1, 1]} : vector<8x72xf32> to vector<8x1xf32>
    %1165 = vector.extract_strided_slice %1151 {offsets = [2, 0], sizes = [1, 256], strides = [1, 1]} : vector<8x256xf32> to vector<1x256xf32>
    %1166 = vector.broadcast %1164 : vector<8x1xf32> to vector<8x256xf32>
    %1167 = vector.broadcast %1165 : vector<1x256xf32> to vector<8x256xf32>
    %1168 = arith.mulf %1166, %1167 : vector<8x256xf32>
    %1169 = arith.addf %1163, %1168 : vector<8x256xf32>
    %1170 = vector.extract_strided_slice %2 {offsets = [0, 27], sizes = [8, 1], strides = [1, 1]} : vector<8x72xf32> to vector<8x1xf32>
    %1171 = vector.extract_strided_slice %1151 {offsets = [3, 0], sizes = [1, 256], strides = [1, 1]} : vector<8x256xf32> to vector<1x256xf32>
    %1172 = vector.broadcast %1170 : vector<8x1xf32> to vector<8x256xf32>
    %1173 = vector.broadcast %1171 : vector<1x256xf32> to vector<8x256xf32>
    %1174 = arith.mulf %1172, %1173 : vector<8x256xf32>
    %1175 = arith.addf %1169, %1174 : vector<8x256xf32>
    %1176 = vector.extract_strided_slice %2 {offsets = [0, 28], sizes = [8, 1], strides = [1, 1]} : vector<8x72xf32> to vector<8x1xf32>
    %1177 = vector.extract_strided_slice %1151 {offsets = [4, 0], sizes = [1, 256], strides = [1, 1]} : vector<8x256xf32> to vector<1x256xf32>
    %1178 = vector.broadcast %1176 : vector<8x1xf32> to vector<8x256xf32>
    %1179 = vector.broadcast %1177 : vector<1x256xf32> to vector<8x256xf32>
    %1180 = arith.mulf %1178, %1179 : vector<8x256xf32>
    %1181 = arith.addf %1175, %1180 : vector<8x256xf32>
    %1182 = vector.extract_strided_slice %2 {offsets = [0, 29], sizes = [8, 1], strides = [1, 1]} : vector<8x72xf32> to vector<8x1xf32>
    %1183 = vector.extract_strided_slice %1151 {offsets = [5, 0], sizes = [1, 256], strides = [1, 1]} : vector<8x256xf32> to vector<1x256xf32>
    %1184 = vector.broadcast %1182 : vector<8x1xf32> to vector<8x256xf32>
    %1185 = vector.broadcast %1183 : vector<1x256xf32> to vector<8x256xf32>
    %1186 = arith.mulf %1184, %1185 : vector<8x256xf32>
    %1187 = arith.addf %1181, %1186 : vector<8x256xf32>
    %1188 = vector.extract_strided_slice %2 {offsets = [0, 30], sizes = [8, 1], strides = [1, 1]} : vector<8x72xf32> to vector<8x1xf32>
    %1189 = vector.extract_strided_slice %1151 {offsets = [6, 0], sizes = [1, 256], strides = [1, 1]} : vector<8x256xf32> to vector<1x256xf32>
    %1190 = vector.broadcast %1188 : vector<8x1xf32> to vector<8x256xf32>
    %1191 = vector.broadcast %1189 : vector<1x256xf32> to vector<8x256xf32>
    %1192 = arith.mulf %1190, %1191 : vector<8x256xf32>
    %1193 = arith.addf %1187, %1192 : vector<8x256xf32>
    %1194 = vector.extract_strided_slice %2 {offsets = [0, 31], sizes = [8, 1], strides = [1, 1]} : vector<8x72xf32> to vector<8x1xf32>
    %1195 = vector.extract_strided_slice %1151 {offsets = [7, 0], sizes = [1, 256], strides = [1, 1]} : vector<8x256xf32> to vector<1x256xf32>
    %1196 = vector.broadcast %1194 : vector<8x1xf32> to vector<8x256xf32>
    %1197 = vector.broadcast %1195 : vector<1x256xf32> to vector<8x256xf32>
    %1198 = arith.mulf %1196, %1197 : vector<8x256xf32>
    %1199 = arith.addf %1193, %1198 : vector<8x256xf32>
    %1200 = vector.extract_strided_slice %2 {offsets = [0, 32], sizes = [8, 1], strides = [1, 1]} : vector<8x72xf32> to vector<8x1xf32>
    %1201 = vector.extract_strided_slice %990 {offsets = [0, 0], sizes = [1, 256], strides = [1, 1]} : vector<8x256xf32> to vector<1x256xf32>
    %1202 = vector.broadcast %1200 : vector<8x1xf32> to vector<8x256xf32>
    %1203 = vector.broadcast %1201 : vector<1x256xf32> to vector<8x256xf32>
    %1204 = arith.mulf %1202, %1203 : vector<8x256xf32>
    %1205 = arith.addf %1199, %1204 : vector<8x256xf32>
    %1206 = vector.extract_strided_slice %2 {offsets = [0, 33], sizes = [8, 1], strides = [1, 1]} : vector<8x72xf32> to vector<8x1xf32>
    %1207 = vector.extract_strided_slice %990 {offsets = [1, 0], sizes = [1, 256], strides = [1, 1]} : vector<8x256xf32> to vector<1x256xf32>
    %1208 = vector.broadcast %1206 : vector<8x1xf32> to vector<8x256xf32>
    %1209 = vector.broadcast %1207 : vector<1x256xf32> to vector<8x256xf32>
    %1210 = arith.mulf %1208, %1209 : vector<8x256xf32>
    %1211 = arith.addf %1205, %1210 : vector<8x256xf32>
    %1212 = vector.extract_strided_slice %2 {offsets = [0, 34], sizes = [8, 1], strides = [1, 1]} : vector<8x72xf32> to vector<8x1xf32>
    %1213 = vector.extract_strided_slice %990 {offsets = [2, 0], sizes = [1, 256], strides = [1, 1]} : vector<8x256xf32> to vector<1x256xf32>
    %1214 = vector.broadcast %1212 : vector<8x1xf32> to vector<8x256xf32>
    %1215 = vector.broadcast %1213 : vector<1x256xf32> to vector<8x256xf32>
    %1216 = arith.mulf %1214, %1215 : vector<8x256xf32>
    %1217 = arith.addf %1211, %1216 : vector<8x256xf32>
    %1218 = vector.extract_strided_slice %2 {offsets = [0, 35], sizes = [8, 1], strides = [1, 1]} : vector<8x72xf32> to vector<8x1xf32>
    %1219 = vector.extract_strided_slice %990 {offsets = [3, 0], sizes = [1, 256], strides = [1, 1]} : vector<8x256xf32> to vector<1x256xf32>
    %1220 = vector.broadcast %1218 : vector<8x1xf32> to vector<8x256xf32>
    %1221 = vector.broadcast %1219 : vector<1x256xf32> to vector<8x256xf32>
    %1222 = arith.mulf %1220, %1221 : vector<8x256xf32>
    %1223 = arith.addf %1217, %1222 : vector<8x256xf32>
    %1224 = vector.extract_strided_slice %2 {offsets = [0, 36], sizes = [8, 1], strides = [1, 1]} : vector<8x72xf32> to vector<8x1xf32>
    %1225 = vector.extract_strided_slice %990 {offsets = [4, 0], sizes = [1, 256], strides = [1, 1]} : vector<8x256xf32> to vector<1x256xf32>
    %1226 = vector.broadcast %1224 : vector<8x1xf32> to vector<8x256xf32>
    %1227 = vector.broadcast %1225 : vector<1x256xf32> to vector<8x256xf32>
    %1228 = arith.mulf %1226, %1227 : vector<8x256xf32>
    %1229 = arith.addf %1223, %1228 : vector<8x256xf32>
    %1230 = vector.extract_strided_slice %2 {offsets = [0, 37], sizes = [8, 1], strides = [1, 1]} : vector<8x72xf32> to vector<8x1xf32>
    %1231 = vector.extract_strided_slice %990 {offsets = [5, 0], sizes = [1, 256], strides = [1, 1]} : vector<8x256xf32> to vector<1x256xf32>
    %1232 = vector.broadcast %1230 : vector<8x1xf32> to vector<8x256xf32>
    %1233 = vector.broadcast %1231 : vector<1x256xf32> to vector<8x256xf32>
    %1234 = arith.mulf %1232, %1233 : vector<8x256xf32>
    %1235 = arith.addf %1229, %1234 : vector<8x256xf32>
    %1236 = vector.extract_strided_slice %2 {offsets = [0, 38], sizes = [8, 1], strides = [1, 1]} : vector<8x72xf32> to vector<8x1xf32>
    %1237 = vector.extract_strided_slice %990 {offsets = [6, 0], sizes = [1, 256], strides = [1, 1]} : vector<8x256xf32> to vector<1x256xf32>
    %1238 = vector.broadcast %1236 : vector<8x1xf32> to vector<8x256xf32>
    %1239 = vector.broadcast %1237 : vector<1x256xf32> to vector<8x256xf32>
    %1240 = arith.mulf %1238, %1239 : vector<8x256xf32>
    %1241 = arith.addf %1235, %1240 : vector<8x256xf32>
    %1242 = vector.extract_strided_slice %2 {offsets = [0, 39], sizes = [8, 1], strides = [1, 1]} : vector<8x72xf32> to vector<8x1xf32>
    %1243 = vector.extract_strided_slice %990 {offsets = [7, 0], sizes = [1, 256], strides = [1, 1]} : vector<8x256xf32> to vector<1x256xf32>
    %1244 = vector.broadcast %1242 : vector<8x1xf32> to vector<8x256xf32>
    %1245 = vector.broadcast %1243 : vector<1x256xf32> to vector<8x256xf32>
    %1246 = arith.mulf %1244, %1245 : vector<8x256xf32>
    %1247 = arith.addf %1241, %1246 : vector<8x256xf32>
    %c255_i32_40 = arith.constant 255 : i32
    %1248 = tpu.dynamic_rotate %990 by %c255_i32_40 dim 1 : vector<8x256xf32>, i32 -> vector<8x256xf32>
    %1249 = vector.extract_strided_slice %0 {offsets = [5, 0], sizes = [1, 256], strides = [1, 1]} : vector<9x256xf32> to vector<1x256xf32>
    %1250 = vector.broadcast %1249 : vector<1x256xf32> to vector<8x256xf32>
    %1251 = arith.mulf %1248, %1250 : vector<8x256xf32>
    %1252 = vector.extract_strided_slice %2 {offsets = [0, 40], sizes = [8, 1], strides = [1, 1]} : vector<8x72xf32> to vector<8x1xf32>
    %1253 = vector.extract_strided_slice %1251 {offsets = [0, 0], sizes = [1, 256], strides = [1, 1]} : vector<8x256xf32> to vector<1x256xf32>
    %1254 = vector.broadcast %1252 : vector<8x1xf32> to vector<8x256xf32>
    %1255 = vector.broadcast %1253 : vector<1x256xf32> to vector<8x256xf32>
    %1256 = arith.mulf %1254, %1255 : vector<8x256xf32>
    %1257 = arith.addf %1247, %1256 : vector<8x256xf32>
    %1258 = vector.extract_strided_slice %2 {offsets = [0, 41], sizes = [8, 1], strides = [1, 1]} : vector<8x72xf32> to vector<8x1xf32>
    %1259 = vector.extract_strided_slice %1251 {offsets = [1, 0], sizes = [1, 256], strides = [1, 1]} : vector<8x256xf32> to vector<1x256xf32>
    %1260 = vector.broadcast %1258 : vector<8x1xf32> to vector<8x256xf32>
    %1261 = vector.broadcast %1259 : vector<1x256xf32> to vector<8x256xf32>
    %1262 = arith.mulf %1260, %1261 : vector<8x256xf32>
    %1263 = arith.addf %1257, %1262 : vector<8x256xf32>
    %1264 = vector.extract_strided_slice %2 {offsets = [0, 42], sizes = [8, 1], strides = [1, 1]} : vector<8x72xf32> to vector<8x1xf32>
    %1265 = vector.extract_strided_slice %1251 {offsets = [2, 0], sizes = [1, 256], strides = [1, 1]} : vector<8x256xf32> to vector<1x256xf32>
    %1266 = vector.broadcast %1264 : vector<8x1xf32> to vector<8x256xf32>
    %1267 = vector.broadcast %1265 : vector<1x256xf32> to vector<8x256xf32>
    %1268 = arith.mulf %1266, %1267 : vector<8x256xf32>
    %1269 = arith.addf %1263, %1268 : vector<8x256xf32>
    %1270 = vector.extract_strided_slice %2 {offsets = [0, 43], sizes = [8, 1], strides = [1, 1]} : vector<8x72xf32> to vector<8x1xf32>
    %1271 = vector.extract_strided_slice %1251 {offsets = [3, 0], sizes = [1, 256], strides = [1, 1]} : vector<8x256xf32> to vector<1x256xf32>
    %1272 = vector.broadcast %1270 : vector<8x1xf32> to vector<8x256xf32>
    %1273 = vector.broadcast %1271 : vector<1x256xf32> to vector<8x256xf32>
    %1274 = arith.mulf %1272, %1273 : vector<8x256xf32>
    %1275 = arith.addf %1269, %1274 : vector<8x256xf32>
    %1276 = vector.extract_strided_slice %2 {offsets = [0, 44], sizes = [8, 1], strides = [1, 1]} : vector<8x72xf32> to vector<8x1xf32>
    %1277 = vector.extract_strided_slice %1251 {offsets = [4, 0], sizes = [1, 256], strides = [1, 1]} : vector<8x256xf32> to vector<1x256xf32>
    %1278 = vector.broadcast %1276 : vector<8x1xf32> to vector<8x256xf32>
    %1279 = vector.broadcast %1277 : vector<1x256xf32> to vector<8x256xf32>
    %1280 = arith.mulf %1278, %1279 : vector<8x256xf32>
    %1281 = arith.addf %1275, %1280 : vector<8x256xf32>
    %1282 = vector.extract_strided_slice %2 {offsets = [0, 45], sizes = [8, 1], strides = [1, 1]} : vector<8x72xf32> to vector<8x1xf32>
    %1283 = vector.extract_strided_slice %1251 {offsets = [5, 0], sizes = [1, 256], strides = [1, 1]} : vector<8x256xf32> to vector<1x256xf32>
    %1284 = vector.broadcast %1282 : vector<8x1xf32> to vector<8x256xf32>
    %1285 = vector.broadcast %1283 : vector<1x256xf32> to vector<8x256xf32>
    %1286 = arith.mulf %1284, %1285 : vector<8x256xf32>
    %1287 = arith.addf %1281, %1286 : vector<8x256xf32>
    %1288 = vector.extract_strided_slice %2 {offsets = [0, 46], sizes = [8, 1], strides = [1, 1]} : vector<8x72xf32> to vector<8x1xf32>
    %1289 = vector.extract_strided_slice %1251 {offsets = [6, 0], sizes = [1, 256], strides = [1, 1]} : vector<8x256xf32> to vector<1x256xf32>
    %1290 = vector.broadcast %1288 : vector<8x1xf32> to vector<8x256xf32>
    %1291 = vector.broadcast %1289 : vector<1x256xf32> to vector<8x256xf32>
    %1292 = arith.mulf %1290, %1291 : vector<8x256xf32>
    %1293 = arith.addf %1287, %1292 : vector<8x256xf32>
    %1294 = vector.extract_strided_slice %2 {offsets = [0, 47], sizes = [8, 1], strides = [1, 1]} : vector<8x72xf32> to vector<8x1xf32>
    %1295 = vector.extract_strided_slice %1251 {offsets = [7, 0], sizes = [1, 256], strides = [1, 1]} : vector<8x256xf32> to vector<1x256xf32>
    %1296 = vector.broadcast %1294 : vector<8x1xf32> to vector<8x256xf32>
    %1297 = vector.broadcast %1295 : vector<1x256xf32> to vector<8x256xf32>
    %1298 = arith.mulf %1296, %1297 : vector<8x256xf32>
    %1299 = arith.addf %1293, %1298 : vector<8x256xf32>
    %c241_i32_41 = arith.constant 241 : i32
    %1300 = tpu.dynamic_rotate %990 by %c241_i32_41 dim 1 : vector<8x256xf32>, i32 -> vector<8x256xf32>
    %1301 = vector.extract_strided_slice %0 {offsets = [6, 0], sizes = [1, 256], strides = [1, 1]} : vector<9x256xf32> to vector<1x256xf32>
    %1302 = vector.broadcast %1301 : vector<1x256xf32> to vector<8x256xf32>
    %1303 = arith.mulf %1300, %1302 : vector<8x256xf32>
    %1304 = vector.extract_strided_slice %2 {offsets = [0, 48], sizes = [8, 1], strides = [1, 1]} : vector<8x72xf32> to vector<8x1xf32>
    %1305 = vector.extract_strided_slice %1303 {offsets = [0, 0], sizes = [1, 256], strides = [1, 1]} : vector<8x256xf32> to vector<1x256xf32>
    %1306 = vector.broadcast %1304 : vector<8x1xf32> to vector<8x256xf32>
    %1307 = vector.broadcast %1305 : vector<1x256xf32> to vector<8x256xf32>
    %1308 = arith.mulf %1306, %1307 : vector<8x256xf32>
    %1309 = arith.addf %1299, %1308 : vector<8x256xf32>
    %1310 = vector.extract_strided_slice %2 {offsets = [0, 49], sizes = [8, 1], strides = [1, 1]} : vector<8x72xf32> to vector<8x1xf32>
    %1311 = vector.extract_strided_slice %1303 {offsets = [1, 0], sizes = [1, 256], strides = [1, 1]} : vector<8x256xf32> to vector<1x256xf32>
    %1312 = vector.broadcast %1310 : vector<8x1xf32> to vector<8x256xf32>
    %1313 = vector.broadcast %1311 : vector<1x256xf32> to vector<8x256xf32>
    %1314 = arith.mulf %1312, %1313 : vector<8x256xf32>
    %1315 = arith.addf %1309, %1314 : vector<8x256xf32>
    %1316 = vector.extract_strided_slice %2 {offsets = [0, 50], sizes = [8, 1], strides = [1, 1]} : vector<8x72xf32> to vector<8x1xf32>
    %1317 = vector.extract_strided_slice %1303 {offsets = [2, 0], sizes = [1, 256], strides = [1, 1]} : vector<8x256xf32> to vector<1x256xf32>
    %1318 = vector.broadcast %1316 : vector<8x1xf32> to vector<8x256xf32>
    %1319 = vector.broadcast %1317 : vector<1x256xf32> to vector<8x256xf32>
    %1320 = arith.mulf %1318, %1319 : vector<8x256xf32>
    %1321 = arith.addf %1315, %1320 : vector<8x256xf32>
    %1322 = vector.extract_strided_slice %2 {offsets = [0, 51], sizes = [8, 1], strides = [1, 1]} : vector<8x72xf32> to vector<8x1xf32>
    %1323 = vector.extract_strided_slice %1303 {offsets = [3, 0], sizes = [1, 256], strides = [1, 1]} : vector<8x256xf32> to vector<1x256xf32>
    %1324 = vector.broadcast %1322 : vector<8x1xf32> to vector<8x256xf32>
    %1325 = vector.broadcast %1323 : vector<1x256xf32> to vector<8x256xf32>
    %1326 = arith.mulf %1324, %1325 : vector<8x256xf32>
    %1327 = arith.addf %1321, %1326 : vector<8x256xf32>
    %1328 = vector.extract_strided_slice %2 {offsets = [0, 52], sizes = [8, 1], strides = [1, 1]} : vector<8x72xf32> to vector<8x1xf32>
    %1329 = vector.extract_strided_slice %1303 {offsets = [4, 0], sizes = [1, 256], strides = [1, 1]} : vector<8x256xf32> to vector<1x256xf32>
    %1330 = vector.broadcast %1328 : vector<8x1xf32> to vector<8x256xf32>
    %1331 = vector.broadcast %1329 : vector<1x256xf32> to vector<8x256xf32>
    %1332 = arith.mulf %1330, %1331 : vector<8x256xf32>
    %1333 = arith.addf %1327, %1332 : vector<8x256xf32>
    %1334 = vector.extract_strided_slice %2 {offsets = [0, 53], sizes = [8, 1], strides = [1, 1]} : vector<8x72xf32> to vector<8x1xf32>
    %1335 = vector.extract_strided_slice %1303 {offsets = [5, 0], sizes = [1, 256], strides = [1, 1]} : vector<8x256xf32> to vector<1x256xf32>
    %1336 = vector.broadcast %1334 : vector<8x1xf32> to vector<8x256xf32>
    %1337 = vector.broadcast %1335 : vector<1x256xf32> to vector<8x256xf32>
    %1338 = arith.mulf %1336, %1337 : vector<8x256xf32>
    %1339 = arith.addf %1333, %1338 : vector<8x256xf32>
    %1340 = vector.extract_strided_slice %2 {offsets = [0, 54], sizes = [8, 1], strides = [1, 1]} : vector<8x72xf32> to vector<8x1xf32>
    %1341 = vector.extract_strided_slice %1303 {offsets = [6, 0], sizes = [1, 256], strides = [1, 1]} : vector<8x256xf32> to vector<1x256xf32>
    %1342 = vector.broadcast %1340 : vector<8x1xf32> to vector<8x256xf32>
    %1343 = vector.broadcast %1341 : vector<1x256xf32> to vector<8x256xf32>
    %1344 = arith.mulf %1342, %1343 : vector<8x256xf32>
    %1345 = arith.addf %1339, %1344 : vector<8x256xf32>
    %1346 = vector.extract_strided_slice %2 {offsets = [0, 55], sizes = [8, 1], strides = [1, 1]} : vector<8x72xf32> to vector<8x1xf32>
    %1347 = vector.extract_strided_slice %1303 {offsets = [7, 0], sizes = [1, 256], strides = [1, 1]} : vector<8x256xf32> to vector<1x256xf32>
    %1348 = vector.broadcast %1346 : vector<8x1xf32> to vector<8x256xf32>
    %1349 = vector.broadcast %1347 : vector<1x256xf32> to vector<8x256xf32>
    %1350 = arith.mulf %1348, %1349 : vector<8x256xf32>
    %1351 = arith.addf %1345, %1350 : vector<8x256xf32>
    %c240_i32_42 = arith.constant 240 : i32
    %1352 = tpu.dynamic_rotate %990 by %c240_i32_42 dim 1 : vector<8x256xf32>, i32 -> vector<8x256xf32>
    %1353 = vector.extract_strided_slice %0 {offsets = [7, 0], sizes = [1, 256], strides = [1, 1]} : vector<9x256xf32> to vector<1x256xf32>
    %1354 = vector.broadcast %1353 : vector<1x256xf32> to vector<8x256xf32>
    %1355 = arith.mulf %1352, %1354 : vector<8x256xf32>
    %1356 = vector.extract_strided_slice %2 {offsets = [0, 56], sizes = [8, 1], strides = [1, 1]} : vector<8x72xf32> to vector<8x1xf32>
    %1357 = vector.extract_strided_slice %1355 {offsets = [0, 0], sizes = [1, 256], strides = [1, 1]} : vector<8x256xf32> to vector<1x256xf32>
    %1358 = vector.broadcast %1356 : vector<8x1xf32> to vector<8x256xf32>
    %1359 = vector.broadcast %1357 : vector<1x256xf32> to vector<8x256xf32>
    %1360 = arith.mulf %1358, %1359 : vector<8x256xf32>
    %1361 = arith.addf %1351, %1360 : vector<8x256xf32>
    %1362 = vector.extract_strided_slice %2 {offsets = [0, 57], sizes = [8, 1], strides = [1, 1]} : vector<8x72xf32> to vector<8x1xf32>
    %1363 = vector.extract_strided_slice %1355 {offsets = [1, 0], sizes = [1, 256], strides = [1, 1]} : vector<8x256xf32> to vector<1x256xf32>
    %1364 = vector.broadcast %1362 : vector<8x1xf32> to vector<8x256xf32>
    %1365 = vector.broadcast %1363 : vector<1x256xf32> to vector<8x256xf32>
    %1366 = arith.mulf %1364, %1365 : vector<8x256xf32>
    %1367 = arith.addf %1361, %1366 : vector<8x256xf32>
    %1368 = vector.extract_strided_slice %2 {offsets = [0, 58], sizes = [8, 1], strides = [1, 1]} : vector<8x72xf32> to vector<8x1xf32>
    %1369 = vector.extract_strided_slice %1355 {offsets = [2, 0], sizes = [1, 256], strides = [1, 1]} : vector<8x256xf32> to vector<1x256xf32>
    %1370 = vector.broadcast %1368 : vector<8x1xf32> to vector<8x256xf32>
    %1371 = vector.broadcast %1369 : vector<1x256xf32> to vector<8x256xf32>
    %1372 = arith.mulf %1370, %1371 : vector<8x256xf32>
    %1373 = arith.addf %1367, %1372 : vector<8x256xf32>
    %1374 = vector.extract_strided_slice %2 {offsets = [0, 59], sizes = [8, 1], strides = [1, 1]} : vector<8x72xf32> to vector<8x1xf32>
    %1375 = vector.extract_strided_slice %1355 {offsets = [3, 0], sizes = [1, 256], strides = [1, 1]} : vector<8x256xf32> to vector<1x256xf32>
    %1376 = vector.broadcast %1374 : vector<8x1xf32> to vector<8x256xf32>
    %1377 = vector.broadcast %1375 : vector<1x256xf32> to vector<8x256xf32>
    %1378 = arith.mulf %1376, %1377 : vector<8x256xf32>
    %1379 = arith.addf %1373, %1378 : vector<8x256xf32>
    %1380 = vector.extract_strided_slice %2 {offsets = [0, 60], sizes = [8, 1], strides = [1, 1]} : vector<8x72xf32> to vector<8x1xf32>
    %1381 = vector.extract_strided_slice %1355 {offsets = [4, 0], sizes = [1, 256], strides = [1, 1]} : vector<8x256xf32> to vector<1x256xf32>
    %1382 = vector.broadcast %1380 : vector<8x1xf32> to vector<8x256xf32>
    %1383 = vector.broadcast %1381 : vector<1x256xf32> to vector<8x256xf32>
    %1384 = arith.mulf %1382, %1383 : vector<8x256xf32>
    %1385 = arith.addf %1379, %1384 : vector<8x256xf32>
    %1386 = vector.extract_strided_slice %2 {offsets = [0, 61], sizes = [8, 1], strides = [1, 1]} : vector<8x72xf32> to vector<8x1xf32>
    %1387 = vector.extract_strided_slice %1355 {offsets = [5, 0], sizes = [1, 256], strides = [1, 1]} : vector<8x256xf32> to vector<1x256xf32>
    %1388 = vector.broadcast %1386 : vector<8x1xf32> to vector<8x256xf32>
    %1389 = vector.broadcast %1387 : vector<1x256xf32> to vector<8x256xf32>
    %1390 = arith.mulf %1388, %1389 : vector<8x256xf32>
    %1391 = arith.addf %1385, %1390 : vector<8x256xf32>
    %1392 = vector.extract_strided_slice %2 {offsets = [0, 62], sizes = [8, 1], strides = [1, 1]} : vector<8x72xf32> to vector<8x1xf32>
    %1393 = vector.extract_strided_slice %1355 {offsets = [6, 0], sizes = [1, 256], strides = [1, 1]} : vector<8x256xf32> to vector<1x256xf32>
    %1394 = vector.broadcast %1392 : vector<8x1xf32> to vector<8x256xf32>
    %1395 = vector.broadcast %1393 : vector<1x256xf32> to vector<8x256xf32>
    %1396 = arith.mulf %1394, %1395 : vector<8x256xf32>
    %1397 = arith.addf %1391, %1396 : vector<8x256xf32>
    %1398 = vector.extract_strided_slice %2 {offsets = [0, 63], sizes = [8, 1], strides = [1, 1]} : vector<8x72xf32> to vector<8x1xf32>
    %1399 = vector.extract_strided_slice %1355 {offsets = [7, 0], sizes = [1, 256], strides = [1, 1]} : vector<8x256xf32> to vector<1x256xf32>
    %1400 = vector.broadcast %1398 : vector<8x1xf32> to vector<8x256xf32>
    %1401 = vector.broadcast %1399 : vector<1x256xf32> to vector<8x256xf32>
    %1402 = arith.mulf %1400, %1401 : vector<8x256xf32>
    %1403 = arith.addf %1397, %1402 : vector<8x256xf32>
    %c239_i32_43 = arith.constant 239 : i32
    %1404 = tpu.dynamic_rotate %990 by %c239_i32_43 dim 1 : vector<8x256xf32>, i32 -> vector<8x256xf32>
    %1405 = vector.extract_strided_slice %0 {offsets = [8, 0], sizes = [1, 256], strides = [1, 1]} : vector<9x256xf32> to vector<1x256xf32>
    %1406 = vector.broadcast %1405 : vector<1x256xf32> to vector<8x256xf32>
    %1407 = arith.mulf %1404, %1406 : vector<8x256xf32>
    %1408 = vector.extract_strided_slice %2 {offsets = [0, 64], sizes = [8, 1], strides = [1, 1]} : vector<8x72xf32> to vector<8x1xf32>
    %1409 = vector.extract_strided_slice %1407 {offsets = [0, 0], sizes = [1, 256], strides = [1, 1]} : vector<8x256xf32> to vector<1x256xf32>
    %1410 = vector.broadcast %1408 : vector<8x1xf32> to vector<8x256xf32>
    %1411 = vector.broadcast %1409 : vector<1x256xf32> to vector<8x256xf32>
    %1412 = arith.mulf %1410, %1411 : vector<8x256xf32>
    %1413 = arith.addf %1403, %1412 : vector<8x256xf32>
    %1414 = vector.extract_strided_slice %2 {offsets = [0, 65], sizes = [8, 1], strides = [1, 1]} : vector<8x72xf32> to vector<8x1xf32>
    %1415 = vector.extract_strided_slice %1407 {offsets = [1, 0], sizes = [1, 256], strides = [1, 1]} : vector<8x256xf32> to vector<1x256xf32>
    %1416 = vector.broadcast %1414 : vector<8x1xf32> to vector<8x256xf32>
    %1417 = vector.broadcast %1415 : vector<1x256xf32> to vector<8x256xf32>
    %1418 = arith.mulf %1416, %1417 : vector<8x256xf32>
    %1419 = arith.addf %1413, %1418 : vector<8x256xf32>
    %1420 = vector.extract_strided_slice %2 {offsets = [0, 66], sizes = [8, 1], strides = [1, 1]} : vector<8x72xf32> to vector<8x1xf32>
    %1421 = vector.extract_strided_slice %1407 {offsets = [2, 0], sizes = [1, 256], strides = [1, 1]} : vector<8x256xf32> to vector<1x256xf32>
    %1422 = vector.broadcast %1420 : vector<8x1xf32> to vector<8x256xf32>
    %1423 = vector.broadcast %1421 : vector<1x256xf32> to vector<8x256xf32>
    %1424 = arith.mulf %1422, %1423 : vector<8x256xf32>
    %1425 = arith.addf %1419, %1424 : vector<8x256xf32>
    %1426 = vector.extract_strided_slice %2 {offsets = [0, 67], sizes = [8, 1], strides = [1, 1]} : vector<8x72xf32> to vector<8x1xf32>
    %1427 = vector.extract_strided_slice %1407 {offsets = [3, 0], sizes = [1, 256], strides = [1, 1]} : vector<8x256xf32> to vector<1x256xf32>
    %1428 = vector.broadcast %1426 : vector<8x1xf32> to vector<8x256xf32>
    %1429 = vector.broadcast %1427 : vector<1x256xf32> to vector<8x256xf32>
    %1430 = arith.mulf %1428, %1429 : vector<8x256xf32>
    %1431 = arith.addf %1425, %1430 : vector<8x256xf32>
    %1432 = vector.extract_strided_slice %2 {offsets = [0, 68], sizes = [8, 1], strides = [1, 1]} : vector<8x72xf32> to vector<8x1xf32>
    %1433 = vector.extract_strided_slice %1407 {offsets = [4, 0], sizes = [1, 256], strides = [1, 1]} : vector<8x256xf32> to vector<1x256xf32>
    %1434 = vector.broadcast %1432 : vector<8x1xf32> to vector<8x256xf32>
    %1435 = vector.broadcast %1433 : vector<1x256xf32> to vector<8x256xf32>
    %1436 = arith.mulf %1434, %1435 : vector<8x256xf32>
    %1437 = arith.addf %1431, %1436 : vector<8x256xf32>
    %1438 = vector.extract_strided_slice %2 {offsets = [0, 69], sizes = [8, 1], strides = [1, 1]} : vector<8x72xf32> to vector<8x1xf32>
    %1439 = vector.extract_strided_slice %1407 {offsets = [5, 0], sizes = [1, 256], strides = [1, 1]} : vector<8x256xf32> to vector<1x256xf32>
    %1440 = vector.broadcast %1438 : vector<8x1xf32> to vector<8x256xf32>
    %1441 = vector.broadcast %1439 : vector<1x256xf32> to vector<8x256xf32>
    %1442 = arith.mulf %1440, %1441 : vector<8x256xf32>
    %1443 = arith.addf %1437, %1442 : vector<8x256xf32>
    %1444 = vector.extract_strided_slice %2 {offsets = [0, 70], sizes = [8, 1], strides = [1, 1]} : vector<8x72xf32> to vector<8x1xf32>
    %1445 = vector.extract_strided_slice %1407 {offsets = [6, 0], sizes = [1, 256], strides = [1, 1]} : vector<8x256xf32> to vector<1x256xf32>
    %1446 = vector.broadcast %1444 : vector<8x1xf32> to vector<8x256xf32>
    %1447 = vector.broadcast %1445 : vector<1x256xf32> to vector<8x256xf32>
    %1448 = arith.mulf %1446, %1447 : vector<8x256xf32>
    %1449 = arith.addf %1443, %1448 : vector<8x256xf32>
    %1450 = vector.extract_strided_slice %2 {offsets = [0, 71], sizes = [8, 1], strides = [1, 1]} : vector<8x72xf32> to vector<8x1xf32>
    %1451 = vector.extract_strided_slice %1407 {offsets = [7, 0], sizes = [1, 256], strides = [1, 1]} : vector<8x256xf32> to vector<1x256xf32>
    %1452 = vector.broadcast %1450 : vector<8x1xf32> to vector<8x256xf32>
    %1453 = vector.broadcast %1451 : vector<1x256xf32> to vector<8x256xf32>
    %1454 = arith.mulf %1452, %1453 : vector<8x256xf32>
    %1455 = arith.addf %1449, %1454 : vector<8x256xf32>
    %1456 = vector.broadcast %7 : vector<8x1xf32> to vector<8x256xf32>
    %1457 = arith.addf %1455, %1456 : vector<8x256xf32>
    %cst_44 = arith.constant 0.000000e+00 : f32
    %1458 = vector.broadcast %cst_44 : f32 to vector<8x256xf32>
    %1459 = arith.maximumf %1457, %1458 : vector<8x256xf32>
    %c1 = arith.constant 1 : index
    %c0_45 = arith.constant 0 : index
    %c0_46 = arith.constant 0 : index
    %1460 = vector.load %arg6[%c1, %c0_45, %c0_46] : memref<2x8x256xf32, #tpu.memory_space<vmem>>, vector<1x8x256xf32>
    %1461 = vector.shape_cast %1460 : vector<1x8x256xf32> to vector<8x256xf32>
    %1462 = vector.shape_cast %1459 : vector<8x256xf32> to vector<1x8x256xf32>
    tpu.vector_store %arg6[%c1, %c0_45, %c0_46], %1462 {strides = array<i32>} : memref<2x8x256xf32, #tpu.memory_space<vmem>>, vector<1x8x256xf32>,
    return
  }
  func.func @transform_0(%arg0: i32) -> (i32, i32, i32) {
    %c0_i32 = arith.constant 0 : i32
    %c0_i32_0 = arith.constant 0 : i32
    %c0_i32_1 = arith.constant 0 : i32
    return %arg0, %c0_i32, %c0_i32_0 : i32, i32, i32
  }
  func.func @transform_1(%arg0: i32) -> (i32, i32) {
    %c0_i32 = arith.constant 0 : i32
    %c0_i32_0 = arith.constant 0 : i32
    %c0_i32_1 = arith.constant 0 : i32
    return %c0_i32, %c0_i32_0 : i32, i32
  }
  func.func @transform_2(%arg0: i32) -> (i32, i32) {
    %c0_i32 = arith.constant 0 : i32
    %c0_i32_0 = arith.constant 0 : i32
    %c0_i32_1 = arith.constant 0 : i32
    return %c0_i32, %c0_i32_0 : i32, i32
  }
  func.func @transform_3(%arg0: i32) -> (i32, i32) {
    %c0_i32 = arith.constant 0 : i32
    %c0_i32_0 = arith.constant 0 : i32
    %c0_i32_1 = arith.constant 0 : i32
    return %c0_i32, %c0_i32_0 : i32, i32
  }
  func.func @transform_4(%arg0: i32) -> (i32, i32, i32) {
    %c0_i32 = arith.constant 0 : i32
    %c0_i32_0 = arith.constant 0 : i32
    %c0_i32_1 = arith.constant 0 : i32
    %c0_i32_2 = arith.constant 0 : i32
    return %c0_i32, %c0_i32_0, %c0_i32_1 : i32, i32, i32
  }
  func.func @transform_5(%arg0: i32) -> (i32, i32, i32) {
    %c0_i32 = arith.constant 0 : i32
    %c0_i32_0 = arith.constant 0 : i32
    %c0_i32_1 = arith.constant 0 : i32
    return %arg0, %c0_i32, %c0_i32_0 : i32, i32, i32
  }
}

</mosaic_0001>

<bundles_post_ra>
// kernel: tpu_custom_call.1
= control target key start
LH: loop header
LB: loop body
LE: loop exit
PB: predicated region body
PF: predicated region fallthrough
CT: control target
= control target key end

     0   :  { %10 = vsyncpa [#allocation3], 0  ;;  %s6131_s0 = inlined_call_operand.vmem [shape: f32[2,4,256], index: 0, kind: input, shape index: {}]   ;;  %s6132_s1 = inlined_call_operand.hbm [shape: f32[9,256], index: 1, kind: input, shape index: {}]   ;;  %s6133_s2 = inlined_call_operand.vmem [shape: f32[8,36], index: 2, kind: input, shape index: {}]   ;;  %s6134_s3 = inlined_call_operand.hbm [shape: f32[8,72], index: 3, kind: input, shape index: {}]   ;;  %s6135_s4 = inlined_call_operand.vmem [shape: f32[2,8,1], index: 4, kind: input, shape index: {}]   ;;  %s6136_s5 = inlined_call_operand.hbm [shape: f32[2,8,256], index: 5, kind: output, shape index: {}]  }
   0x1   :  { %11 = vsyncpa [#allocation6], 0 }
   0x2   :  { %12 = vsyncpa [#allocation4], 0  ;;  %s3821_s18 = smov [#allocation2]   ;;  %s3749_s22 = scalar_lea.hbm %s6132_s1, 512 }
   0x3   :  { %s20_s19 = sshll.u32 %s3821_s18, 4  ;;  %p3750_p0 = scmp.ne.s32.totalorder %s6132_s1, %s3749_s22  ;;  %s21_s19 = int_to_ptr.vmem [resolvable:$true] %s20_s19 }
   0x4   :  { %p3753_p1 = scmp.lt.u32.totalorder %s3749_s22, %s6132_s1 }
   0x6   :  { %p3755_p2 = pnand %p3753_p1, %p3750_p0 }
   0x8   :  { %3758 = shalt.err (!%p3755_p2)
}
   0x9   :  { %s3759_s27 = scalar_lea.vmem %s21_s19, 512  ;;  %p3764_p4 = scmp.lt.s32.totalorder %s21_s19, %s21_s19 }
   0xa   :  { %p3760_p3 = scmp.ne.s32.totalorder %s21_s19, %s3759_s27  ;;  %p3765_p5 = scmp.lt.s32.totalorder %s3759_s27, %s3759_s27 }
   0xc   :  { %p3766_p6 = por %p3765_p5, %p3764_p4 }
   0xe   :  { %p3767_p7 = pnand %p3766_p6, %p3760_p3 }
  0x10   :  { %3770 = shalt.err (!%p3767_p7)
}
  0x11   :  { %s3822_s28 = smov 256   ;;  %s3823_s29 = smov 16  }
  0x12   :  { %26 = dma.hbm_to_vmem [thread:$0]  %s6132_s1, 512, %s21_s19, [#allocation3], %s3822_s28, %s3822_s28, %s3823_s29  }
  0x13   :  { %s3824_s7 = smov [#allocation5]   ;;  %s3771_s11 = scalar_lea.hbm %s6134_s3, 128 }
  0x14   :  { %s35_s8 = sshll.u32 %s3824_s7, 4  ;;  %p3772_p8 = scmp.ne.s32.totalorder %s6134_s3, %s3771_s11  ;;  %s36_s8 = int_to_ptr.vmem [resolvable:$true] %s35_s8 }
  0x15   :  { %p3775_p9 = scmp.lt.u32.totalorder %s3771_s11, %s6134_s3 }
  0x17   :  { %p3777_p10 = pnand %p3775_p9, %p3772_p8 }
  0x19   :  { %3780 = shalt.err (!%p3777_p10)
}
  0x1a   :  { %s3781_s16 = scalar_lea.vmem %s36_s8, 128  ;;  %p3786_p12 = scmp.lt.s32.totalorder %s36_s8, %s36_s8 }
  0x1b   :  { %p3782_p11 = scmp.ne.s32.totalorder %s36_s8, %s3781_s16  ;;  %p3787_p13 = scmp.lt.s32.totalorder %s3781_s16, %s3781_s16 }
  0x1d   :  { %p3788_p0 = por %p3787_p13, %p3786_p12 }
  0x1f   :  { %p3789_p1 = pnand %p3788_p0, %p3782_p11 }
  0x21   :  { %3792 = shalt.err (!%p3789_p1)
}
  0x22   :  { %38 = dma.hbm_to_vmem [thread:$0]  %s6134_s3, 128, %s36_s8, [#allocation6]  }
  0x23   :  { %3815 = dma.done.wait [#allocation3], 512  }
  0x24   :  { %3816 = vsyncadd [#allocation3], 4294966784 }
  0x25   :  { %3817 = dma.done.wait [#allocation6], 128  }
  0x26   :  { %3818 = vsyncadd [#allocation6], 4294967168  ;;  %v6137_v0 = vmov 0   ;;  %v3826_v1 = vmov 2   ;;  %v3967_v2 = vld [vmem:[%s6131_s0] sm:$0xff]  ;;  %s3827_s3 = smov 17  }
  0x27   :  { %3634 = vset.pattern.permute.xlu1 %v6137_v0  ;;  %3636 = vset.pattern.permute.xlu0 %v3826_v1  ;;  %v3972_v3 = vld [vmem:[%s6133_s2] sm:$0xff]  ;;  %v3979_v4 = vcombine.high %v3967_v2, %v3967_v2  ;;  %v3828_v5 = vmov 1   ;;  %v3829_v6 = vmov 3   ;;  %v3830_v7 = vmov 5   ;;  %s3832_s2 = smov 15   ;;  %s3841_s22 = smov 127  }
  0x28   :  { %60 = vrot.lane.b32.xlu0 %v3967_v2, %s3827_s3  ;;  %81 = vperm.xlu1 %3634, %v3972_v3   ;;  %v3831_v8 = vmov 4   ;;  %v3833_v9 = vmov 11   ;;  %v3834_v10 = vmov 6   ;;  %v3835_v11 = vmov 7   ;;  %s3843_s23 = smov 1   ;;  %s3845_s24 = smov 113  }
  0x29   :  { %v3836_v12 = vmov 12   ;;  %v3837_v13 = vmov 15   ;;  %v3838_v14 = vmov 9   ;;  %v6152_v15 = vmov 18   ;;  %v4052_v30 = vld [vmem:[#allocation5] sm:$0xff]  ;;  %v4070_v34 = vld [vmem:[%s6131_s0 + $0x8] sm:$0xff] }
  0x2a   :  { %v3840_v16 = vmov 10   ;;  %v6149_v17 = vmov 21   ;;  %v3844_v18 = vmov 13   ;;  %v6145_v19 = vmov 24   ;;  %6262 = vst [vmem:[#allocation11_spill] sm:$0xff] %v4052_v30  ;;  %6263 = vst [vmem:[#allocation12_spill] sm:$0xff] %v4070_v34 }
  0x2b   :  { %v3847_v20 = vmov 14   ;;  %v6142_v21 = vmov 27   ;;  %v6156_v22 = vmov 16   ;;  %v6150_v23 = vmov 28   ;;  %s3862_s27 = smov 112   ;;  %s3865_s30 = smov 111  }
  0x2c   :  { %62 = vrot.lane.b32.xlu0 %v3979_v4, %s3827_s3  ;;  %3635 = vset.pattern.permute.xlu1 %v3828_v5  ;;  %v3851_v24 = vmov 17   ;;  %v6148_v25 = vmov 31   ;;  %v6155_v26 = vmov 19   ;;  %v6146_v27 = vmov 32   ;;  %v53_v49 = vld [vmem:[%s6135_s4] sm:$0xff] }
  0x2d   :  { %97 = vperm.xlu1 %3635, %v3972_v3   ;;  %v6151_v28 = vmov 20   ;;  %v6144_v29 = vmov 35   ;;  %v6154_v31 = vmov 22   ;;  %v6147_v32 = vmov 23  }
  0x2e   :  { %v6153_v33 = vmov 25   ;;  %v3860_v35 = vmov 8   ;;  %v4076_v36 = vcombine.high %v4070_v34, %v4070_v34  ;;  %v6143_v37 = vmov 26  }
  0x2f   :  { %v6141_v38 = vmov 29   ;;  %v6140_v39 = vmov 30   ;;  %v6139_v41 = vmov 33   ;;  %v6138_v46 = vmov 34  }
  0x30   :  { %113 = vperm.xlu0 %3636, %v3972_v3   ;;  %6264 = vst [vmem:[#allocation13_spill] sm:$0xff] %v4076_v36 }
  0x31   :  { %3637 = vset.pattern.permute.xlu1 %v3829_v6 }
  0x32   :  { %129 = vperm.xlu1 %3637, %v3972_v3  }
  0x34   :  { %146 = vrot.lane.b32.xlu0 %v3979_v4, %s3823_s29 }
  0x35   :  { %3639 = vset.pattern.permute.xlu0 %v3830_v7 }
  0x36   :  { %144 = vrot.lane.b32.xlu1 %v3967_v2, %s3823_s29 }
  0x37   :  { %3638 = vset.pattern.permute.xlu1 %v3831_v8 }
  0x38   :  { %178 = vperm.xlu0 %3639, %v3972_v3  }
  0x3a   :  { %162 = vperm.xlu1 %3638, %v3972_v3  }
  0x3c   :  { %225 = vrot.lane.b32.xlu0 %v3967_v2, %s3832_s2 }
  0x3d   :  { %3644 = vset.pattern.permute.xlu0 %v3833_v9 }
  0x3e   :  { %3640 = vset.pattern.permute.xlu1 %v3834_v10 }
  0x3f   :  { %194 = vperm.xlu1 %3640, %v3972_v3  }
  0x40   :  { %291 = vperm.xlu0 %3644, %v3972_v3  }
  0x43   :  { %3641 = vset.pattern.permute.xlu1 %v3835_v11 }
  0x44   :  { %3645 = vset.pattern.permute.xlu0 %v3836_v12  ;;  %210 = vperm.xlu1 %3641, %v3972_v3  }
  0x45   :  { %324 = vperm.xlu0 %3645, %v3972_v3  }
  0x48   :  { %227 = vrot.lane.b32.xlu1 %v3979_v4, %s3832_s2 }
  0x49   :  { %3648 = vset.pattern.permute.xlu0 %v3837_v13  ;;  %3642 = vset.pattern.permute.xlu1 %v3838_v14 }
  0x4a   :  { %372 = vperm.xlu0 %3648, %v3972_v3  }
  0x4c   :  { %259 = vperm.xlu1 %3642, %v3972_v3  }
  0x4e   :  { %3651 = vset.pattern.permute.xlu0 %v6152_v15 }
  0x4f   :  { %440 = vperm.xlu0 %3651, %v3972_v3  }
  0x50   :  { %3643 = vset.pattern.permute.xlu1 %v3840_v16 }
  0x51   :  { %275 = vperm.xlu1 %3643, %v3972_v3  }
  0x53   :  { %493 = vrot.lane.b32.xlu0 %v3979_v4, %s3841_s22 }
  0x54   :  { %3654 = vset.pattern.permute.xlu0 %v6149_v17 }
  0x55   :  { %306 = vrot.lane.b32.xlu1 %v3967_v2, %s3843_s23 }
  0x56   :  { %3646 = vset.pattern.permute.xlu1 %v3844_v18 }
  0x57   :  { %525 = vperm.xlu0 %3654, %v3972_v3  }
  0x59   :  { %308 = vrot.lane.b32.xlu1 %v3979_v4, %s3843_s23 }
  0x5b   :  { %572 = vrot.lane.b32.xlu0 %v3967_v2, %s3845_s24 }
  0x5c   :  { %3657 = vset.pattern.permute.xlu0 %v6145_v19 }
  0x5d   :  { %340 = vperm.xlu1 %3646, %v3972_v3  }
  0x5f   :  { %590 = vperm.xlu0 %3657, %v3972_v3  }
  0x61   :  { %3647 = vset.pattern.permute.xlu1 %v3847_v20 }
  0x62   :  { %356 = vperm.xlu1 %3647, %v3972_v3  }
  0x63   :  { %3660 = vset.pattern.permute.xlu0 %v6142_v21 }
  0x64   :  { %638 = vperm.xlu0 %3660, %v3972_v3  }
  0x66   :  { %3649 = vset.pattern.permute.xlu1 %v6156_v22 }
  0x67   :  { %388 = vperm.xlu1 %3649, %v3972_v3  }
  0x68   :  { %3661 = vset.pattern.permute.xlu0 %v6150_v23 }
  0x69   :  { %671 = vperm.xlu0 %3661, %v3972_v3  }
  0x6b   :  { %3650 = vset.pattern.permute.xlu1 %v3851_v24 }
  0x6c   :  { %414 = vperm.xlu1 %3650, %v3972_v3  }
  0x6d   :  { %3664 = vset.pattern.permute.xlu0 %v6148_v25 }
  0x6e   :  { %719 = vperm.xlu0 %3664, %v3972_v3  }
  0x70   :  { %3652 = vset.pattern.permute.xlu1 %v6155_v26 }
  0x71   :  { %466 = vperm.xlu1 %3652, %v3972_v3  }
  0x72   :  { %3665 = vset.pattern.permute.xlu0 %v6146_v27 }
  0x73   :  { %752 = vperm.xlu0 %3665, %v3972_v3  }
  0x75   :  { %491 = vrot.lane.b32.xlu1 %v3967_v2, %s3841_s22 }
  0x76   :  { %3653 = vset.pattern.permute.xlu1 %v6151_v28 }
  0x77   :  { %3668 = vset.pattern.permute.xlu0 %v6144_v29 }
  0x78   :  { %800 = vperm.xlu0 %3668, %v3972_v3  }
  0x79   :  { %509 = vperm.xlu1 %3653, %v3972_v3  }
  0x7c   :  { %3670 = vset.pattern.permute.xlu0 %v3828_v5 }
  0x7d   :  { %850 = vperm.xlu0 %3670, %v4052_v30   ;;  %3655 = vset.pattern.permute.xlu1 %v6154_v31 }
  0x7e   :  { %541 = vperm.xlu1 %3655, %v3972_v3  }
  0x81   :  { %3673 = vset.pattern.permute.xlu0 %v3831_v8 }
  0x82   :  { %898 = vperm.xlu0 %3673, %v4052_v30   ;;  %3656 = vset.pattern.permute.xlu1 %v6147_v32 }
  0x83   :  { %557 = vperm.xlu1 %3656, %v3972_v3  }
  0x86   :  { %3676 = vset.pattern.permute.xlu0 %v3835_v11 }
  0x87   :  { %946 = vperm.xlu0 %3676, %v4052_v30   ;;  %574 = vrot.lane.b32.xlu1 %v3979_v4, %s3845_s24 }
  0x88   :  { %3658 = vset.pattern.permute.xlu1 %v6153_v33 }
  0x8b   :  { %3677 = vset.pattern.permute.xlu0 %v3860_v35  ;;  %606 = vperm.xlu1 %3658, %v3972_v3  }
  0x8c   :  { %243 = vperm.xlu0 %3677, %v3972_v3  }
  0x8f   :  { %3659 = vset.pattern.permute.xlu1 %v6143_v37 }
  0x90   :  { %2057 = vrot.lane.b32.xlu0 %v4076_v36, %s3827_s3  ;;  %622 = vperm.xlu1 %3659, %v3972_v3  }
  0x94   :  { %2111 = vrot.lane.b32.xlu0 %v4070_v34, %s3823_s29  ;;  %653 = vrot.lane.b32.xlu1 %v3967_v2, %s3862_s27 }
  0x95   :  { %3662 = vset.pattern.permute.xlu1 %v6141_v38 }
  0x98   :  { %970 = vperm.xlu0 %3677, %v4052_v30   ;;  %655 = vrot.lane.b32.xlu1 %v3979_v4, %s3862_s27 }
  0x9a   :  { %v4097_v40 = vpop.permute.xlu0 %60 }
  0x9c   :  { %687 = vperm.xlu1 %3662, %v3972_v3   ;;  %3678 = vset.pattern.permute.xlu0 %v3838_v14 }
  0x9d   :  { %986 = vperm.xlu0 %3678, %v4052_v30  }
  0x9e   :  { %v4110_v43 = vpop.permute.xlu0 %62 }
  0xa0   :  { %3663 = vset.pattern.permute.xlu1 %v6140_v39 }
  0xa1   :  { %703 = vperm.xlu1 %3663, %v3972_v3   ;;  %3679 = vset.pattern.permute.xlu0 %v3840_v16  ;;  %v4201_v16 = vld [vmem:[#allocation2] sm:$0xff] }
  0xa2   :  { %1002 = vperm.xlu0 %3679, %v4052_v30  }
  0xa5   :  { %734 = vrot.lane.b32.xlu1 %v3967_v2, %s3865_s30 }
  0xa6   :  { %3666 = vset.pattern.permute.xlu1 %v6139_v41  ;;  %2367 = vrot.lane.b32.xlu0 %v4070_v34, %s3841_s22 }
  0xa7   :  { %v4104_v42 = vpop.permute.xlu1 %81  ;;  %3682 = vset.pattern.permute.xlu0 %v3844_v18  ;;  %v4203_v18 = vld [vmem:[#allocation2 + $0x8] sm:$0xff] }
  0xa8   :  { %6265 = vst [vmem:[#allocation14_spill] sm:$0xff] %v4104_v42 }
  0xa9   :  { %736 = vrot.lane.b32.xlu1 %v3979_v4, %s3865_s30 }
  0xaa   :  { %1050 = vperm.xlu0 %3682, %v4052_v30  }
  0xac   :  { %v4112_v44 = vpop.permute.xlu1 %97 }
  0xad   :  { %6266 = vst [vmem:[#allocation15_spill] sm:$0xff] %v4112_v44  ;;  %768 = vperm.xlu1 %3666, %v3972_v3  }
  0xae   :  { %3683 = vset.pattern.permute.xlu0 %v3847_v20 }
  0xaf   :  { %v4116_v45 = vpop.permute.xlu0 %113  ;;  %1066 = vperm.xlu0 %3683, %v4052_v30  }
  0xb0   :  { %6267 = vst [vmem:[#allocation16_spill] sm:$0xff] %v4116_v45 }
  0xb1   :  { %3667 = vset.pattern.permute.xlu1 %v6138_v46  ;;  %v4120_v47 = vpop.permute.xlu1 %129 }
  0xb2   :  { %6268 = vst [vmem:[#allocation17_spill] sm:$0xff] %v4120_v47  ;;  %784 = vperm.xlu1 %3667, %v3972_v3  }
  0xb3   :  { %v4123_v48 = vpop.permute.xlu0 %146  ;;  %3684 = vset.pattern.permute.xlu0 %v3837_v13 }
  0xb5   :  { %v4129_v50 = vpop.permute.xlu1 %144 }
  0xb6   :  { %3669 = vset.pattern.permute.xlu1 %v6137_v0 }
  0xb7   :  { %v4132_v51 = vpop.permute.xlu0 %178  ;;  %817 = vperm.xlu1 %3669, %v53_v49  }
  0xb8   :  { %6269 = vst [vmem:[#allocation18_spill] sm:$0xff] %v4132_v51 }
  0xb9   :  { %v4134_v52 = vpop.permute.xlu1 %162 }
  0xba   :  { %6270 = vst [vmem:[#allocation19_spill] sm:$0xff] %v4134_v52 }
  0xbb   :  { %v4136_v53 = vpop.permute.xlu0 %225  ;;  %834 = vperm.xlu1 %3669, %v4052_v30  }
  0xbe   :  { %v4139_v54 = vpop.permute.xlu1 %194 }
  0xbf   :  { %6271 = vst [vmem:[#allocation20_spill] sm:$0xff] %v4139_v54  ;;  %v4141_v55 = vpop.permute.xlu0 %291  ;;  %3671 = vset.pattern.permute.xlu1 %v3826_v1 }
  0xc0   :  { %6272 = vst [vmem:[#allocation21_spill] sm:$0xff] %v4141_v55  ;;  %866 = vperm.xlu1 %3671, %v4052_v30  }
  0xc3   :  { %v4145_v56 = vpop.permute.xlu1 %210 }
  0xc4   :  { %6273 = vst [vmem:[#allocation22_spill] sm:$0xff] %v4145_v56  ;;  %v4147_v57 = vpop.permute.xlu0 %324  ;;  %3672 = vset.pattern.permute.xlu1 %v3829_v6 }
  0xc5   :  { %882 = vperm.xlu1 %3672, %v4052_v30  }
  0xc7   :  { %v4151_v58 = vpop.permute.xlu1 %227 }
  0xc9   :  { %v4153_v59 = vpop.permute.xlu0 %372  ;;  %3674 = vset.pattern.permute.xlu1 %v3830_v7  ;;  %v64_v7 = vlaneseq }
  0xca   :  { %914 = vperm.xlu1 %3674, %v4052_v30  }
  0xcb   :  { %v4157_v60 = vpop.permute.xlu1 %259  ;;  %v4192_v11 = vand.u32 127, %v64_v7 }
  0xcc   :  { %6274 = vst [vmem:[#allocation23_spill] sm:$0xff] %v4157_v60 }
  0xcd   :  { %vm66_vm0 = vcmp.lt.s32.totalorder %v4192_v11, 17  ;;  %vm148_vm1 = vcmp.lt.s32.totalorder %v4192_v11, 16  ;;  %vm229_vm2 = vcmp.lt.s32.totalorder %v4192_v11, 15  ;;  %vm310_vm3 = vcmp.lt.s32.totalorder %v4192_v11, 1 }
  0xce   :  { %v4159_v61 = vpop.permute.xlu0 %440  ;;  %3675 = vset.pattern.permute.xlu1 %v3834_v10  ;;  %v67_v0 = vsel %vm66_vm0, %v4097_v40, %v4110_v43  ;;  %v68_v46 = vsel %vm66_vm0, %v4110_v43, %v4097_v40  ;;  %v150_v27 = vsel %vm148_vm1, %v4123_v48, %v4129_v50  ;;  %vm495_vm4 = vcmp.lt.s32.totalorder %v4192_v11, 127 }
  0xcf   :  { %930 = vperm.xlu1 %3675, %v4052_v30   ;;  %vm576_vm5 = vcmp.lt.s32.totalorder %v4192_v11, 113  ;;  %vm657_vm6 = vcmp.lt.s32.totalorder %v4192_v11, 112  ;;  %vm738_vm7 = vcmp.lt.s32.totalorder %v4192_v11, 111 }
  0xd0   :  { %v4163_v62 = vpop.permute.xlu1 %275 }
  0xd1   :  { %6275 = vst [vmem:[#allocation24_spill] sm:$0xff] %v4163_v62 }
  0xd2   :  { %v4165_v63 = vpop.permute.xlu0 %493 }
  0xd3   :  { %2055 = vrot.lane.b32.xlu1 %v4070_v34, %s3827_s3 }
  0xd4   :  { %v4169_v1 = vpop.permute.xlu1 %306  ;;  %3680 = vset.pattern.permute.xlu1 %v3833_v9  ;;  %v4188_v9 = vshrl.u32 %v64_v7, 7 }
  0xd6   :  { %v4172_v3 = vpop.permute.xlu0 %525  ;;  %v4199_v14 = vsub.s32 0, %v4188_v9  ;;  %v4232_v39 = vsub.s32 1, %v4188_v9  ;;  %v4241_v29 = vsub.s32 2, %v4188_v9  ;;  %v4271_v15 = vsub.s32 3, %v4188_v9 }
  0xd7   :  { %2113 = vrot.lane.b32.xlu1 %v4076_v36, %s3823_s29 }
  0xd8   :  { %v4176_v4 = vpop.permute.xlu1 %308  ;;  %v4214_v49 = vrot.slane %v4201_v16, %v4199_v14  ;;  %v4218_v7 = vrot.slane %v4203_v18, %v4199_v14 }
  0xda   :  { %v4178_v5 = vpop.permute.xlu0 %572  ;;  %6277 = vst [vmem:[#allocation26_spill] sm:$0xff] %v4214_v49  ;;  %6278 = vst [vmem:[#allocation27_spill] sm:$0xff] %v4218_v7  ;;  %v77_v38 = vmul.f32 %v4214_v49, %v68_v46  ;;  %v78_v21 = vmul.f32 %v4218_v7, %v67_v0  ;;  %v4250_v0 = vrot.slane %v4201_v16, %v4232_v39 }
  0xdb   :  { %2167 = vrot.lane.b32.xlu1 %v4070_v34, %s3832_s2  ;;  %v4254_v46 = vrot.slane %v4203_v18, %v4232_v39 }
  0xdc   :  { %v4182_v6 = vpop.permute.xlu1 %340  ;;  %v103_v43 = vrot.slane %v77_v38, %v4232_v39  ;;  %v107_v19 = vrot.slane %v78_v21, %v4232_v39  ;;  %6279 = vst [vmem:[#allocation28_spill] sm:$0xff] %v4250_v0  ;;  %v87_v25 = vrot.slane %v77_v38, %v4199_v14  ;;  %v91_v17 = vrot.slane %v78_v21, %v4199_v14 }
  0xdd   :  { %6280 = vst [vmem:[#allocation29_spill] sm:$0xff] %v4254_v46  ;;  %v119_v33 = vrot.slane %v77_v38, %v4241_v29  ;;  %v123_v31 = vrot.slane %v78_v21, %v4241_v29 }
  0xde   :  { %v4184_v8 = vpop.permute.xlu0 %590  ;;  %v108_v23 = vmul.f32 %v103_v43, %v4112_v44  ;;  %v109_v28 = vmul.f32 %v107_v19, %v4112_v44  ;;  %v159_v43 = vmul.f32 %v4250_v0, %v150_v27 }
  0xdf   :  { %2169 = vrot.lane.b32.xlu1 %v4076_v36, %s3832_s2  ;;  %v124_v7 = vmul.f32 %v119_v33, %v4116_v45  ;;  %v125_v49 = vmul.f32 %v123_v31, %v4116_v45 }
  0xe0   :  { %v168_v27 = vrot.slane %v159_v43, %v4199_v14 }
  0xe1   :  { %v4190_v10 = vpop.permute.xlu1 %356 }
  0xe2   :  { %6276 = vst [vmem:[#allocation25_spill] sm:$0xff] %v4190_v10 }
  0xe3   :  { %v4194_v13 = vpop.permute.xlu0 %638  ;;  %2223 = vrot.lane.b32.xlu1 %v4070_v34, %s3843_s23 }
  0xe6   :  { %v4205_v20 = vpop.permute.xlu1 %388 }
  0xe7   :  { %2225 = vrot.lane.b32.xlu1 %v4076_v36, %s3843_s23 }
  0xe8   :  { %v4210_v35 = vpop.permute.xlu0 %671 }
  0xeb   :  { %1018 = vperm.xlu1 %3680, %v4052_v30   ;;  %v4229_v41 = vpop.permute.xlu1 %414 }
  0xed   :  { %v4236_v37 = vpop.permute.xlu0 %719 }
  0xef   :  { %3681 = vset.pattern.permute.xlu1 %v3836_v12  ;;  %v149_v12 = vsel %vm148_vm1, %v4129_v50, %v4123_v48  ;;  %v92_v48 = vmul.f32 %v87_v25, %v4104_v42  ;;  %v93_v50 = vmul.f32 %v91_v17, %v4104_v42  ;;  %v135_v17 = vrot.slane %v77_v38, %v4271_v15 }
  0xf0   :  { %1034 = vperm.xlu1 %3681, %v4052_v30   ;;  %v4244_v40 = vpop.permute.xlu1 %466  ;;  %v160_v19 = vmul.f32 %v4254_v46, %v149_v12  ;;  %v139_v25 = vrot.slane %v78_v21, %v4271_v15 }
  0xf1   :  { %v110_v22 = vadd.f32 %v108_v23, %v92_v48  ;;  %v111_v44 = vadd.f32 %v109_v28, %v93_v50  ;;  %v140_v33 = vmul.f32 %v135_v17, %v4120_v47  ;;  %v173_v48 = vmul.f32 %v168_v27, %v4134_v52 }
  0xf2   :  { %v4264_v32 = vpop.permute.xlu0 %752  ;;  %v172_v23 = vrot.slane %v160_v19, %v4199_v14  ;;  %v141_v31 = vmul.f32 %v139_v25, %v4120_v47  ;;  %v200_v25 = vrot.slane %v159_v43, %v4241_v29  ;;  %v204_v27 = vrot.slane %v160_v19, %v4241_v29 }
  0xf3   :  { %6281 = vst [vmem:[#allocation30_spill] sm:$0xff] %v4264_v32  ;;  %v127_v28 = vadd.f32 %v125_v49, %v111_v44  ;;  %v188_v44 = vrot.slane %v160_v19, %v4232_v39 }
  0xf4   :  { %v4275_v26 = vpop.permute.xlu1 %491  ;;  %2369 = vrot.lane.b32.xlu1 %v4076_v36, %s3841_s22  ;;  %v174_v38 = vmul.f32 %v172_v23, %v4134_v52  ;;  %v4317_v23 = vrot.slane %v4201_v16, %v4241_v29 }
  0xf5   :  { %3686 = vset.pattern.permute.xlu1 %v3851_v24  ;;  %v126_v24 = vadd.f32 %v124_v7, %v110_v22  ;;  %v143_v46 = vadd.f32 %v141_v31, %v127_v28  ;;  %v184_v22 = vrot.slane %v159_v43, %v4232_v39  ;;  %v230_v31 = vsel %vm229_vm2, %v4136_v53, %v4151_v58 }
  0xf6   :  { %6285 = vst [vmem:[#allocation34_spill] sm:$0xff] %v4317_v23 }
  0xf7   :  { %v4286_v30 = vpop.permute.xlu0 %800  ;;  %v142_v50 = vadd.f32 %v140_v33, %v126_v24  ;;  %v176_v7 = vadd.f32 %v174_v38, %v143_v46  ;;  %v4321_v24 = vrot.slane %v4203_v18, %v4241_v29  ;;  %v189_v33 = vmul.f32 %v184_v22, %v4132_v51 }
  0xf8   :  { %6282 = vst [vmem:[#allocation31_spill] sm:$0xff] %v4286_v30  ;;  %v4288_v32 = vpop.permute.xlu1 %509  ;;  %2423 = vrot.lane.b32.xlu1 %v4070_v34, %s3845_s24  ;;  %v190_v46 = vmul.f32 %v188_v44, %v4132_v51  ;;  %v216_v38 = vrot.slane %v159_v43, %v4271_v15  ;;  %v205_v44 = vmul.f32 %v200_v25, %v4139_v54  ;;  %v4349_v43 = vsub.s32 4, %v4188_v9 }
  0xf9   :  { %v175_v49 = vadd.f32 %v173_v48, %v142_v50  ;;  %6286 = vst [vmem:[#allocation35_spill] sm:$0xff] %v4321_v24  ;;  %v231_v48 = vsel %vm229_vm2, %v4151_v58, %v4136_v53  ;;  %v220_v50 = vrot.slane %v160_v19, %v4271_v15  ;;  %v241_v52 = vmul.f32 %v4321_v24, %v230_v31 }
  0xfa   :  { %v240_v51 = vmul.f32 %v4317_v23, %v231_v48  ;;  %6288 = vst [vmem:[#allocation37_spill] sm:$0xff] %v4349_v43  ;;  %v4352_v19 = vsub.s32 5, %v4188_v9  ;;  %v4357_v25 = vsub.s32 6, %v4188_v9 }
  0xfb   :  { %v191_v22 = vadd.f32 %v189_v33, %v175_v49  ;;  %v221_v49 = vmul.f32 %v216_v38, %v4145_v56  ;;  %v4364_v33 = vrot.slane %v4201_v16, %v4271_v15  ;;  %v311_v38 = vsel %vm310_vm3, %v4169_v1, %v4176_v4 }
  0xfc   :  { %v4298_v12 = vpop.permute.xlu0 %850  ;;  %2425 = vrot.lane.b32.xlu1 %v4076_v36, %s3845_s24  ;;  %6289 = vst [vmem:[#allocation38_spill] sm:$0xff] %v4352_v19  ;;  %v249_v24 = vrot.slane %v240_v51, %v4199_v14  ;;  %v297_v0 = vrot.slane %v240_v51, %v4271_v15  ;;  %v301_v45 = vrot.slane %v241_v52, %v4271_v15 }
  0xfd   :  { %6283 = vst [vmem:[#allocation32_spill] sm:$0xff] %v4298_v12  ;;  %v4304_v21 = vpop.permute.xlu1 %541  ;;  %v206_v12 = vmul.f32 %v204_v27, %v4139_v54  ;;  %v4360_v27 = vsub.s32 7, %v4188_v9  ;;  %6290 = vst [vmem:[#allocation39_spill] sm:$0xff] %v4364_v33  ;;  %v207_v31 = vadd.f32 %v205_v44, %v191_v22  ;;  %v312_v9 = vsel %vm310_vm3, %v4176_v4, %v4169_v1 }
  0xfe   :  { %v321_v4 = vmul.f32 %v4364_v33, %v312_v9  ;;  %v281_v42 = vrot.slane %v240_v51, %v4241_v29 }
  0xff   :  { %v223_v23 = vadd.f32 %v221_v49, %v207_v31 }
 0x100   :  { %2479 = vrot.lane.b32.xlu1 %v4070_v34, %s3862_s27 }
 0x101   :  { %v4311_v17 = vpop.permute.xlu0 %898 }
 0x102   :  { %6284 = vst [vmem:[#allocation33_spill] sm:$0xff] %v4311_v17  ;;  %v4323_v28 = vpop.permute.xlu1 %557  ;;  %v192_v17 = vadd.f32 %v190_v46, %v176_v7  ;;  %v222_v7 = vmul.f32 %v220_v50, %v4145_v56  ;;  %v4368_v46 = vrot.slane %v4203_v18, %v4271_v15  ;;  %v265_v50 = vrot.slane %v240_v51, %v4232_v39 }
 0x103   :  { %v253_v56 = vrot.slane %v241_v52, %v4199_v14  ;;  %v330_v51 = vrot.slane %v321_v4, %v4199_v14 }
 0x104   :  { %2481 = vrot.lane.b32.xlu1 %v4076_v36, %s3862_s27  ;;  %6291 = vst [vmem:[#allocation40_spill] sm:$0xff] %v4368_v46  ;;  %v208_v48 = vadd.f32 %v206_v12, %v192_v17  ;;  %v394_v12 = vrot.slane %v3967_v2, %v4199_v14  ;;  %v398_v17 = vrot.slane %v3967_v2, %v4349_v43 }
 0x105   :  { %v322_v54 = vmul.f32 %v4368_v46, %v311_v38  ;;  %v285_v43 = vrot.slane %v241_v52, %v4241_v29  ;;  %v270_v34 = vmul.f32 %v265_v50, %v4157_v60 }
 0x106   :  { %v4344_v53 = vpop.permute.xlu0 %946  ;;  %v4346_v58 = vpop.permute.xlu1 %574  ;;  %v224_v1 = vadd.f32 %v222_v7, %v208_v48  ;;  %v446_v48 = vrot.slane %v3967_v2, %v4241_v29 }
 0x107   :  { %6287 = vst [vmem:[#allocation36_spill] sm:$0xff] %v4344_v53  ;;  %v269_v53 = vrot.slane %v241_v52, %v4232_v39  ;;  %v287_v38 = vmul.f32 %v285_v43, %v4163_v62  ;;  %v334_v52 = vrot.slane %v322_v54, %v4199_v14  ;;  %v350_v43 = vrot.slane %v322_v54, %v4232_v39 }
 0x109   :  { %v271_v49 = vmul.f32 %v269_v53, %v4157_v60 }
 0x10a   :  { %v4382_v22 = vpop.permute.xlu1 %606 }
 0x10b   :  { %v4388_v44 = vpop.permute.xlu0 %243 }
 0x10c   :  { %6292 = vst [vmem:[#allocation41_spill] sm:$0xff] %v4388_v44  ;;  %v254_v47 = vmul.f32 %v249_v24, %v4388_v44  ;;  %v255_v36 = vmul.f32 %v253_v56, %v4388_v44  ;;  %v450_v56 = vrot.slane %v3967_v2, %v4357_v25  ;;  %v286_v24 = vmul.f32 %v281_v42, %v4163_v62 }
 0x10d   :  { %v346_v42 = vrot.slane %v321_v4, %v4232_v39  ;;  %v420_v62 = vrot.slane %v3967_v2, %v4232_v39 }
 0x10e   :  { %v256_v7 = vadd.f32 %v254_v47, %v223_v23  ;;  %v257_v31 = vadd.f32 %v255_v36, %v224_v1  ;;  %v302_v36 = vmul.f32 %v297_v0, %v4141_v55  ;;  %v303_v47 = vmul.f32 %v301_v45, %v4141_v55 }
 0x10f   :  { %v4406_v9 = vpop.permute.xlu1 %622  ;;  %v404_v23 = vrot.slane %v394_v12, %v4199_v14  ;;  %v408_v1 = vrot.slane %v398_v17, %v4199_v14  ;;  %v472_v0 = vrot.slane %v3967_v2, %v4271_v15  ;;  %v335_v12 = vmul.f32 %v330_v51, %v4147_v57 }
 0x110   :  { %v272_v50 = vadd.f32 %v270_v34, %v256_v7  ;;  %v273_v53 = vadd.f32 %v271_v49, %v257_v31  ;;  %v424_v34 = vrot.slane %v3967_v2, %v4352_v19  ;;  %v336_v17 = vmul.f32 %v334_v52, %v4147_v57 }
 0x111   :  { %v378_v31 = vrot.slane %v321_v4, %v4271_v15  ;;  %v352_v55 = vmul.f32 %v350_v43, %v4182_v6  ;;  %v456_v43 = vrot.slane %v446_v48, %v4241_v29 }
 0x112   :  { %v288_v46 = vadd.f32 %v286_v24, %v272_v50  ;;  %v289_v33 = vadd.f32 %v287_v38, %v273_v53  ;;  %v382_v24 = vrot.slane %v322_v54, %v4271_v15  ;;  %v362_v38 = vrot.slane %v321_v4, %v4241_v29 }
 0x113   :  { %v4423_v45 = vpop.permute.xlu1 %653  ;;  %v366_v50 = vrot.slane %v322_v54, %v4241_v29  ;;  %v351_v53 = vmul.f32 %v346_v42, %v4182_v6  ;;  %v496_v54 = vsel %vm495_vm4, %v4275_v26, %v4165_v63 }
 0x114   :  { %v304_v49 = vadd.f32 %v302_v36, %v288_v46  ;;  %v305_v7 = vadd.f32 %v303_v47, %v289_v33  ;;  %v367_v51 = vmul.f32 %v362_v38, %v4190_v10  ;;  %v4437_v33 = vrot.slane %v4201_v16, %v4352_v19 }
 0x115   :  { %v368_v52 = vmul.f32 %v366_v50, %v4190_v10  ;;  %v4441_v46 = vrot.slane %v4203_v18, %v4352_v19  ;;  %v497_v36 = vsel %vm495_vm4, %v4165_v63, %v4275_v26  ;;  %v384_v38 = vmul.f32 %v382_v24, %v4153_v59 }
 0x116   :  { %v337_v60 = vadd.f32 %v335_v12, %v304_v49  ;;  %v338_v44 = vadd.f32 %v336_v17, %v305_v7  ;;  %6293 = vst [vmem:[#allocation42_spill] sm:$0xff] %v4437_v33  ;;  %v430_v12 = vrot.slane %v420_v62, %v4232_v39  ;;  %v434_v17 = vrot.slane %v424_v34, %v4232_v39 }
 0x117   :  { %6294 = vst [vmem:[#allocation43_spill] sm:$0xff] %v4441_v46  ;;  %v4443_v4 = vpop.permute.xlu1 %655  ;;  %v476_v49 = vrot.slane %v3967_v2, %v4360_v27  ;;  %v383_v7 = vmul.f32 %v378_v31, %v4153_v59  ;;  %v460_v10 = vrot.slane %v450_v56, %v4241_v29  ;;  %v482_v26 = vrot.slane %v472_v0, %v4271_v15 }
 0x118   :  { %v353_v47 = vadd.f32 %v351_v53, %v337_v60  ;;  %v354_v42 = vadd.f32 %v352_v55, %v338_v44  ;;  %v506_v55 = vmul.f32 %v4437_v33, %v496_v54  ;;  %v507_v60 = vmul.f32 %v4441_v46, %v497_v36 }
 0x119   :  { %v409_v63 = vmul.f32 %v404_v23, %v4205_v20  ;;  %v410_v2 = vmul.f32 %v408_v1, %v4205_v20  ;;  %v486_v34 = vrot.slane %v476_v49, %v4271_v15  ;;  %v4472_v56 = vrot.slane %v4201_v16, %v4357_v25 }
 0x11a   :  { %v369_v50 = vadd.f32 %v367_v51, %v353_v47  ;;  %v370_v19 = vadd.f32 %v368_v52, %v354_v42  ;;  %v4476_v0 = vrot.slane %v4203_v18, %v4357_v25  ;;  %v435_v31 = vmul.f32 %v430_v12, %v4229_v41 }
 0x11b   :  { %v4464_v62 = vpop.permute.xlu1 %687  ;;  %6295 = vst [vmem:[#allocation44_spill] sm:$0xff] %v4472_v56  ;;  %v436_v23 = vmul.f32 %v434_v17, %v4229_v41  ;;  %v462_v53 = vmul.f32 %v460_v10, %v4159_v61  ;;  %v515_v51 = vrot.slane %v506_v55, %v4199_v14  ;;  %v519_v52 = vrot.slane %v507_v60, %v4199_v14 }
 0x11c   :  { %v385_v44 = vadd.f32 %v383_v7, %v369_v50  ;;  %v386_v48 = vadd.f32 %v384_v38, %v370_v19  ;;  %6296 = vst [vmem:[#allocation45_spill] sm:$0xff] %v4476_v0  ;;  %v461_v19 = vmul.f32 %v456_v43, %v4159_v61  ;;  %v577_v54 = vsel %vm576_vm5, %v4178_v5, %v4346_v58 }
 0x11d   :  { %v578_v36 = vsel %vm576_vm5, %v4346_v58, %v4178_v5  ;;  %v487_v10 = vmul.f32 %v482_v26, %v4244_v40  ;;  %v488_v43 = vmul.f32 %v486_v34, %v4244_v40  ;;  %v531_v17 = vrot.slane %v506_v55, %v4232_v39 }
 0x11e   :  { %v411_v24 = vadd.f32 %v409_v63, %v385_v44  ;;  %v412_v1 = vadd.f32 %v410_v2, %v386_v48  ;;  %v535_v49 = vrot.slane %v507_v60, %v4232_v39  ;;  %v587_v50 = vmul.f32 %v4472_v56, %v577_v54 }
 0x11f   :  { %v588_v5 = vmul.f32 %v4476_v0, %v578_v36  ;;  %v4503_v58 = vrot.slane %v4201_v16, %v4360_v27  ;;  %v4507_v26 = vrot.slane %v4203_v18, %v4360_v27  ;;  %v520_v63 = vmul.f32 %v515_v51, %v4288_v32 }
 0x120   :  { %v437_v47 = vadd.f32 %v435_v31, %v411_v24  ;;  %v438_v42 = vadd.f32 %v436_v23, %v412_v1  ;;  %v4492_v12 = vpop.permute.xlu1 %703  ;;  %v521_v2 = vmul.f32 %v519_v52, %v4288_v32  ;;  %v547_v31 = vrot.slane %v506_v55, %v4241_v29 }
 0x121   :  { %6297 = vst [vmem:[#allocation46_spill] sm:$0xff] %v4503_v58  ;;  %6298 = vst [vmem:[#allocation47_spill] sm:$0xff] %v4507_v26  ;;  %v551_v23 = vrot.slane %v507_v60, %v4241_v29  ;;  %v563_v24 = vrot.slane %v506_v55, %v4271_v15  ;;  %v567_v16 = vrot.slane %v507_v60, %v4271_v15 }
 0x122   :  { %v463_v7 = vadd.f32 %v461_v19, %v437_v47  ;;  %v464_v38 = vadd.f32 %v462_v53, %v438_v42  ;;  %v536_v1 = vmul.f32 %v531_v17, %v4172_v3  ;;  %v537_v18 = vmul.f32 %v535_v49, %v4172_v3 }
 0x123   :  { %v552_v51 = vmul.f32 %v547_v31, %v4304_v21  ;;  %v553_v52 = vmul.f32 %v551_v23, %v4304_v21  ;;  %v596_v54 = vrot.slane %v587_v50, %v4199_v14  ;;  %v600_v36 = vrot.slane %v588_v5, %v4199_v14 }
 0x124   :  { %v489_v44 = vadd.f32 %v487_v10, %v463_v7  ;;  %v490_v48 = vadd.f32 %v488_v43, %v464_v38  ;;  %v735_v34 = vpop.permute.xlu1 %734  ;;  %v658_v55 = vsel %vm657_vm6, %v4423_v45, %v4443_v4  ;;  %v659_v60 = vsel %vm657_vm6, %v4443_v4, %v4423_v45 }
 0x125   :  { %v568_v43 = vmul.f32 %v563_v24, %v4323_v28  ;;  %v569_v17 = vmul.f32 %v567_v16, %v4323_v28  ;;  %v612_v38 = vrot.slane %v587_v50, %v4232_v39  ;;  %v601_v45 = vmul.f32 %v596_v54, %v4184_v8 }
 0x126   :  { %v522_v19 = vadd.f32 %v520_v63, %v489_v44  ;;  %v523_v53 = vadd.f32 %v521_v2, %v490_v48  ;;  %v616_v63 = vrot.slane %v588_v5, %v4232_v39  ;;  %v668_v2 = vmul.f32 %v4503_v58, %v658_v55 }
 0x127   :  { %v669_v44 = vmul.f32 %v4507_v26, %v659_v60  ;;  %v602_v4 = vmul.f32 %v600_v36, %v4184_v8  ;;  %v644_v24 = vrot.slane %v587_v50, %v4271_v15  ;;  %v648_v16 = vrot.slane %v588_v5, %v4271_v15 }
 0x128   :  { %v538_v47 = vadd.f32 %v536_v1, %v522_v19  ;;  %v539_v42 = vadd.f32 %v537_v18, %v523_v53  ;;  %v737_v10 = vpop.permute.xlu1 %736  ;;  %v628_v1 = vrot.slane %v587_v50, %v4241_v29  ;;  %v632_v18 = vrot.slane %v588_v5, %v4241_v29 }
 0x129   :  { %v677_v54 = vrot.slane %v668_v2, %v4199_v14  ;;  %v681_v36 = vrot.slane %v669_v44, %v4199_v14  ;;  %v649_v50 = vmul.f32 %v644_v24, %v4194_v13  ;;  %v650_v5 = vmul.f32 %v648_v16, %v4194_v13 }
 0x12a   :  { %v554_v49 = vadd.f32 %v552_v51, %v538_v47  ;;  %v555_v7 = vadd.f32 %v553_v52, %v539_v42  ;;  %v617_v51 = vmul.f32 %v612_v38, %v4382_v22  ;;  %v618_v52 = vmul.f32 %v616_v63, %v4382_v22 }
 0x12b   :  { %v633_v55 = vmul.f32 %v628_v1, %v4406_v9  ;;  %v634_v60 = vmul.f32 %v632_v18, %v4406_v9  ;;  %v683_v24 = vmul.f32 %v681_v36, %v4210_v35 }
 0x12c   :  { %v570_v48 = vadd.f32 %v568_v43, %v554_v49  ;;  %v571_v31 = vadd.f32 %v569_v17, %v555_v7  ;;  %v4538_v23 = vpop.permute.xlu1 %768  ;;  %v4552_v43 = vld [vmem:[#allocation2 + $0x10] ss:$0 sm:$0xff]  ;;  %v4554_v17 = vld [vmem:[#allocation2 + $0x18] ss:$0 sm:$0xff]  ;;  %v739_v49 = vsel %vm738_vm7, %v735_v34, %v737_v10  ;;  %v740_v7 = vsel %vm738_vm7, %v737_v10, %v735_v34 }
 0x12d   :  { %6299 = vst [vmem:[#allocation48_spill] sm:$0xff] %v4538_v23  ;;  %6300 = vst [vmem:[#allocation49_spill] sm:$0xff] %v4552_v43  ;;  %v749_v18 = vmul.f32 %v4552_v43, %v739_v49  ;;  %v725_v34 = vrot.slane %v668_v2, %v4271_v15  ;;  %v729_v10 = vrot.slane %v669_v44, %v4271_v15 }
 0x12e   :  { %v603_v19 = vadd.f32 %v601_v45, %v570_v48  ;;  %v604_v53 = vadd.f32 %v602_v4, %v571_v31  ;;  %6301 = vst [vmem:[#allocation50_spill] sm:$0xff] %v4554_v17  ;;  %v693_v48 = vrot.slane %v668_v2, %v4232_v39  ;;  %v697_v31 = vrot.slane %v669_v44, %v4232_v39 }
 0x12f   :  { %v682_v4 = vmul.f32 %v677_v54, %v4210_v35  ;;  %v758_v49 = vrot.slane %v749_v18, %v4199_v14 }
 0x130   :  { %v619_v47 = vadd.f32 %v617_v51, %v603_v19  ;;  %v620_v42 = vadd.f32 %v618_v52, %v604_v53  ;;  %v750_v19 = vmul.f32 %v4554_v17, %v740_v7  ;;  %v709_v53 = vrot.slane %v668_v2, %v4241_v29 }
 0x131   :  { %v4562_v45 = vpop.permute.xlu1 %784  ;;  %v713_v51 = vrot.slane %v669_v44, %v4241_v29  ;;  %v698_v54 = vmul.f32 %v693_v48, %v4464_v62  ;;  %v699_v36 = vmul.f32 %v697_v31, %v4464_v62  ;;  %v774_v44 = vrot.slane %v749_v18, %v4232_v39 }
 0x132   :  { %v635_v38 = vadd.f32 %v633_v55, %v619_v47  ;;  %v636_v63 = vadd.f32 %v634_v60, %v620_v42  ;;  %6302 = vst [vmem:[#allocation51_spill] sm:$0xff] %v4562_v45  ;;  %v714_v55 = vmul.f32 %v709_v53, %v4492_v12  ;;  %v762_v2 = vrot.slane %v750_v19, %v4199_v14 }
 0x133   :  { %v715_v60 = vmul.f32 %v713_v51, %v4492_v12  ;;  %v778_v7 = vrot.slane %v750_v19, %v4232_v39  ;;  %v730_v48 = vmul.f32 %v725_v34, %v4236_v37  ;;  %v731_v31 = vmul.f32 %v729_v10, %v4236_v37 }
 0x134   :  { %v651_v16 = vadd.f32 %v649_v50, %v635_v38  ;;  %v652_v1 = vadd.f32 %v650_v5, %v636_v63  ;;  %v790_v10 = vrot.slane %v749_v18, %v4241_v29 }
 0x136   :  { %v684_v52 = vadd.f32 %v682_v4, %v651_v16  ;;  %v685_v47 = vadd.f32 %v683_v24, %v652_v1  ;;  %v4574_v42 = vpop.permute.xlu1 %817  ;;  %v6304_v1 = vld [vmem:[#allocation30_spill] sm:$0xff] }
 0x137   :  { %6303 = vst [vmem:[#allocation52_spill] sm:$0xff] %v4574_v42  ;;  %v763_v53 = vmul.f32 %v758_v49, %v6304_v1  ;;  %v764_v51 = vmul.f32 %v762_v2, %v6304_v1  ;;  %v795_v2 = vmul.f32 %v790_v10, %v4562_v45 }
 0x138   :  { %v700_v50 = vadd.f32 %v698_v54, %v684_v52  ;;  %v701_v5 = vadd.f32 %v699_v36, %v685_v47  ;;  %v806_v52 = vrot.slane %v749_v18, %v4271_v15  ;;  %v810_v47 = vrot.slane %v750_v19, %v4271_v15 }
 0x139   :  { %v779_v54 = vmul.f32 %v774_v44, %v4538_v23  ;;  %v780_v36 = vmul.f32 %v778_v7, %v4538_v23  ;;  %v6316_v23 = vld [vmem:[#allocation16_spill] sm:$0xff] }
 0x13a   :  { %v716_v38 = vadd.f32 %v714_v55, %v700_v50  ;;  %v717_v63 = vadd.f32 %v715_v60, %v701_v5  ;;  %v4584_v4 = vpop.permute.xlu1 %834  ;;  %v794_v60 = vrot.slane %v750_v19, %v4241_v29  ;;  %v811_v44 = vmul.f32 %v806_v52, %v4286_v30 }
 0x13b   :  { %v812_v7 = vmul.f32 %v810_v47, %v4286_v30  ;;  %v6309_v47 = vld [vmem:[#allocation11_spill] sm:$0xff] }
 0x13c   :  { %v732_v24 = vadd.f32 %v730_v48, %v716_v38  ;;  %v733_v16 = vadd.f32 %v731_v31, %v717_v63  ;;  %v796_v38 = vmul.f32 %v794_v60, %v4562_v45  ;;  %v6310_v60 = vmov 16  }
 0x13e   :  { %v765_v55 = vadd.f32 %v763_v53, %v732_v24  ;;  %v766_v34 = vadd.f32 %v764_v51, %v733_v16 }
 0x13f   :  { %v4594_v50 = vpop.permute.xlu1 %866 }
 0x140   :  { %v781_v5 = vadd.f32 %v779_v54, %v765_v55  ;;  %v782_v49 = vadd.f32 %v780_v36, %v766_v34  ;;  %v2058_v36 = vpop.permute.xlu0 %2057 }
 0x142   :  { %v797_v63 = vadd.f32 %v795_v2, %v781_v5  ;;  %v798_v48 = vadd.f32 %v796_v38, %v782_v49  ;;  %v6311_v5 = vld [vmem:[#allocation26_spill] sm:$0xff]  ;;  %v6312_v2 = vld [vmem:[#allocation27_spill] sm:$0xff] }
 0x144   :  { %v813_v31 = vadd.f32 %v811_v44, %v797_v63  ;;  %v814_v24 = vadd.f32 %v812_v7, %v798_v48  ;;  %v4600_v16 = vpop.permute.xlu1 %882  ;;  %v2112_v45 = vpop.permute.xlu0 %2111 }
 0x146   :  { %v820_v18 = vadd.f32 %v4574_v42, %v813_v31  ;;  %v821_v19 = vadd.f32 %v4574_v42, %v814_v24 }
 0x148   :  { %v4604_v53 = vmax.f32 %v820_v18, 0.0  ;;  %v4606_v51 = vmax.f32 %v821_v19, 0.0 }
 0x149   :  { %v4608_v54 = vpop.permute.xlu1 %914 }
 0x14a   :  { %6305 = vst [vmem:[#allocation53_spill] sm:$0xff] %v4604_v53  ;;  %6306 = vst [vmem:[#allocation54_spill] sm:$0xff] %v4606_v51  ;;  %826 = vrot.lane.b32.xlu0 %v4606_v51, %s3827_s3  ;;  %824 = vrot.lane.b32.xlu1 %v4604_v53, %s3827_s3 }
 0x14b   :  { %6307 = vst [vmem:[#allocation55_spill] sm:$0xff] %v4608_v54 }
 0x14e   :  { %v4614_v52 = vpop.permute.xlu1 %930  ;;  %1082 = vperm.xlu0 %3684, %v6309_v47   ;;  %961 = vrot.lane.b32.xlu1 %v4604_v53, %s3823_s29 }
 0x14f   :  { %6308 = vst [vmem:[#allocation56_spill] sm:$0xff] %v4614_v52 }
 0x152   :  { %v2056_v55 = vpop.permute.xlu1 %2055  ;;  %1097 = vrot.lane.b32.xlu0 %v4604_v53, %s3832_s2  ;;  %963 = vrot.lane.b32.xlu1 %v4606_v51, %s3823_s29 }
 0x153   :  { %v2059_v34 = vsel %vm66_vm0, %v2056_v55, %v2058_v36  ;;  %v2060_v10 = vsel %vm66_vm0, %v2058_v36, %v2056_v55  ;;  %3685 = vset.pattern.permute.xlu0 %v6310_v60  ;;  %v6313_v36 = vld [vmem:[#allocation12_spill] sm:$0xff]  ;;  %v6314_v55 = vld [vmem:[#allocation14_spill] sm:$0xff]  ;;  %v6315_v60 = vld [vmem:[#allocation15_spill] sm:$0xff] }
 0x154   :  { %v2061_v49 = vmul.f32 %v2060_v10, %v6311_v5  ;;  %v2062_v38 = vmul.f32 %v2059_v34, %v6312_v2 }
 0x156   :  { %v2066_v63 = vrot.slane %v2061_v49, %v4199_v14  ;;  %v2070_v48 = vrot.slane %v2062_v38, %v4199_v14  ;;  %v2078_v44 = vrot.slane %v2061_v49, %v4232_v39  ;;  %v2082_v7 = vrot.slane %v2062_v38, %v4232_v39  ;;  %v2114_v31 = vpop.permute.xlu1 %2113  ;;  %1106 = vperm.xlu0 %3685, %v6309_v47  }
 0x157   :  { %v2090_v24 = vrot.slane %v2061_v49, %v4241_v29  ;;  %v2094_v18 = vrot.slane %v2062_v38, %v4241_v29  ;;  %v2102_v19 = vrot.slane %v2061_v49, %v4271_v15  ;;  %2535 = vrot.lane.b32.xlu1 %v6313_v36, %s3865_s30  ;;  %v2106_v43 = vrot.slane %v2062_v38, %v4271_v15 }
 0x158   :  { %v2071_v34 = vmul.f32 %v2066_v63, %v6314_v55  ;;  %v2072_v10 = vmul.f32 %v2070_v48, %v6314_v55  ;;  %v2083_v42 = vmul.f32 %v2078_v44, %v6315_v60  ;;  %v2084_v30 = vmul.f32 %v2082_v7, %v6315_v60  ;;  %v6318_v44 = vld [vmem:[#allocation28_spill] sm:$0xff]  ;;  %v6319_v60 = vld [vmem:[#allocation29_spill] sm:$0xff] }
 0x159   :  { %v2095_v1 = vmul.f32 %v2090_v24, %v6316_v23  ;;  %v2096_v17 = vmul.f32 %v2094_v18, %v6316_v23  ;;  %v2115_v36 = vsel %vm148_vm1, %v2112_v45, %v2114_v31  ;;  %v2116_v63 = vsel %vm148_vm1, %v2114_v31, %v2112_v45  ;;  %v6320_v24 = vld [vmem:[#allocation13_spill] sm:$0xff] }
 0x15a   :  { %v2085_v52 = vadd.f32 %v2083_v42, %v2071_v34  ;;  %v2086_v49 = vadd.f32 %v2084_v30, %v2072_v10  ;;  %v2168_v48 = vpop.permute.xlu1 %2167  ;;  %v6317_v55 = vmov 19   ;;  %v2117_v7 = vmul.f32 %v2116_v63, %v6318_v44  ;;  %v6321_v42 = vld [vmem:[#allocation17_spill] sm:$0xff] }
 0x15b   :  { %3688 = vset.pattern.permute.xlu0 %v6317_v55  ;;  %v2118_v54 = vmul.f32 %v2115_v36, %v6319_v60  ;;  %2537 = vrot.lane.b32.xlu1 %v6320_v24, %s3865_s30  ;;  %v2107_v38 = vmul.f32 %v2102_v19, %v6321_v42  ;;  %v2108_v18 = vmul.f32 %v2106_v43, %v6321_v42  ;;  %v6322_v36 = vld [vmem:[#allocation19_spill] sm:$0xff]  ;;  %v6324_v19 = vld [vmem:[#allocation18_spill] sm:$0xff] }
 0x15c   :  { %1154 = vperm.xlu0 %3688, %v6309_v47   ;;  %v2097_v23 = vadd.f32 %v2095_v1, %v2085_v52  ;;  %v2098_v30 = vadd.f32 %v2096_v17, %v2086_v49  ;;  %v2122_v45 = vrot.slane %v2117_v7, %v4199_v14  ;;  %v2134_v34 = vrot.slane %v2117_v7, %v4232_v39 }
 0x15d   :  { %v2126_v31 = vrot.slane %v2118_v54, %v4199_v14  ;;  %v2138_v17 = vrot.slane %v2118_v54, %v4232_v39  ;;  %v6323_v1 = vmov 22   ;;  %v2146_v24 = vrot.slane %v2117_v7, %v4241_v29 }
 0x15e   :  { %v2109_v10 = vadd.f32 %v2107_v38, %v2097_v23  ;;  %v2110_v63 = vadd.f32 %v2108_v18, %v2098_v30  ;;  %v2127_v55 = vmul.f32 %v2122_v45, %v6322_v36  ;;  %v2170_v60 = vpop.permute.xlu1 %2169  ;;  %v2139_v49 = vmul.f32 %v2134_v34, %v6324_v19  ;;  %v6325_v45 = vld [vmem:[#allocation20_spill] sm:$0xff]  ;;  %v6326_v34 = vld [vmem:[#allocation34_spill] sm:$0xff] }
 0x15f   :  { %1099 = vrot.lane.b32.xlu1 %v4606_v51, %s3832_s2  ;;  %v2128_v43 = vmul.f32 %v2126_v31, %v6322_v36  ;;  %v2172_v23 = vsel %vm229_vm2, %v2170_v60, %v2168_v48  ;;  %v2150_v38 = vrot.slane %v2118_v54, %v4241_v29  ;;  %v2140_v18 = vmul.f32 %v2138_v17, %v6324_v19  ;;  %v6329_v19 = vld [vmem:[#allocation22_spill] sm:$0xff] }
 0x160   :  { %3691 = vset.pattern.permute.xlu0 %v6323_v1  ;;  %v2129_v52 = vadd.f32 %v2127_v55, %v2109_v10  ;;  %v2151_v31 = vmul.f32 %v2146_v24, %v6325_v45  ;;  %v2158_v10 = vrot.slane %v2117_v7, %v4271_v15  ;;  %v2173_v36 = vmul.f32 %v2172_v23, %v6326_v34  ;;  %v6330_v24 = vld [vmem:[#allocation35_spill] sm:$0xff] }
 0x161   :  { %1202 = vperm.xlu0 %3691, %v6309_v47   ;;  %v2130_v30 = vadd.f32 %v2128_v43, %v2110_v63  ;;  %v2171_v55 = vsel %vm229_vm2, %v2168_v48, %v2170_v60  ;;  %v6327_v63 = vmov 25   ;;  %v6328_v43 = vmov 18  }
 0x162   :  { %v2141_v42 = vadd.f32 %v2139_v49, %v2129_v52  ;;  %v2152_v17 = vmul.f32 %v2150_v38, %v6325_v45  ;;  %v4686_v52 = vld [vmem:[#allocation5] sm:$0xff]  ;;  %v2162_v7 = vrot.slane %v2118_v54, %v4271_v15  ;;  %v2163_v49 = vmul.f32 %v2158_v10, %v6329_v19  ;;  %v2224_v60 = vpop.permute.xlu1 %2223 }
 0x163   :  { %1122 = vperm.xlu1 %3686, %v6309_v47   ;;  %v2142_v1 = vadd.f32 %v2140_v18, %v2130_v30  ;;  %v2174_v23 = vmul.f32 %v2171_v55, %v6330_v24  ;;  %v2178_v48 = vrot.slane %v2173_v36, %v4199_v14  ;;  %v6331_v18 = vmov 20  }
 0x164   :  { %v2153_v47 = vadd.f32 %v2151_v31, %v2141_v42  ;;  %v2164_v38 = vmul.f32 %v2162_v7, %v6329_v19  ;;  %v6332_v31 = vld [vmem:[#allocation41_spill] sm:$0xff]  ;;  %v2190_v54 = vrot.slane %v2173_v36, %v4232_v39  ;;  %v6333_v10 = vmov 28  }
 0x165   :  { %1235 = vrot.lane.b32.xlu0 %v4606_v51, %s3843_s23  ;;  %v2154_v30 = vadd.f32 %v2152_v17, %v2142_v1  ;;  %v2182_v45 = vrot.slane %v2174_v23, %v4199_v14  ;;  %v6334_v17 = vld [vmem:[#allocation23_spill] sm:$0xff]  ;;  %v2202_v19 = vrot.slane %v2173_v36, %v4241_v29  ;;  %v2218_v34 = vrot.slane %v2174_v23, %v4271_v15 }
 0x166   :  { %3694 = vset.pattern.permute.xlu0 %v6327_v63  ;;  %v2165_v42 = vadd.f32 %v2163_v49, %v2153_v47  ;;  %v2183_v63 = vmul.f32 %v2178_v48, %v6332_v31  ;;  %v2226_v51 = vpop.permute.xlu1 %2225  ;;  %v2194_v47 = vrot.slane %v2174_v23, %v4232_v39  ;;  %v2195_v7 = vmul.f32 %v2190_v54, %v6334_v17  ;;  %v6338_v54 = vld [vmem:[#allocation39_spill] sm:$0xff] }
 0x167   :  { %3687 = vset.pattern.permute.xlu1 %v6328_v43  ;;  %v2166_v55 = vadd.f32 %v2164_v38, %v2154_v30  ;;  %v2184_v1 = vmul.f32 %v2182_v45, %v6332_v31  ;;  %v2228_v49 = vsel %vm310_vm3, %v2226_v51, %v2224_v60  ;;  %v6335_v48 = vmov 21   ;;  %v6337_v45 = vld [vmem:[#allocation24_spill] sm:$0xff] }
 0x168   :  { %1138 = vperm.xlu1 %3687, %v4686_v52   ;;  %v2185_v43 = vadd.f32 %v2183_v63, %v2165_v42  ;;  %v6336_v30 = vmov 31   ;;  %v2206_v42 = vrot.slane %v2174_v23, %v4241_v29  ;;  %v2196_v38 = vmul.f32 %v2194_v47, %v6334_v17  ;;  %v6341_v47 = vld [vmem:[#allocation21_spill] sm:$0xff] }
 0x169   :  { %1258 = vperm.xlu0 %3694, %v4686_v52   ;;  %v2207_v31 = vmul.f32 %v2202_v19, %v6337_v45  ;;  %v2214_v63 = vrot.slane %v2173_v36, %v4271_v15  ;;  %v2229_v24 = vmul.f32 %v2228_v49, %v6338_v54  ;;  %v6342_v19 = vld [vmem:[#allocation40_spill] sm:$0xff]  ;;  %v2220_v49 = vmul.f32 %v2218_v34, %v6341_v47 }
 0x16b   :  { %v2219_v17 = vmul.f32 %v2214_v63, %v6341_v47  ;;  %v2234_v36 = vrot.slane %v2229_v24, %v4199_v14  ;;  %v2246_v23 = vrot.slane %v2229_v24, %v4232_v39  ;;  %v4745_v47 = vpop.permute.xlu1 %1018 }
 0x16c   :  { %3689 = vset.pattern.permute.xlu1 %v6331_v18  ;;  %v2186_v18 = vadd.f32 %v2184_v1, %v2166_v55  ;;  %v2227_v55 = vsel %vm310_vm3, %v2224_v60, %v2226_v51  ;;  %6346 = vst [vmem:[#allocation26_spill] sm:$0xff] %v4745_v47 }
 0x16d   :  { %3697 = vset.pattern.permute.xlu0 %v6333_v10  ;;  %1170 = vperm.xlu1 %3689, %v4686_v52   ;;  %v2197_v10 = vadd.f32 %v2195_v7, %v2185_v43  ;;  %v6339_v7 = vmov 23   ;;  %v2230_v44 = vmul.f32 %v2227_v55, %v6342_v19 }
 0x16e   :  { %1306 = vperm.xlu0 %3697, %v4686_v52   ;;  %v2198_v43 = vadd.f32 %v2196_v38, %v2186_v18  ;;  %v6344_v38 = vmov 35  }
 0x16f   :  { %v2209_v1 = vadd.f32 %v2207_v31, %v2197_v10  ;;  %v2238_v18 = vrot.slane %v2230_v44, %v4199_v14  ;;  %v2239_v10 = vmul.f32 %v2234_v36, %v4147_v57  ;;  %v2250_v34 = vrot.slane %v2230_v44, %v4232_v39 }
 0x171   :  { %3690 = vset.pattern.permute.xlu1 %v6335_v48  ;;  %v2208_v48 = vmul.f32 %v2206_v42, %v6337_v45  ;;  %v2221_v60 = vadd.f32 %v2219_v17, %v2209_v1  ;;  %v6343_v42 = vmov 24   ;;  %v4736_v45 = vpop.permute.xlu0 %970  ;;  %v2240_v55 = vmul.f32 %v2238_v18, %v4147_v57  ;;  %v3745_v17 = vld [vmem:[%s6131_s0 + $0x8] sm:$0xff] }
 0x172   :  { %3700 = vset.pattern.permute.xlu0 %v6336_v30  ;;  %1186 = vperm.xlu1 %3690, %v4686_v52   ;;  %v6340_v30 = vmov 32   ;;  %v2258_v1 = vrot.slane %v2229_v24, %v4241_v29  ;;  %v2282_v57 = vrot.slane %v3745_v17, %v4199_v14  ;;  %v2252_v36 = vmul.f32 %v2250_v34, %v4182_v6 }
 0x173   :  { %1354 = vperm.xlu0 %3700, %v4686_v52   ;;  %v2210_v51 = vadd.f32 %v2208_v48, %v2198_v43  ;;  %v2241_v63 = vadd.f32 %v2239_v10, %v2221_v60  ;;  %v2251_v43 = vmul.f32 %v2246_v23, %v4182_v6  ;;  %v6347_v60 = vld [vmem:[#allocation25_spill] sm:$0xff]  ;;  %v2270_v18 = vrot.slane %v2229_v24, %v4271_v15  ;;  %v4765_v24 = vpop.permute.xlu1 %1034 }
 0x174   :  { %v6348_v10 = vmov 26   ;;  %v2274_v34 = vrot.slane %v2230_v44, %v4271_v15 }
 0x175   :  { %v2222_v31 = vadd.f32 %v2220_v49, %v2210_v51  ;;  %v2253_v48 = vadd.f32 %v2251_v43, %v2241_v63  ;;  %v2262_v51 = vrot.slane %v2230_v44, %v4241_v29  ;;  %v2263_v49 = vmul.f32 %v2258_v1, %v6347_v60 }
 0x176   :  { %3692 = vset.pattern.permute.xlu1 %v6339_v7  ;;  %v2292_v63 = vrot.slane %v2282_v57, %v4199_v14  ;;  %v2275_v43 = vmul.f32 %v2270_v18, %v4153_v59  ;;  %v2326_v57 = vrot.slane %v3745_v17, %v4241_v29  ;;  %v2276_v18 = vmul.f32 %v2274_v34, %v4153_v59 }
 0x177   :  { %3701 = vset.pattern.permute.xlu0 %v6340_v30  ;;  %1218 = vperm.xlu1 %3692, %v4686_v52   ;;  %v2242_v7 = vadd.f32 %v2240_v55, %v2222_v31  ;;  %v4743_v30 = vpop.permute.xlu0 %986  ;;  %v2304_v55 = vrot.slane %v3745_v17, %v4232_v39  ;;  %v2264_v6 = vmul.f32 %v2262_v51, %v6347_v60  ;;  %v6352_v60 = vld [vmem:[#allocation38_spill] sm:$0xff] }
 0x178   :  { %1370 = vperm.xlu0 %3701, %v4686_v52   ;;  %6345 = vst [vmem:[#allocation11_spill] sm:$0xff] %v4743_v30  ;;  %v2297_v51 = vmul.f32 %v2292_v63, %v4205_v20  ;;  %v2308_v44 = vrot.slane %v3745_v17, %v6352_v60  ;;  %v2348_v59 = vrot.slane %v3745_v17, %v4271_v15 }
 0x179   :  { %v2254_v23 = vadd.f32 %v2252_v36, %v2242_v7 }
 0x17a   :  { %v2318_v63 = vrot.slane %v2308_v44, %v4232_v39 }
 0x17b   :  { %1233 = vrot.lane.b32.xlu1 %v4604_v53, %s3843_s23  ;;  %v4763_v1 = vpop.permute.xlu0 %1002  ;;  %v2266_v7 = vadd.f32 %v2264_v6, %v2254_v23  ;;  %v6353_v23 = vmov 29   ;;  %v2336_v6 = vrot.slane %v2326_v57, %v4241_v29  ;;  %v6354_v57 = vmov 30  }
 0x17c   :  { %3693 = vset.pattern.permute.xlu1 %v6343_v42  ;;  %3704 = vset.pattern.permute.xlu0 %v6344_v38  ;;  %v2265_v42 = vadd.f32 %v2263_v49, %v2253_v48  ;;  %v6349_v38 = vld [vmem:[#allocation37_spill] sm:$0xff]  ;;  %6350 = vst [vmem:[#allocation27_spill] sm:$0xff] %v4763_v1  ;;  %v2314_v49 = vrot.slane %v2304_v55, %v4232_v39 }
 0x17d   :  { %v2286_v31 = vrot.slane %v3745_v17, %v6349_v38  ;;  %v2278_v53 = vadd.f32 %v2276_v18, %v2266_v7  ;;  %v2341_v18 = vmul.f32 %v2336_v6, %v4159_v61 }
 0x17e   :  { %v2277_v48 = vadd.f32 %v2275_v43, %v2265_v42  ;;  %v2330_v42 = vrot.slane %v3745_v17, %v4357_v25  ;;  %v2319_v55 = vmul.f32 %v2314_v49, %v4229_v41 }
 0x17f   :  { %1242 = vperm.xlu1 %3693, %v4686_v52   ;;  %v2296_v36 = vrot.slane %v2286_v31, %v4199_v14  ;;  %v2368_v54 = vpop.permute.xlu0 %2367 }
 0x180   :  { %v2299_v19 = vadd.f32 %v2297_v51, %v2277_v48  ;;  %v2340_v48 = vrot.slane %v2330_v42, %v4241_v29  ;;  %v2352_v51 = vrot.slane %v3745_v17, %v4360_v27 }
 0x181   :  { %v2298_v31 = vmul.f32 %v2296_v36, %v4205_v20  ;;  %v2320_v20 = vmul.f32 %v2318_v63, %v4229_v41  ;;  %v2358_v36 = vrot.slane %v2348_v59, %v4271_v15  ;;  %v6355_v63 = vmov 33  }
 0x182   :  { %v2321_v7 = vadd.f32 %v2319_v55, %v2299_v19  ;;  %v2342_v17 = vmul.f32 %v2340_v48, %v4159_v61 }
 0x183   :  { %3695 = vset.pattern.permute.xlu1 %v6348_v10  ;;  %v6351_v10 = vmov 27   ;;  %v2300_v43 = vadd.f32 %v2298_v31, %v2278_v53  ;;  %v2363_v42 = vmul.f32 %v2358_v36, %v4244_v40 }
 0x184   :  { %1274 = vperm.xlu1 %3695, %v4686_v52   ;;  %v2343_v49 = vadd.f32 %v2341_v18, %v2321_v7 }
 0x185   :  { %v2322_v19 = vadd.f32 %v2320_v20, %v2300_v43 }
 0x186   :  { %v2365_v59 = vadd.f32 %v2363_v42, %v2343_v49 }
 0x187   :  { %v2344_v55 = vadd.f32 %v2342_v17, %v2322_v19 }
 0x188   :  { %3696 = vset.pattern.permute.xlu1 %v6351_v10  ;;  %v2370_v10 = vpop.permute.xlu1 %2369 }
 0x189   :  { %1290 = vperm.xlu1 %3696, %v4686_v52   ;;  %v2371_v34 = vsel %vm495_vm4, %v2368_v54, %v2370_v10  ;;  %v2372_v53 = vsel %vm495_vm4, %v2370_v10, %v2368_v54 }
 0x18a   :  { %v2373_v44 = vmul.f32 %v2371_v34, %v4437_v33  ;;  %v2374_v6 = vmul.f32 %v2372_v53, %v4441_v46  ;;  %v6368_v33 = vld [vmem:[#allocation31_spill] sm:$0xff] }
 0x18c   :  { %v2378_v41 = vrot.slane %v2373_v44, %v4199_v14  ;;  %v2424_v31 = vpop.permute.xlu1 %2423  ;;  %v2382_v54 = vrot.slane %v2374_v6, %v4199_v14  ;;  %v2390_v43 = vrot.slane %v2373_v44, %v4232_v39  ;;  %v2402_v20 = vrot.slane %v2373_v44, %v4241_v29 }
 0x18d   :  { %3698 = vset.pattern.permute.xlu1 %v6353_v23  ;;  %v2362_v23 = vrot.slane %v2352_v51, %v4271_v15  ;;  %v2406_v19 = vrot.slane %v2374_v6, %v4241_v29  ;;  %v2414_v17 = vrot.slane %v2373_v44, %v4271_v15 }
 0x18e   :  { %1322 = vperm.xlu1 %3698, %v4686_v52   ;;  %v2383_v10 = vmul.f32 %v2378_v41, %v4288_v32  ;;  %v2384_v51 = vmul.f32 %v2382_v54, %v4288_v32  ;;  %v2395_v18 = vmul.f32 %v2390_v43, %v4172_v3 }
 0x18f   :  { %v2364_v34 = vmul.f32 %v2362_v23, %v4244_v40  ;;  %v2407_v23 = vmul.f32 %v2402_v20, %v4304_v21  ;;  %v2419_v54 = vmul.f32 %v2414_v17, %v4323_v28  ;;  %v4829_v20 = vpop.permute.xlu0 %1050 }
 0x190   :  { %v2385_v7 = vadd.f32 %v2383_v10, %v2365_v59  ;;  %v2426_v48 = vpop.permute.xlu1 %2425 }
 0x191   :  { %v2366_v61 = vadd.f32 %v2364_v34, %v2344_v55  ;;  %v2427_v40 = vsel %vm576_vm5, %v2424_v31, %v2426_v48  ;;  %v2428_v42 = vsel %vm576_vm5, %v2426_v48, %v2424_v31  ;;  %v2408_v55 = vmul.f32 %v2406_v19, %v4304_v21 }
 0x192   :  { %3699 = vset.pattern.permute.xlu1 %v6354_v57  ;;  %v2394_v57 = vrot.slane %v2374_v6, %v4232_v39  ;;  %v2397_v53 = vadd.f32 %v2395_v18, %v2385_v7  ;;  %v2429_v32 = vmul.f32 %v2427_v40, %v4472_v56  ;;  %v2418_v34 = vrot.slane %v2374_v6, %v4271_v15 }
 0x193   :  { %1338 = vperm.xlu1 %3699, %v4686_v52   ;;  %v2386_v36 = vadd.f32 %v2384_v51, %v2366_v61 }
 0x194   :  { %v2396_v49 = vmul.f32 %v2394_v57, %v4172_v3  ;;  %v2480_v59 = vpop.permute.xlu1 %2479  ;;  %v2430_v3 = vmul.f32 %v2428_v42, %v4476_v0  ;;  %v2434_v10 = vrot.slane %v2429_v32, %v4199_v14  ;;  %v2420_v61 = vmul.f32 %v2418_v34, %v4323_v28  ;;  %v6367_v0 = vld [vmem:[#allocation51_spill] sm:$0xff] }
 0x195   :  { %v2446_v48 = vrot.slane %v2429_v32, %v4232_v39  ;;  %v2458_v18 = vrot.slane %v2429_v32, %v4241_v29 }
 0x196   :  { %v2398_v41 = vadd.f32 %v2396_v49, %v2386_v36  ;;  %v2438_v7 = vrot.slane %v2430_v3, %v4199_v14  ;;  %v2439_v31 = vmul.f32 %v2434_v10, %v4184_v8  ;;  %v2450_v6 = vrot.slane %v2430_v3, %v4232_v39 }
 0x197   :  { %3702 = vset.pattern.permute.xlu1 %v6355_v63  ;;  %v2409_v63 = vadd.f32 %v2407_v23, %v2397_v53  ;;  %v2451_v36 = vmul.f32 %v2446_v48, %v4382_v22 }
 0x198   :  { %v2410_v43 = vadd.f32 %v2408_v55, %v2398_v41  ;;  %v2482_v21 = vpop.permute.xlu1 %2481  ;;  %v2440_v40 = vmul.f32 %v2438_v7, %v4184_v8  ;;  %v2452_v42 = vmul.f32 %v2450_v6, %v4382_v22  ;;  %v2462_v41 = vrot.slane %v2430_v3, %v4241_v29  ;;  %v4843_v55 = vpop.permute.xlu0 %1066 }
 0x199   :  { %v2421_v44 = vadd.f32 %v2419_v54, %v2409_v63  ;;  %v2483_v28 = vsel %vm657_vm6, %v2480_v59, %v2482_v21  ;;  %v2484_v53 = vsel %vm657_vm6, %v2482_v21, %v2480_v59  ;;  %v2463_v8 = vmul.f32 %v2458_v18, %v4406_v9 }
 0x19a   :  { %v2422_v51 = vadd.f32 %v2420_v61, %v2410_v43  ;;  %v2485_v23 = vmul.f32 %v2483_v28, %v4503_v58  ;;  %v2486_v17 = vmul.f32 %v2484_v53, %v4507_v26  ;;  %v2470_v63 = vrot.slane %v2429_v32, %v4271_v15 }
 0x19b   :  { %v2441_v57 = vadd.f32 %v2439_v31, %v2421_v44  ;;  %v2474_v59 = vrot.slane %v2430_v3, %v4271_v15  ;;  %v2464_v44 = vmul.f32 %v2462_v41, %v4406_v9 }
 0x19c   :  { %v2442_v19 = vadd.f32 %v2440_v40, %v2422_v51  ;;  %v2490_v10 = vrot.slane %v2485_v23, %v4199_v14  ;;  %v2494_v43 = vrot.slane %v2486_v17, %v4199_v14  ;;  %v2475_v22 = vmul.f32 %v2470_v63, %v4194_v13 }
 0x19d   :  { %v2453_v49 = vadd.f32 %v2451_v36, %v2441_v57  ;;  %v2502_v61 = vrot.slane %v2485_v23, %v4232_v39  ;;  %v2506_v7 = vrot.slane %v2486_v17, %v4232_v39  ;;  %v2514_v32 = vrot.slane %v2485_v23, %v4241_v29 }
 0x19e   :  { %v2454_v34 = vadd.f32 %v2452_v42, %v2442_v19  ;;  %v2518_v31 = vrot.slane %v2486_v17, %v4241_v29  ;;  %v2476_v3 = vmul.f32 %v2474_v59, %v4194_v13  ;;  %v2495_v51 = vmul.f32 %v2490_v10, %v4210_v35 }
 0x19f   :  { %v2465_v54 = vadd.f32 %v2463_v8, %v2453_v49  ;;  %v2496_v57 = vmul.f32 %v2494_v43, %v4210_v35  ;;  %v2507_v18 = vmul.f32 %v2502_v61, %v4464_v62  ;;  %v2508_v40 = vmul.f32 %v2506_v7, %v4464_v62 }
 0x1a0   :  { %v2466_v48 = vadd.f32 %v2464_v44, %v2454_v34  ;;  %v2519_v53 = vmul.f32 %v2514_v32, %v4492_v12  ;;  %v2520_v13 = vmul.f32 %v2518_v31, %v4492_v12  ;;  %v2526_v41 = vrot.slane %v2485_v23, %v4271_v15 }
 0x1a1   :  { %v2477_v21 = vadd.f32 %v2475_v22, %v2465_v54  ;;  %v2530_v62 = vrot.slane %v2486_v17, %v4271_v15  ;;  %v6356_v22 = vld [vmem:[#allocation32_spill] sm:$0xff] }
 0x1a2   :  { %v2478_v49 = vadd.f32 %v2476_v3, %v2466_v48  ;;  %v2531_v31 = vmul.f32 %v2526_v41, %v4236_v37 }
 0x1a3   :  { %v2497_v42 = vadd.f32 %v2495_v51, %v2477_v21 }
 0x1a4   :  { %v2498_v32 = vadd.f32 %v2496_v57, %v2478_v49 }
 0x1bc   :  { %v827_v6 = vpop.permute.xlu0 %826  ;;  %v825_v9 = vpop.permute.xlu1 %824 }
 0x1bd   :  { %v828_v36 = vsel %vm66_vm0, %v825_v9, %v827_v6  ;;  %v829_v28 = vsel %vm66_vm0, %v827_v6, %v825_v9 }
 0x1be   :  { %v830_v19 = vmul.f32 %v829_v28, %v6311_v5  ;;  %v831_v35 = vmul.f32 %v828_v36, %v6312_v2  ;;  %v2509_v28 = vadd.f32 %v2507_v18, %v2497_v42 }
 0x1c0   :  { %v840_v8 = vrot.slane %v830_v19, %v4199_v14  ;;  %v844_v63 = vrot.slane %v831_v35, %v4199_v14  ;;  %v856_v34 = vrot.slane %v830_v19, %v4232_v39  ;;  %v860_v54 = vrot.slane %v831_v35, %v4232_v39  ;;  %v962_v59 = vpop.permute.xlu1 %961 }
 0x1c1   :  { %v872_v12 = vrot.slane %v830_v19, %v4241_v29  ;;  %v876_v10 = vrot.slane %v831_v35, %v4241_v29  ;;  %v888_v43 = vrot.slane %v830_v19, %v4271_v15  ;;  %v892_v44 = vrot.slane %v831_v35, %v4271_v15 }
 0x1c2   :  { %v845_v23 = vmul.f32 %v840_v8, %v4584_v4  ;;  %v846_v17 = vmul.f32 %v844_v63, %v4584_v4  ;;  %v861_v61 = vmul.f32 %v856_v34, %v6356_v22  ;;  %v862_v7 = vmul.f32 %v860_v54, %v6356_v22 }
 0x1c3   :  { %v877_v48 = vmul.f32 %v872_v12, %v4594_v50  ;;  %v878_v21 = vmul.f32 %v876_v10, %v4594_v50  ;;  %v904_v6 = vrot.slane %v830_v19, %v6349_v38  ;;  %v908_v9 = vrot.slane %v831_v35, %v6349_v38  ;;  %v6357_v10 = vld [vmem:[#allocation33_spill] sm:$0xff] }
 0x1c4   :  { %v863_v3 = vadd.f32 %v861_v61, %v845_v23  ;;  %v864_v51 = vadd.f32 %v862_v7, %v846_v17  ;;  %v964_v36 = vpop.permute.xlu1 %963  ;;  %v2532_v8 = vmul.f32 %v2530_v62, %v4236_v37  ;;  %v893_v63 = vmul.f32 %v888_v43, %v4600_v16 }
 0x1c5   :  { %v894_v57 = vmul.f32 %v892_v44, %v4600_v16  ;;  %v920_v34 = vrot.slane %v830_v19, %v6352_v60  ;;  %v924_v54 = vrot.slane %v831_v35, %v6352_v60  ;;  %v2510_v12 = vadd.f32 %v2508_v40, %v2498_v32 }
 0x1c6   :  { %v879_v49 = vadd.f32 %v877_v48, %v863_v3  ;;  %v880_v41 = vadd.f32 %v878_v21, %v864_v51  ;;  %v909_v23 = vmul.f32 %v904_v6, %v6357_v10  ;;  %v936_v17 = vrot.slane %v830_v19, %v4357_v25  ;;  %v6358_v3 = vld [vmem:[#allocation55_spill] sm:$0xff] }
 0x1c7   :  { %v940_v61 = vrot.slane %v831_v35, %v4357_v25  ;;  %v910_v37 = vmul.f32 %v908_v9, %v6357_v10  ;;  %v952_v62 = vrot.slane %v830_v19, %v4360_v27  ;;  %v2521_v43 = vadd.f32 %v2519_v53, %v2509_v28  ;;  %v6359_v9 = vld [vmem:[#allocation56_spill] sm:$0xff] }
 0x1c8   :  { %v895_v18 = vadd.f32 %v893_v63, %v879_v49  ;;  %v896_v42 = vadd.f32 %v894_v57, %v880_v41  ;;  %v956_v44 = vrot.slane %v831_v35, %v4360_v27  ;;  %v965_v7 = vsel %vm148_vm1, %v962_v59, %v964_v36  ;;  %v6360_v19 = vld [vmem:[#allocation28_spill] sm:$0xff]  ;;  %v6361_v35 = vld [vmem:[#allocation29_spill] sm:$0xff] }
 0x1c9   :  { %v966_v40 = vsel %vm148_vm1, %v964_v36, %v962_v59  ;;  %v2536_v32 = vpop.permute.xlu1 %2535  ;;  %v925_v51 = vmul.f32 %v920_v34, %v6358_v3  ;;  %v926_v6 = vmul.f32 %v924_v54, %v6358_v3  ;;  %v2522_v63 = vadd.f32 %v2520_v13, %v2510_v12  ;;  %v6362_v36 = vld [vmem:[#allocation36_spill] sm:$0xff] }
 0x1ca   :  { %v911_v48 = vadd.f32 %v909_v23, %v895_v18  ;;  %v912_v21 = vadd.f32 %v910_v37, %v896_v42  ;;  %v941_v57 = vmul.f32 %v936_v17, %v6359_v9  ;;  %v4905_v53 = vmul.f32 %v966_v40, %v6360_v19 }
 0x1cb   :  { %v4908_v28 = vmul.f32 %v965_v7, %v6361_v35  ;;  %v942_v59 = vmul.f32 %v940_v61, %v6359_v9  ;;  %v957_v23 = vmul.f32 %v952_v62, %v6362_v36  ;;  %v958_v18 = vmul.f32 %v956_v44, %v6362_v36 }
 0x1cc   :  { %v927_v49 = vadd.f32 %v925_v51, %v911_v48  ;;  %v928_v41 = vadd.f32 %v926_v6, %v912_v21  ;;  %v976_v34 = vrot.slane %v4905_v53, %v4199_v14  ;;  %v992_v54 = vrot.slane %v4905_v53, %v4232_v39 }
 0x1cd   :  { %v980_v13 = vrot.slane %v4908_v28, %v4199_v14  ;;  %v996_v42 = vrot.slane %v4908_v28, %v4232_v39  ;;  %v1008_v61 = vrot.slane %v4905_v53, %v4241_v29  ;;  %v2538_v37 = vpop.permute.xlu1 %2537  ;;  %v2533_v62 = vadd.f32 %v2531_v31, %v2521_v43 }
 0x1ce   :  { %v943_v12 = vadd.f32 %v941_v57, %v927_v49  ;;  %v944_v17 = vadd.f32 %v942_v59, %v928_v41  ;;  %v2534_v44 = vadd.f32 %v2532_v8, %v2522_v63  ;;  %v981_v7 = vmul.f32 %v976_v34, %v4736_v45  ;;  %v6363_v63 = vld [vmem:[#allocation49_spill] sm:$0xff]  ;;  %v6364_v59 = vld [vmem:[#allocation50_spill] sm:$0xff] }
 0x1cf   :  { %v1012_v40 = vrot.slane %v4908_v28, %v4241_v29  ;;  %v982_v51 = vmul.f32 %v980_v13, %v4736_v45  ;;  %v1024_v6 = vrot.slane %v4905_v53, %v4271_v15  ;;  %v997_v57 = vmul.f32 %v992_v54, %v4743_v30 }
 0x1d0   :  { %v959_v48 = vadd.f32 %v957_v23, %v943_v12  ;;  %v960_v21 = vadd.f32 %v958_v18, %v944_v17  ;;  %v1028_v49 = vrot.slane %v4908_v28, %v4271_v15  ;;  %v2539_v31 = vsel %vm738_vm7, %v2536_v32, %v2538_v37 }
 0x1d1   :  { %v2540_v8 = vsel %vm738_vm7, %v2538_v37, %v2536_v32  ;;  %v998_v43 = vmul.f32 %v996_v42, %v4743_v30  ;;  %v2541_v41 = vmul.f32 %v6363_v63, %v2539_v31  ;;  %v1013_v18 = vmul.f32 %v1008_v61, %v4763_v1  ;;  %v6366_v63 = vld [vmem:[#allocation48_spill] sm:$0xff] }
 0x1d2   :  { %v2542_v23 = vmul.f32 %v6364_v59, %v2540_v8  ;;  %v983_v34 = vadd.f32 %v981_v7, %v959_v48  ;;  %v984_v13 = vadd.f32 %v982_v51, %v960_v21  ;;  %v1014_v54 = vmul.f32 %v1012_v40, %v4763_v1  ;;  %v6365_v48 = vld [vmem:[#allocation30_spill] sm:$0xff]  ;;  %v4952_v51 = vpop.permute.xlu0 %1082 }
 0x1d3   :  { %v1029_v12 = vmul.f32 %v1024_v6, %v4745_v47  ;;  %v2546_v17 = vrot.slane %v2541_v41, %v4199_v14  ;;  %v2558_v32 = vrot.slane %v2541_v41, %v4232_v39  ;;  %v2570_v37 = vrot.slane %v2541_v41, %v4241_v29 }
 0x1d4   :  { %v2550_v26 = vrot.slane %v2542_v23, %v4199_v14  ;;  %v2562_v42 = vrot.slane %v2542_v23, %v4232_v39  ;;  %v2574_v31 = vrot.slane %v2542_v23, %v4241_v29  ;;  %v2582_v61 = vrot.slane %v2541_v41, %v4271_v15 }
 0x1d5   :  { %v1030_v7 = vmul.f32 %v1028_v49, %v4745_v47  ;;  %v2551_v40 = vmul.f32 %v2546_v17, %v6365_v48  ;;  %v1040_v6 = vrot.slane %v4905_v53, %v6349_v38  ;;  %v1044_v8 = vrot.slane %v4908_v28, %v6349_v38 }
 0x1d6   :  { %v2552_v21 = vmul.f32 %v2550_v26, %v6365_v48  ;;  %v2563_v59 = vmul.f32 %v2558_v32, %v6366_v63  ;;  %v2564_v58 = vmul.f32 %v2562_v42, %v6366_v63  ;;  %v2575_v41 = vmul.f32 %v2570_v37, %v6367_v0 }
 0x1d7   :  { %v2586_v49 = vrot.slane %v2542_v23, %v4271_v15  ;;  %v2553_v56 = vadd.f32 %v2551_v40, %v2533_v62  ;;  %v999_v46 = vadd.f32 %v997_v57, %v983_v34  ;;  %v1000_v26 = vadd.f32 %v998_v43, %v984_v13 }
 0x1d8   :  { %v2554_v17 = vadd.f32 %v2552_v21, %v2534_v44  ;;  %v2576_v48 = vmul.f32 %v2574_v31, %v6367_v0  ;;  %v2587_v47 = vmul.f32 %v2582_v61, %v6368_v33  ;;  %v1056_v1 = vrot.slane %v4905_v53, %v6352_v60  ;;  %v1100_v31 = vpop.permute.xlu1 %1099  ;;  %v1098_v61 = vpop.permute.xlu0 %1097 }
 0x1d9   :  { %v1060_v32 = vrot.slane %v4908_v28, %v6352_v60  ;;  %v2565_v30 = vadd.f32 %v2563_v59, %v2553_v56  ;;  %v1015_v63 = vadd.f32 %v1013_v18, %v999_v46  ;;  %v1016_v37 = vadd.f32 %v1014_v54, %v1000_v26 }
 0x1da   :  { %v2566_v42 = vadd.f32 %v2564_v58, %v2554_v17  ;;  %v1045_v23 = vmul.f32 %v1040_v6, %v4765_v24  ;;  %v1046_v62 = vmul.f32 %v1044_v8, %v4765_v24  ;;  %v1072_v44 = vrot.slane %v4905_v53, %v4357_v25  ;;  %v6370_v17 = vld [vmem:[#allocation34_spill] sm:$0xff] }
 0x1db   :  { %v1076_v0 = vrot.slane %v4908_v28, %v4357_v25  ;;  %v2577_v57 = vadd.f32 %v2575_v41, %v2565_v30  ;;  %v1031_v34 = vadd.f32 %v1029_v12, %v1015_v63  ;;  %v1032_v13 = vadd.f32 %v1030_v7, %v1016_v37 }
 0x1dc   :  { %v2578_v43 = vadd.f32 %v2576_v48, %v2566_v42  ;;  %v2588_v56 = vmul.f32 %v2586_v49, %v6368_v33  ;;  %v1061_v46 = vmul.f32 %v1056_v1, %v4829_v20  ;;  %v1062_v58 = vmul.f32 %v1060_v32, %v4829_v20  ;;  %v6369_v1 = vld [vmem:[#allocation52_spill] sm:$0xff]  ;;  %v6371_v48 = vld [vmem:[#allocation35_spill] sm:$0xff] }
 0x1dd   :  { %v1077_v18 = vmul.f32 %v1072_v44, %v4843_v55  ;;  %v2589_v54 = vadd.f32 %v2587_v47, %v2577_v57  ;;  %v1047_v40 = vadd.f32 %v1045_v23, %v1031_v34  ;;  %v1048_v21 = vadd.f32 %v1046_v62, %v1032_v13  ;;  %v5001_v44 = vpop.permute.xlu0 %1106 }
 0x1de   :  { %v1078_v6 = vmul.f32 %v1076_v0, %v4843_v55  ;;  %v2590_v8 = vadd.f32 %v2588_v56, %v2578_v43  ;;  %v1088_v30 = vrot.slane %v4905_v53, %v4360_v27  ;;  %v1101_v12 = vsel %vm229_vm2, %v1098_v61, %v1100_v31 }
 0x1df   :  { %v1102_v33 = vsel %vm229_vm2, %v1100_v31, %v1098_v61  ;;  %v2591_v7 = vadd.f32 %v2589_v54, %v6369_v1  ;;  %v1063_v59 = vadd.f32 %v1061_v46, %v1047_v40  ;;  %v1064_v41 = vadd.f32 %v1062_v58, %v1048_v21 }
 0x1e0   :  { %v1092_v47 = vrot.slane %v4908_v28, %v4360_v27  ;;  %v1093_v49 = vmul.f32 %v1088_v30, %v4952_v51  ;;  %v4990_v26 = vmul.f32 %v1102_v33, %v6370_v17  ;;  %v4993_v53 = vmul.f32 %v1101_v12, %v6371_v48 }
 0x1e1   :  { %v4995_v32 = vmax.f32 %v2591_v7, 0.0  ;;  %v1079_v42 = vadd.f32 %v1077_v18, %v1063_v59  ;;  %v1080_v63 = vadd.f32 %v1078_v6, %v1064_v41  ;;  %v2592_v62 = vadd.f32 %v2590_v8, %v6369_v1  ;;  %v5037_v59 = vpop.permute.xlu0 %1154 }
 0x1e2   :  { %v1094_v37 = vmul.f32 %v1092_v47, %v4952_v51  ;;  %v4998_v23 = vpop.permute.xlu1 %1122  ;;  %v1112_v28 = vrot.slane %v4990_v26, %v4199_v14  ;;  %v1116_v0 = vrot.slane %v4993_v53, %v4199_v14  ;;  %v1128_v61 = vrot.slane %v4990_v26, %v4232_v39 }
 0x1e3   :  { %v1095_v57 = vadd.f32 %v1093_v49, %v1079_v42  ;;  %2699 = vrot.lane.b32.xlu0 %v4995_v32, %s3823_s29  ;;  %2595 = vrot.lane.b32.xlu1 %v4995_v32, %s3827_s3  ;;  %v5013_v31 = vmax.f32 %v2592_v62, 0.0  ;;  %v1132_v56 = vrot.slane %v4993_v53, %v4232_v39  ;;  %v1144_v21 = vrot.slane %v4990_v26, %v4241_v29 }
 0x1e4   :  { %v1096_v43 = vadd.f32 %v1094_v37, %v1080_v63  ;;  %v1117_v34 = vmul.f32 %v1112_v28, %v5001_v44  ;;  %v1118_v13 = vmul.f32 %v1116_v0, %v5001_v44  ;;  %v1133_v54 = vmul.f32 %v1128_v61, %v4998_v23 }
 0x1e5   :  { %v1134_v40 = vmul.f32 %v1132_v56, %v4998_v23  ;;  %v1148_v6 = vrot.slane %v4993_v53, %v4241_v29  ;;  %v3868_v1 = vmov 38   ;;  %v1160_v41 = vrot.slane %v4990_v26, %v4271_v15 }
 0x1e6   :  { %v1119_v58 = vadd.f32 %v1117_v34, %v1095_v57  ;;  %v1120_v18 = vadd.f32 %v1118_v13, %v1096_v43  ;;  %v1164_v47 = vrot.slane %v4993_v53, %v4271_v15  ;;  %v1176_v62 = vrot.slane %v4990_v26, %v6349_v38 }
 0x1e7   :  { %v5019_v46 = vpop.permute.xlu1 %1138  ;;  %1418 = vperm.xlu0 %3704, %v4686_v52   ;;  %2597 = vrot.lane.b32.xlu1 %v5013_v31, %s3827_s3  ;;  %v1165_v63 = vmul.f32 %v1160_v41, %v5037_v59  ;;  %v1180_v28 = vrot.slane %v4993_v53, %v6349_v38  ;;  %v6372_v0 = vmov 34   ;;  %v1192_v57 = vrot.slane %v4990_v26, %v6352_v60 }
 0x1e8   :  { %v1149_v8 = vmul.f32 %v1144_v21, %v5019_v46  ;;  %v1150_v30 = vmul.f32 %v1148_v6, %v5019_v46  ;;  %v1135_v12 = vadd.f32 %v1133_v54, %v1119_v58  ;;  %v1136_v33 = vadd.f32 %v1134_v40, %v1120_v18  ;;  %v5064_v21 = vpop.permute.xlu0 %1202 }
 0x1e9   :  { %v1166_v37 = vmul.f32 %v1164_v47, %v5037_v59  ;;  %v1196_v43 = vrot.slane %v4993_v53, %v6352_v60  ;;  %v3869_v40 = vmov 41   ;;  %v1212_v41 = vrot.slane %v4993_v53, %v4357_v25 }
 0x1ea   :  { %v1151_v49 = vadd.f32 %v1149_v8, %v1135_v12  ;;  %v1152_v42 = vadd.f32 %v1150_v30, %v1136_v33  ;;  %v3870_v30 = vmov 36   ;;  %v6373_v12 = vld [vmem:[#allocation54_spill] sm:$0xff] }
 0x1eb   :  { %2803 = vrot.lane.b32.xlu0 %v4995_v32, %s3832_s2  ;;  %1386 = vperm.xlu1 %3702, %v4686_v52  }
 0x1ec   :  { %3707 = vset.pattern.permute.xlu0 %v3868_v1  ;;  %v5035_v7 = vpop.permute.xlu1 %1170  ;;  %v1167_v13 = vadd.f32 %v1165_v63, %v1151_v49  ;;  %v1168_v61 = vadd.f32 %v1166_v37, %v1152_v42  ;;  %v1208_v1 = vrot.slane %v4990_v26, %v4357_v25  ;;  %v1214_v63 = vmul.f32 %v1212_v41, %v5064_v21  ;;  %v1236_v37 = vpop.permute.xlu0 %1235 }
 0x1ed   :  { %v1181_v56 = vmul.f32 %v1176_v62, %v5035_v7  ;;  %v1182_v58 = vmul.f32 %v1180_v28, %v5035_v7  ;;  %v1224_v62 = vrot.slane %v4990_v26, %v4360_v27  ;;  %v1228_v28 = vrot.slane %v4993_v53, %v4360_v27  ;;  %v6374_v26 = vld [vmem:[#allocation39_spill] sm:$0xff]  ;;  %v6375_v53 = vld [vmem:[#allocation40_spill] sm:$0xff] }
 0x1ee   :  { %v1213_v42 = vmul.f32 %v1208_v1, %v5064_v21 }
 0x1ef   :  { %1466 = vperm.xlu0 %3707, %v4686_v52   ;;  %3703 = vset.pattern.permute.xlu1 %v6372_v0  ;;  %v1183_v6 = vadd.f32 %v1181_v56, %v1167_v13  ;;  %v1184_v8 = vadd.f32 %v1182_v58, %v1168_v61 }
 0x1f0   :  { %1402 = vperm.xlu1 %3703, %v4686_v52  }
 0x1f1   :  { %v5056_v34 = vpop.permute.xlu1 %1186 }
 0x1f2   :  { %v1197_v18 = vmul.f32 %v1192_v57, %v5056_v34  ;;  %v1198_v54 = vmul.f32 %v1196_v43, %v5056_v34 }
 0x1f3   :  { %2907 = vrot.lane.b32.xlu0 %v4995_v32, %s3843_s23 }
 0x1f4   :  { %3710 = vset.pattern.permute.xlu0 %v3869_v40  ;;  %2701 = vrot.lane.b32.xlu1 %v5013_v31, %s3823_s29  ;;  %v1199_v47 = vadd.f32 %v1197_v18, %v1183_v6  ;;  %v1200_v49 = vadd.f32 %v1198_v54, %v1184_v8  ;;  %v3871_v18 = vmov 37   ;;  %v3872_v6 = vmov 44  }
 0x1f5   :  { %3705 = vset.pattern.permute.xlu1 %v3870_v30 }
 0x1f6   :  { %v5070_v33 = vpop.permute.xlu1 %1218  ;;  %v1215_v57 = vadd.f32 %v1213_v42, %v1199_v47  ;;  %v1216_v43 = vadd.f32 %v1214_v63, %v1200_v49 }
 0x1f7   :  { %1499 = vrot.lane.b32.xlu0 %v6373_v12, %s3841_s22  ;;  %v1229_v56 = vmul.f32 %v1224_v62, %v5070_v33  ;;  %v1230_v58 = vmul.f32 %v1228_v28, %v5070_v33  ;;  %v5110_v62 = vpop.permute.xlu0 %1258 }
 0x1f8   :  { %1434 = vperm.xlu1 %3705, %v4686_v52   ;;  %6377 = vst [vmem:[#allocation14_spill] sm:$0xff] %v5110_v62 }
 0x1f9   :  { %v1231_v49 = vadd.f32 %v1229_v56, %v1215_v57  ;;  %v1232_v42 = vadd.f32 %v1230_v58, %v1216_v43 }
 0x1fa   :  { %v1234_v0 = vpop.permute.xlu1 %1233 }
 0x1fb   :  { %1522 = vperm.xlu0 %3710, %v4686_v52   ;;  %v1237_v13 = vsel %vm310_vm3, %v1234_v0, %v1236_v37  ;;  %v1238_v61 = vsel %vm310_vm3, %v1236_v37, %v1234_v0 }
 0x1fc   :  { %3706 = vset.pattern.permute.xlu1 %v3871_v18  ;;  %v5091_v54 = vmul.f32 %v1238_v61, %v6374_v26  ;;  %v5094_v40 = vmul.f32 %v1237_v13, %v6375_v53  ;;  %v3873_v18 = vmov 39  }
 0x1fd   :  { %1450 = vperm.xlu1 %3706, %v4686_v52  }
 0x1fe   :  { %v1248_v8 = vrot.slane %v5091_v54, %v4199_v14  ;;  %v1252_v30 = vrot.slane %v5094_v40, %v4199_v14  ;;  %v5101_v1 = vpop.permute.xlu1 %1242  ;;  %v1264_v41 = vrot.slane %v5091_v54, %v4232_v39  ;;  %v1268_v47 = vrot.slane %v5094_v40, %v4232_v39 }
 0x1ff   :  { %3713 = vset.pattern.permute.xlu0 %v3872_v6  ;;  %6376 = vst [vmem:[#allocation12_spill] sm:$0xff] %v5101_v1  ;;  %v1280_v28 = vrot.slane %v5091_v54, %v4241_v29  ;;  %v1284_v0 = vrot.slane %v5094_v40, %v4241_v29 }
 0x200   :  { %1570 = vperm.xlu0 %3713, %v4686_v52   ;;  %v1253_v63 = vmul.f32 %v1248_v8, %v5101_v1  ;;  %v1254_v37 = vmul.f32 %v1252_v30, %v5101_v1  ;;  %v1269_v57 = vmul.f32 %v1264_v41, %v5110_v62  ;;  %v1270_v43 = vmul.f32 %v1268_v47, %v5110_v62 }
 0x201   :  { %2805 = vrot.lane.b32.xlu1 %v5013_v31, %s3832_s2  ;;  %v3874_v1 = vmov 47   ;;  %v1296_v41 = vrot.slane %v5091_v54, %v4271_v15  ;;  %v1300_v47 = vrot.slane %v5094_v40, %v4271_v15 }
 0x202   :  { %v1255_v13 = vadd.f32 %v1253_v63, %v1231_v49  ;;  %v1256_v61 = vadd.f32 %v1254_v37, %v1232_v42  ;;  %3708 = vset.pattern.permute.xlu1 %v3873_v18  ;;  %v1312_v63 = vrot.slane %v5091_v54, %v6349_v38  ;;  %v1316_v37 = vrot.slane %v5094_v40, %v6349_v38 }
 0x203   :  { %v5122_v56 = vpop.permute.xlu1 %1274  ;;  %v3875_v18 = vmov 40  }
 0x204   :  { %3107 = vrot.lane.b32.xlu0 %v4995_v32, %s3841_s22  ;;  %6378 = vst [vmem:[#allocation15_spill] sm:$0xff] %v5122_v56  ;;  %v1271_v58 = vadd.f32 %v1269_v57, %v1255_v13  ;;  %v1272_v6 = vadd.f32 %v1270_v43, %v1256_v61  ;;  %v1285_v8 = vmul.f32 %v1280_v28, %v5122_v56  ;;  %v5142_v61 = vpop.permute.xlu0 %1306 }
 0x205   :  { %v1286_v30 = vmul.f32 %v1284_v0, %v5122_v56  ;;  %3716 = vset.pattern.permute.xlu0 %v3874_v1  ;;  %1482 = vperm.xlu1 %3708, %v4686_v52   ;;  %v6380_v1 = vld [vmem:[#allocation53_spill] sm:$0xff]  ;;  %6381 = vst [vmem:[#allocation13_spill] sm:$0xff] %v5142_v61 }
 0x206   :  { %v1287_v49 = vadd.f32 %v1285_v8, %v1271_v58  ;;  %v3876_v58 = vmov 48   ;;  %v1318_v8 = vmul.f32 %v1316_v37, %v5142_v61 }
 0x207   :  { %v1288_v42 = vadd.f32 %v1286_v30, %v1272_v6  ;;  %v1317_v6 = vmul.f32 %v1312_v63, %v5142_v61  ;;  %v1328_v30 = vrot.slane %v5091_v54, %v6352_v60 }
 0x208   :  { %1618 = vperm.xlu0 %3716, %v4686_v52   ;;  %v5136_v28 = vpop.permute.xlu1 %1290 }
 0x209   :  { %6379 = vst [vmem:[#allocation16_spill] sm:$0xff] %v5136_v28  ;;  %1497 = vrot.lane.b32.xlu1 %v6380_v1, %s3841_s22  ;;  %v1301_v0 = vmul.f32 %v1296_v41, %v5136_v28  ;;  %v1302_v13 = vmul.f32 %v1300_v47, %v5136_v28  ;;  %v1332_v41 = vrot.slane %v5094_v40, %v6352_v60 }
 0x20a   :  { %3709 = vset.pattern.permute.xlu1 %v3875_v18  ;;  %v5161_v18 = vld [vmem:[#allocation5] sm:$0xff] }
 0x20b   :  { %v1303_v57 = vadd.f32 %v1301_v0, %v1287_v49  ;;  %v1304_v43 = vadd.f32 %v1302_v13, %v1288_v42 }
 0x20c   :  { %3717 = vset.pattern.permute.xlu0 %v3876_v58  ;;  %v1360_v58 = vrot.slane %v5091_v54, %v4360_v27 }
 0x20d   :  { %1642 = vperm.xlu0 %3717, %v4686_v52   ;;  %2909 = vrot.lane.b32.xlu1 %v5013_v31, %s3843_s23  ;;  %v1319_v47 = vadd.f32 %v1317_v6, %v1303_v57  ;;  %v1320_v49 = vadd.f32 %v1318_v8, %v1304_v43  ;;  %v5153_v42 = vpop.permute.xlu1 %1322  ;;  %v1344_v52 = vrot.slane %v5091_v54, %v4357_v25  ;;  %v3877_v57 = vmov 51  }
 0x20e   :  { %6382 = vst [vmem:[#allocation17_spill] sm:$0xff] %v5153_v42  ;;  %v1333_v0 = vmul.f32 %v1328_v30, %v5153_v42  ;;  %v1334_v63 = vmul.f32 %v1332_v41, %v5153_v42  ;;  %v1348_v43 = vrot.slane %v5094_v40, %v4357_v25  ;;  %v1364_v6 = vrot.slane %v5094_v40, %v4360_v27 }
 0x20f   :  { %v3878_v54 = vmov 42  }
 0x210   :  { %v1335_v37 = vadd.f32 %v1333_v0, %v1319_v47  ;;  %v1336_v13 = vadd.f32 %v1334_v63, %v1320_v49  ;;  %v5174_v47 = vpop.permute.xlu0 %1354 }
 0x211   :  { %3213 = vrot.lane.b32.xlu0 %v5013_v31, %s3845_s24  ;;  %1506 = vperm.xlu1 %3709, %v5161_v18   ;;  %6384 = vst [vmem:[#allocation18_spill] sm:$0xff] %v5174_v47  ;;  %v1365_v49 = vmul.f32 %v1360_v58, %v5174_v47  ;;  %v1366_v0 = vmul.f32 %v1364_v6, %v5174_v47  ;;  %v3883_v58 = vmov 46   ;;  %v3884_v6 = vmov 58  }
 0x212   :  { %3720 = vset.pattern.permute.xlu0 %v3877_v57  ;;  %v5170_v8 = vpop.permute.xlu1 %1338 }
 0x213   :  { %6383 = vst [vmem:[#allocation19_spill] sm:$0xff] %v5170_v8  ;;  %v1349_v30 = vmul.f32 %v1344_v52, %v5170_v8  ;;  %v1350_v41 = vmul.f32 %v1348_v43, %v5170_v8  ;;  %v3879_v52 = vmov 54   ;;  %v3880_v43 = vmov 43  }
 0x214   :  { %v5269_v56 = vpop.permute.xlu0 %1370 }
 0x215   :  { %1690 = vperm.xlu0 %3720, %v5161_v18   ;;  %v1351_v63 = vadd.f32 %v1349_v30, %v1335_v37  ;;  %v1352_v57 = vadd.f32 %v1350_v41, %v1336_v13  ;;  %3711 = vset.pattern.permute.xlu1 %v3878_v54  ;;  %v3881_v37 = vmov 57   ;;  %v3882_v13 = vmov 45  }
 0x216   :  { %1538 = vperm.xlu1 %3711, %v5161_v18   ;;  %v3885_v30 = vmov 49   ;;  %v3886_v41 = vmov 61   ;;  %v3891_v54 = vmov 69  }
 0x217   :  { %v5180_v40 = vadd.f32 %v1365_v49, %v1351_v63  ;;  %v5182_v42 = vadd.f32 %v1366_v0, %v1352_v57  ;;  %v3887_v49 = vmov 64   ;;  %v3888_v0 = vmov 65  }
 0x218   :  { %v3889_v63 = vmov 66   ;;  %v3890_v57 = vmov 50  }
 0x219   :  { %3723 = vset.pattern.permute.xlu0 %v3879_v52  ;;  %v3892_v52 = vmov 52  }
 0x21a   :  { %1738 = vperm.xlu0 %3723, %v5161_v18   ;;  %3712 = vset.pattern.permute.xlu1 %v3880_v43  ;;  %v54_v43 = vld [vmem:[%s6135_s4 + $0x8] sm:$0xff]  ;;  %s3904_s4 = smov [#allocation7]  }
 0x21b   :  { %1554 = vperm.xlu1 %3712, %v5161_v18   ;;  %s3535_s11 = sshll.u32 %s3904_s4, 4  ;;  %s3536_s11 = int_to_ptr.vmem [resolvable:$true] %s3535_s11 }
 0x21c   :  { %s3793_s12 = scalar_lea.vmem %s3536_s11, 512  ;;  %p3798_p3 = scmp.lt.s32.totalorder %s3536_s11, %s3536_s11 }
 0x21d   :  { %p3794_p2 = scmp.ne.s32.totalorder %s3536_s11, %s3793_s12  ;;  %p3799_p4 = scmp.lt.s32.totalorder %s3793_s12, %s3793_s12 }
 0x21e   :  { %1769 = vrot.lane.b32.xlu0 %v6380_v1, %s3862_s27 }
 0x21f   :  { %3726 = vset.pattern.permute.xlu0 %v3881_v37  ;;  %3714 = vset.pattern.permute.xlu1 %v3882_v13  ;;  %v6385_v37 = vmov 0   ;;  %v3893_v13 = vmov 53   ;;  %p3800_p5 = por %p3799_p4, %p3798_p3 }
 0x220   :  { %1586 = vperm.xlu1 %3714, %v5161_v18  }
 0x221   :  { %p3801_p6 = pnand %p3800_p5, %p3794_p2 }
 0x222   :  { %1794 = vperm.xlu0 %3726, %v5161_v18  }
 0x224   :  { %3715 = vset.pattern.permute.xlu1 %v3883_v58  ;;  %v3894_v58 = vmov 55  }
 0x225   :  { %1602 = vperm.xlu1 %3715, %v5161_v18  }
 0x226   :  { %3727 = vset.pattern.permute.xlu0 %v3884_v6  ;;  %v3895_v6 = vmov 56  }
 0x227   :  { %1810 = vperm.xlu0 %3727, %v5161_v18  }
 0x229   :  { %3109 = vrot.lane.b32.xlu1 %v5013_v31, %s3841_s22 }
 0x22a   :  { %3718 = vset.pattern.permute.xlu1 %v3885_v30 }
 0x22b   :  { %3730 = vset.pattern.permute.xlu0 %v3886_v41  ;;  %v3896_v41 = vmov 59  }
 0x22c   :  { %1858 = vperm.xlu0 %3730, %v5161_v18  }
 0x22d   :  { %1633 = vrot.lane.b32.xlu1 %v6380_v1, %s3845_s24 }
 0x230   :  { %3733 = vset.pattern.permute.xlu0 %v3887_v49 }
 0x231   :  { %1914 = vperm.xlu0 %3733, %v5161_v18   ;;  %1635 = vrot.lane.b32.xlu1 %v6373_v12, %s3845_s24 }
 0x235   :  { %3734 = vset.pattern.permute.xlu0 %v3888_v0  ;;  %1658 = vperm.xlu1 %3718, %v5161_v18  }
 0x236   :  { %1930 = vperm.xlu0 %3734, %v5161_v18  }
 0x239   :  { %3211 = vrot.lane.b32.xlu1 %v4995_v32, %s3845_s24 }
 0x23a   :  { %3735 = vset.pattern.permute.xlu0 %v3889_v63  ;;  %3719 = vset.pattern.permute.xlu1 %v3890_v57  ;;  %v1380_v57 = vrot.slane %v6373_v12, %v4199_v14 }
 0x23b   :  { %1946 = vperm.xlu0 %3735, %v5161_v18  }
 0x23d   :  { %1674 = vperm.xlu1 %3719, %v5161_v18  }
 0x23f   :  { %3738 = vset.pattern.permute.xlu0 %v3891_v54 }
 0x240   :  { %1994 = vperm.xlu0 %3738, %v5161_v18  }
 0x241   :  { %3721 = vset.pattern.permute.xlu1 %v3892_v52 }
 0x242   :  { %1706 = vperm.xlu1 %3721, %v5161_v18  }
 0x244   :  { %3741 = vset.pattern.permute.xlu0 %v6385_v37 }
 0x245   :  { %2043 = vperm.xlu0 %3741, %v54_v43   ;;  %v1376_v43 = vrot.slane %v6380_v1, %v4199_v14 }
 0x246   :  { %3722 = vset.pattern.permute.xlu1 %v3893_v13 }
 0x247   :  { %1722 = vperm.xlu1 %3722, %v5161_v18  }
 0x24b   :  { %3724 = vset.pattern.permute.xlu1 %v3894_v58 }
 0x24c   :  { %1754 = vperm.xlu1 %3724, %v5161_v18  }
 0x250   :  { %3725 = vset.pattern.permute.xlu1 %v3895_v6 }
 0x251   :  { %1778 = vperm.xlu1 %3725, %v5161_v18  }
 0x255   :  { %1771 = vrot.lane.b32.xlu1 %v6373_v12, %s3862_s27  ;;  %v2596_v30 = vpop.permute.xlu1 %2595 }
 0x256   :  { %3728 = vset.pattern.permute.xlu1 %v3896_v41 }
 0x259   :  { %3315 = vrot.lane.b32.xlu1 %v4995_v32, %s3862_s27  ;;  %v2598_v49 = vpop.permute.xlu1 %2597 }
 0x25a   :  { %v2599_v0 = vsel %vm66_vm0, %v2596_v30, %v2598_v49  ;;  %v2600_v63 = vsel %vm66_vm0, %v2598_v49, %v2596_v30 }
 0x25b   :  { %v5226_v54 = vmul.f32 %v2600_v63, %v6311_v5  ;;  %v5229_v52 = vmul.f32 %v2599_v0, %v6312_v2  ;;  %v1392_v0 = vrot.slane %v6380_v1, %v4232_v39 }
 0x25d   :  { %v2606_v6 = vrot.slane %v5226_v54, %v4199_v14  ;;  %v2610_v5 = vrot.slane %v5229_v52, %v4199_v14  ;;  %v2618_v2 = vrot.slane %v5226_v54, %v4232_v39  ;;  %v2622_v30 = vrot.slane %v5229_v52, %v4232_v39  ;;  %3317 = vrot.lane.b32.xlu1 %v5013_v31, %s3862_s27 }
 0x25e   :  { %v2630_v41 = vrot.slane %v5226_v54, %v4241_v29  ;;  %v2634_v49 = vrot.slane %v5229_v52, %v4241_v29  ;;  %v2642_v8 = vrot.slane %v5226_v54, %v4271_v15  ;;  %v2646_v61 = vrot.slane %v5229_v52, %v4271_v15 }
 0x25f   :  { %v2611_v37 = vmul.f32 %v2606_v6, %v4584_v4  ;;  %v2612_v13 = vmul.f32 %v2610_v5, %v4584_v4  ;;  %v2623_v58 = vmul.f32 %v2618_v2, %v6356_v22  ;;  %v2624_v47 = vmul.f32 %v2622_v30, %v6356_v22 }
 0x260   :  { %v2635_v5 = vmul.f32 %v2630_v41, %v4594_v50  ;;  %v2636_v22 = vmul.f32 %v2634_v49, %v4594_v50  ;;  %v2647_v50 = vmul.f32 %v2642_v8, %v4600_v16  ;;  %v2658_v41 = vrot.slane %v5229_v52, %v6349_v38 }
 0x261   :  { %v2625_v6 = vadd.f32 %v2623_v58, %v2611_v37  ;;  %v2626_v4 = vadd.f32 %v2624_v47, %v2612_v13  ;;  %1826 = vperm.xlu1 %3728, %v5161_v18   ;;  %v2648_v13 = vmul.f32 %v2646_v61, %v4600_v16  ;;  %v2654_v58 = vrot.slane %v5226_v54, %v6349_v38 }
 0x262   :  { %v3014_v49 = vrot.slane %v4995_v32, %v4199_v14  ;;  %v1381_v30 = vmul.f32 %v1376_v43, %v5269_v56  ;;  %v3898_v47 = vmov 62   ;;  %v2678_v2 = vrot.slane %v5226_v54, %v4357_v25 }
 0x263   :  { %v2637_v63 = vadd.f32 %v2635_v5, %v2625_v6  ;;  %v2638_v62 = vadd.f32 %v2636_v22, %v2626_v4  ;;  %v3018_v6 = vrot.slane %v5013_v31, %v4199_v14  ;;  %v5294_v4 = vpop.permute.xlu0 %2699  ;;  %v3897_v5 = vmov 60  }
 0x264   :  { %v2659_v28 = vmul.f32 %v2654_v58, %v6357_v10  ;;  %v1383_v37 = vadd.f32 %v1381_v30, %v5180_v40  ;;  %v2682_v16 = vrot.slane %v5229_v52, %v4357_v25 }
 0x265   :  { %3729 = vset.pattern.permute.xlu1 %v3897_v5  ;;  %v2649_v61 = vadd.f32 %v2647_v50, %v2637_v63  ;;  %v2650_v22 = vadd.f32 %v2648_v13, %v2638_v62  ;;  %v1382_v5 = vmul.f32 %v1380_v57, %v5269_v56  ;;  %v2660_v63 = vmul.f32 %v2658_v41, %v6357_v10 }
 0x266   :  { %1842 = vperm.xlu1 %3729, %v5161_v18   ;;  %v2666_v62 = vrot.slane %v5226_v54, %v6352_v60  ;;  %v2670_v50 = vrot.slane %v5229_v52, %v6352_v60  ;;  %v6386_v57 = vrot.slane %v6373_v12, %v4232_v39 }
 0x267   :  { %v1419_v13 = vpop.permute.xlu0 %1418  ;;  %v2661_v8 = vadd.f32 %v2659_v28, %v2649_v61  ;;  %v2662_v58 = vadd.f32 %v2660_v63, %v2650_v22  ;;  %v1384_v10 = vadd.f32 %v1382_v5, %v5182_v42  ;;  %v6392_v22 = vrot.slane %v6373_v12, %v4271_v15 }
 0x268   :  { %v2671_v28 = vmul.f32 %v2666_v62, %v6358_v3  ;;  %v2672_v42 = vmul.f32 %v2670_v50, %v6358_v3  ;;  %v2683_v50 = vmul.f32 %v2678_v2, %v6359_v9  ;;  %v2694_v2 = vrot.slane %v5229_v52, %v4360_v27 }
 0x26a   :  { %3731 = vset.pattern.permute.xlu1 %v3898_v47  ;;  %v1387_v41 = vpop.permute.xlu1 %1386  ;;  %v2673_v5 = vadd.f32 %v2671_v28, %v2661_v8  ;;  %v2674_v63 = vadd.f32 %v2672_v42, %v2662_v58  ;;  %v6388_v28 = vrot.slane %v6373_v12, %v4241_v29 }
 0x26b   :  { %v1397_v53 = vmul.f32 %v1392_v0, %v1387_v41  ;;  %v1398_v43 = vmul.f32 %v6386_v57, %v1387_v41  ;;  %1874 = vperm.xlu1 %3731, %v5161_v18   ;;  %v2684_v57 = vmul.f32 %v2682_v16, %v6359_v9  ;;  %v6387_v9 = vrot.slane %v6380_v1, %v4241_v29 }
 0x26c   :  { %v2685_v58 = vadd.f32 %v2683_v50, %v2673_v5 }
 0x26d   :  { %v1399_v47 = vadd.f32 %v1397_v53, %v1383_v37  ;;  %v1400_v61 = vadd.f32 %v1398_v43, %v1384_v10  ;;  %v5347_v53 = vpop.permute.xlu0 %2803  ;;  %v3899_v37 = vmov 63   ;;  %v2690_v10 = vrot.slane %v5226_v54, %v4360_v27 }
 0x26e   :  { %v5372_v54 = vmul.f32 %v3018_v6, %v5269_v56  ;;  %v2686_v52 = vadd.f32 %v2684_v57, %v2674_v63 }
 0x26f   :  { %3732 = vset.pattern.permute.xlu1 %v3899_v37  ;;  %v5349_v43 = vpop.permute.xlu1 %1402  ;;  %v5369_v37 = vmul.f32 %v3014_v49, %v5269_v56  ;;  %v2695_v30 = vmul.f32 %v2690_v10, %v6362_v36  ;;  %v2696_v49 = vmul.f32 %v2694_v2, %v6362_v36  ;;  %v6397_v10 = vrot.slane %v4995_v32, %v4232_v39 }
 0x270   :  { %v1413_v16 = vmul.f32 %v6387_v9, %v5349_v43  ;;  %v1414_v42 = vmul.f32 %v6388_v28, %v5349_v43  ;;  %1890 = vperm.xlu1 %3732, %v5161_v18   ;;  %6390 = vst [vmem:[#allocation22_spill] sm:$0xff] %v5372_v54  ;;  %v6391_v9 = vrot.slane %v6380_v1, %v4271_v15 }
 0x271   :  { %6389 = vst [vmem:[#allocation20_spill] sm:$0xff] %v5369_v37  ;;  %v1430_v28 = vmul.f32 %v6392_v22, %v1419_v13  ;;  %v6395_v22 = vrot.slane %v5013_v31, %v4271_v15  ;;  %v1467_v5 = vpop.permute.xlu0 %1466  ;;  %v2698_v57 = vadd.f32 %v2696_v49, %v2686_v52  ;;  %v5409_v2 = vmul.f32 %v6397_v10, %v1387_v41 }
 0x272   :  { %v1415_v8 = vadd.f32 %v1413_v16, %v1399_v47  ;;  %v1416_v3 = vadd.f32 %v1414_v42, %v1400_v61  ;;  %v1429_v62 = vmul.f32 %v6391_v9, %v1419_v13  ;;  %v6393_v47 = vrot.slane %v4995_v32, %v4271_v15 }
 0x273   :  { %v2702_v0 = vpop.permute.xlu1 %2701  ;;  %v5398_v36 = vmul.f32 %v6395_v22, %v1419_v13  ;;  %6398 = vst [vmem:[#allocation24_spill] sm:$0xff] %v5409_v2  ;;  %v6401_v52 = vrot.slane %v6380_v1, %v4357_v25 }
 0x274   :  { %v2703_v56 = vsel %vm148_vm1, %v5294_v4, %v2702_v0  ;;  %v2704_v6 = vsel %vm148_vm1, %v2702_v0, %v5294_v4  ;;  %1905 = vrot.lane.b32.xlu1 %v6380_v1, %s3865_s30  ;;  %v5393_v61 = vmul.f32 %v6393_v47, %v1419_v13  ;;  %v3900_v4 = vmov 67  }
 0x275   :  { %6396 = vst [vmem:[#allocation23_spill] sm:$0xff] %v5398_v36  ;;  %v5401_v63 = vmul.f32 %v2704_v6, %v6360_v19  ;;  %v5404_v50 = vmul.f32 %v2703_v56, %v6361_v35  ;;  %3736 = vset.pattern.permute.xlu1 %v3900_v4  ;;  %v2697_v0 = vadd.f32 %v2695_v30, %v2685_v58 }
 0x276   :  { %6394 = vst [vmem:[#allocation41_spill] sm:$0xff] %v5393_v61  ;;  %v6399_v13 = vrot.slane %v5013_v31, %v4232_v39  ;;  %v5429_v9 = vmul.f32 %v6401_v52, %v1467_v5  ;;  %v6403_v56 = vrot.slane %v4995_v32, %v4357_v25  ;;  %v6405_v47 = vrot.slane %v5013_v31, %v4357_v25 }
 0x277   :  { %v2710_v19 = vrot.slane %v5401_v63, %v4199_v14  ;;  %v2714_v35 = vrot.slane %v5404_v50, %v4199_v14  ;;  %v2722_v30 = vrot.slane %v5401_v63, %v4232_v39  ;;  %v2726_v58 = vrot.slane %v5404_v50, %v4232_v39  ;;  %v5424_v42 = vpop.permute.xlu1 %1434 }
 0x278   :  { %v5414_v16 = vmul.f32 %v6399_v13, %v1387_v41  ;;  %v6402_v41 = vrot.slane %v6373_v12, %v4357_v25  ;;  %v5439_v6 = vmul.f32 %v6403_v56, %v1467_v5  ;;  %v5444_v22 = vmul.f32 %v6405_v47, %v1467_v5  ;;  %1907 = vrot.lane.b32.xlu1 %v6373_v12, %s3865_s30 }
 0x279   :  { %v2715_v4 = vmul.f32 %v2710_v19, %v4736_v45  ;;  %v2716_v10 = vmul.f32 %v2714_v35, %v4736_v45  ;;  %v2734_v13 = vrot.slane %v5401_v63, %v4241_v29  ;;  %v2738_v52 = vrot.slane %v5404_v50, %v4241_v29 }
 0x27a   :  { %6400 = vst [vmem:[#allocation21_spill] sm:$0xff] %v5414_v16  ;;  %v5434_v49 = vmul.f32 %v6402_v41, %v1467_v5  ;;  %6404 = vst [vmem:[#allocation25_spill] sm:$0xff] %v5439_v6  ;;  %v6407_v41 = vld [vmem:[#allocation11_spill] sm:$0xff]  ;;  %v2746_v5 = vrot.slane %v5401_v63, %v4271_v15  ;;  %v2750_v47 = vrot.slane %v5404_v50, %v4271_v15  ;;  %v6409_v16 = vld [vmem:[#allocation26_spill] sm:$0xff] }
 0x27b   :  { %6406 = vst [vmem:[#allocation37_spill] sm:$0xff] %v5444_v22  ;;  %v2727_v56 = vmul.f32 %v2722_v30, %v6407_v41  ;;  %v2728_v40 = vmul.f32 %v2726_v58, %v6407_v41  ;;  %v2717_v22 = vadd.f32 %v2715_v4, %v2697_v0  ;;  %v2718_v19 = vadd.f32 %v2716_v10, %v2698_v57  ;;  %v6408_v4 = vld [vmem:[#allocation27_spill] sm:$0xff] }
 0x27c   :  { %v2758_v45 = vrot.slane %v5401_v63, %v6349_v38  ;;  %v2762_v35 = vrot.slane %v5404_v50, %v6349_v38  ;;  %v2770_v6 = vrot.slane %v5401_v63, %v6352_v60  ;;  %v2774_v30 = vrot.slane %v5404_v50, %v6352_v60  ;;  %3419 = vrot.lane.b32.xlu1 %v4995_v32, %s3865_s30  ;;  %v5470_v36 = vpop.permute.xlu1 %1450 }
 0x27d   :  { %v1432_v58 = vadd.f32 %v1430_v28, %v1416_v3  ;;  %v1431_v41 = vadd.f32 %v1429_v62, %v1415_v8  ;;  %v2729_v0 = vadd.f32 %v2727_v56, %v2717_v22  ;;  %v2730_v57 = vadd.f32 %v2728_v40, %v2718_v19 }
 0x27e   :  { %v2739_v10 = vmul.f32 %v2734_v13, %v6408_v4  ;;  %v2740_v61 = vmul.f32 %v2738_v52, %v6408_v4  ;;  %v2751_v2 = vmul.f32 %v2746_v5, %v6409_v16  ;;  %v2752_v54 = vmul.f32 %v2750_v47, %v6409_v16 }
 0x27f   :  { %v2782_v37 = vrot.slane %v5401_v63, %v4357_v25  ;;  %v2786_v62 = vrot.slane %v5404_v50, %v4357_v25  ;;  %v2763_v28 = vmul.f32 %v2758_v45, %v4765_v24  ;;  %v2764_v40 = vmul.f32 %v2762_v35, %v4765_v24 }
 0x280   :  { %v2741_v3 = vadd.f32 %v2739_v10, %v2729_v0  ;;  %v2742_v8 = vadd.f32 %v2740_v61, %v2730_v57  ;;  %v2775_v22 = vmul.f32 %v2770_v6, %v4829_v20  ;;  %v2776_v13 = vmul.f32 %v2774_v30, %v4829_v20  ;;  %3421 = vrot.lane.b32.xlu1 %v5013_v31, %s3865_s30  ;;  %v2806_v61 = vpop.permute.xlu1 %2805 }
 0x281   :  { %v6410_v16 = vrot.slane %v6380_v1, %v6349_v38  ;;  %v6411_v56 = vrot.slane %v6373_v12, %v6349_v38  ;;  %v2794_v6 = vrot.slane %v5401_v63, %v4360_v27  ;;  %v2798_v20 = vrot.slane %v5404_v50, %v4360_v27 }
 0x282   :  { %v2753_v47 = vadd.f32 %v2751_v2, %v2741_v3  ;;  %v2754_v24 = vadd.f32 %v2752_v54, %v2742_v8  ;;  %v6412_v35 = vrot.slane %v6380_v1, %v6352_v60  ;;  %v6413_v0 = vrot.slane %v6373_v12, %v6352_v60 }
 0x283   :  { %v1445_v52 = vmul.f32 %v6410_v16, %v5424_v42  ;;  %v1446_v5 = vmul.f32 %v6411_v56, %v5424_v42  ;;  %v2787_v4 = vmul.f32 %v2782_v37, %v4843_v55  ;;  %v2788_v63 = vmul.f32 %v2786_v62, %v4843_v55 }
 0x284   :  { %v1461_v30 = vmul.f32 %v6412_v35, %v5470_v36  ;;  %v1462_v57 = vmul.f32 %v6413_v0, %v5470_v36  ;;  %v2765_v2 = vadd.f32 %v2763_v28, %v2753_v47  ;;  %v2766_v54 = vadd.f32 %v2764_v40, %v2754_v24  ;;  %1962 = vperm.xlu1 %3736, %v5161_v18   ;;  %v5515_v3 = vpop.permute.xlu1 %1482 }
 0x285   :  { %v1447_v19 = vadd.f32 %v1445_v52, %v1431_v41  ;;  %v1448_v45 = vadd.f32 %v1446_v5, %v1432_v58  ;;  %v2807_v58 = vsel %vm229_vm2, %v5347_v53, %v2806_v61  ;;  %v2808_v41 = vsel %vm229_vm2, %v2806_v61, %v5347_v53 }
 0x286   :  { %v2777_v8 = vadd.f32 %v2775_v22, %v2765_v2  ;;  %v2778_v28 = vadd.f32 %v2776_v13, %v2766_v54  ;;  %v5518_v37 = vmul.f32 %v2808_v41, %v6370_v17  ;;  %v5521_v55 = vmul.f32 %v2807_v58, %v6371_v48 }
 0x287   :  { %v1463_v10 = vadd.f32 %v1461_v30, %v1447_v19  ;;  %v1464_v50 = vadd.f32 %v1462_v57, %v1448_v45  ;;  %v2799_v62 = vmul.f32 %v2794_v6, %v4952_v51  ;;  %v2800_v40 = vmul.f32 %v2798_v20, %v4952_v51 }
 0x288   :  { %v2789_v52 = vadd.f32 %v2787_v4, %v2777_v8  ;;  %v2790_v56 = vadd.f32 %v2788_v63, %v2778_v28  ;;  %v2814_v22 = vrot.slane %v5518_v37, %v4199_v14  ;;  %v2818_v17 = vrot.slane %v5521_v55, %v4199_v14  ;;  %v1498_v5 = vpop.permute.xlu1 %1497  ;;  %v2908_v4 = vpop.permute.xlu0 %2907 }
 0x289   :  { %v1480_v16 = vadd.f32 %v5434_v49, %v1464_v50  ;;  %v1479_v53 = vadd.f32 %v5429_v9, %v1463_v10  ;;  %v2826_v48 = vrot.slane %v5518_v37, %v4232_v39  ;;  %v2830_v13 = vrot.slane %v5521_v55, %v4232_v39 }
 0x28a   :  { %v2838_v51 = vrot.slane %v5518_v37, %v4241_v29  ;;  %v2842_v9 = vrot.slane %v5521_v55, %v4241_v29  ;;  %v3901_v49 = vmov 68   ;;  %v2801_v61 = vadd.f32 %v2799_v62, %v2789_v52 }
 0x28b   :  { %3737 = vset.pattern.permute.xlu1 %v3901_v49  ;;  %v2802_v47 = vadd.f32 %v2800_v40, %v2790_v56  ;;  %v2819_v24 = vmul.f32 %v2814_v22, %v5001_v44  ;;  %v2820_v6 = vmul.f32 %v2818_v17, %v5001_v44  ;;  %v2831_v20 = vmul.f32 %v2826_v48, %v4998_v23 }
 0x28c   :  { %1978 = vperm.xlu1 %3737, %v5161_v18   ;;  %v2832_v19 = vmul.f32 %v2830_v13, %v4998_v23  ;;  %v6414_v45 = vrot.slane %v6380_v1, %v4360_v27  ;;  %v6415_v30 = vrot.slane %v6373_v12, %v4360_v27  ;;  %v2850_v44 = vrot.slane %v5518_v37, %v4271_v15  ;;  %v2910_v10 = vpop.permute.xlu1 %2909 }
 0x28d   :  { %v2821_v57 = vadd.f32 %v2819_v24, %v2801_v61  ;;  %v2822_v2 = vadd.f32 %v2820_v6, %v2802_v47  ;;  %v2854_v54 = vrot.slane %v5521_v55, %v4271_v15  ;;  %v2843_v23 = vmul.f32 %v2838_v51, %v5019_v46  ;;  %v1500_v6 = vpop.permute.xlu0 %1499 }
 0x28e   :  { %v1493_v35 = vmul.f32 %v6414_v45, %v5515_v3  ;;  %v1494_v0 = vmul.f32 %v6415_v30, %v5515_v3  ;;  %v2844_v63 = vmul.f32 %v2842_v9, %v5019_v46  ;;  %v2862_v1 = vrot.slane %v5518_v37, %v6349_v38 }
 0x28f   :  { %v2866_v12 = vrot.slane %v5521_v55, %v6349_v38  ;;  %v2833_v50 = vadd.f32 %v2831_v20, %v2821_v57  ;;  %v2834_v58 = vadd.f32 %v2832_v19, %v2822_v2  ;;  %v2874_v41 = vrot.slane %v5518_v37, %v6352_v60 }
 0x290   :  { %v2878_v8 = vrot.slane %v5521_v55, %v6352_v60  ;;  %v3902_v28 = vmov 70   ;;  %v2855_v62 = vmul.f32 %v2850_v44, %v5037_v59  ;;  %v2856_v46 = vmul.f32 %v2854_v54, %v5037_v59 }
 0x291   :  { %3739 = vset.pattern.permute.xlu1 %v3902_v28  ;;  %v2867_v40 = vmul.f32 %v2862_v1, %v5035_v7  ;;  %v2868_v52 = vmul.f32 %v2866_v12, %v5035_v7  ;;  %v2845_v56 = vadd.f32 %v2843_v23, %v2833_v50  ;;  %v2846_v22 = vadd.f32 %v2844_v63, %v2834_v58  ;;  %v5583_v7 = vpop.permute.xlu1 %1506  ;;  %v6418_v63 = vld [vmem:[#allocation40_spill] sm:$0xff] }
 0x292   :  { %2010 = vperm.xlu1 %3739, %v5161_v18   ;;  %v2886_v17 = vrot.slane %v5518_v37, %v4357_v25  ;;  %v2890_v48 = vrot.slane %v5521_v55, %v4357_v25  ;;  %v2898_v13 = vrot.slane %v5518_v37, %v4360_v27  ;;  %v2902_v59 = vrot.slane %v5521_v55, %v4360_v27 }
 0x293   :  { %v5579_v51 = vadd.f32 %v1493_v35, %v1479_v53  ;;  %v5581_v9 = vadd.f32 %v1494_v0, %v1480_v16  ;;  %v2857_v49 = vadd.f32 %v2855_v62, %v2845_v56  ;;  %v2858_v61 = vadd.f32 %v2856_v46, %v2846_v22  ;;  %v6419_v56 = vld [vmem:[#allocation12_spill] sm:$0xff] }
 0x294   :  { %v2879_v47 = vmul.f32 %v2874_v41, %v5056_v34  ;;  %v2880_v24 = vmul.f32 %v2878_v8, %v5056_v34  ;;  %v2891_v20 = vmul.f32 %v2886_v17, %v5064_v21  ;;  %v2892_v37 = vmul.f32 %v2890_v48, %v5064_v21  ;;  %v6416_v34 = vld [vmem:[#allocation42_spill] sm:$0xff]  ;;  %v6417_v21 = vld [vmem:[#allocation43_spill] sm:$0xff] }
 0x295   :  { %v2903_v19 = vmul.f32 %v2898_v13, %v5070_v33  ;;  %v2904_v55 = vmul.f32 %v2902_v59, %v5070_v33  ;;  %v3903_v53 = vmov 71   ;;  %v2869_v16 = vadd.f32 %v2867_v40, %v2857_v49  ;;  %v5608_v1 = vpop.permute.xlu1 %1538  ;;  %v6420_v48 = vld [vmem:[#allocation14_spill] sm:$0xff]  ;;  %v6421_v49 = vld [vmem:[#allocation15_spill] sm:$0xff] }
 0x296   :  { %3740 = vset.pattern.permute.xlu1 %v3903_v53  ;;  %v2870_v45 = vadd.f32 %v2868_v52, %v2858_v61  ;;  %v1501_v35 = vsel %vm495_vm4, %v1498_v5, %v1500_v6  ;;  %v1502_v30 = vsel %vm495_vm4, %v1500_v6, %v1498_v5  ;;  %v2911_v33 = vsel %vm310_vm3, %v2908_v4, %v2910_v10 }
 0x297   :  { %2026 = vperm.xlu1 %3740, %v5161_v18   ;;  %v5597_v0 = vmul.f32 %v1501_v35, %v6416_v34  ;;  %v5600_v57 = vmul.f32 %v1502_v30, %v6417_v21  ;;  %v2912_v2 = vsel %vm310_vm3, %v2910_v10, %v2908_v4  ;;  %v2881_v44 = vadd.f32 %v2879_v47, %v2869_v16 }
 0x298   :  { %v2882_v54 = vadd.f32 %v2880_v24, %v2870_v45  ;;  %v2913_v23 = vmul.f32 %v2912_v2, %v6374_v26  ;;  %v2914_v5 = vmul.f32 %v2911_v33, %v6418_v63  ;;  %v6422_v2 = vld [vmem:[#allocation16_spill] sm:$0xff]  ;;  %v6423_v63 = vld [vmem:[#allocation13_spill] sm:$0xff] }
 0x299   :  { %v1512_v18 = vrot.slane %v5597_v0, %v4199_v14  ;;  %v1516_v12 = vrot.slane %v5600_v57, %v4199_v14  ;;  %v1528_v50 = vrot.slane %v5597_v0, %v4232_v39  ;;  %v1532_v4 = vrot.slane %v5600_v57, %v4232_v39 }
 0x29a   :  { %v2893_v10 = vadd.f32 %v2891_v20, %v2881_v44  ;;  %v2894_v58 = vadd.f32 %v2892_v37, %v2882_v54  ;;  %v2918_v26 = vrot.slane %v2913_v23, %v4199_v14  ;;  %v2922_v41 = vrot.slane %v2914_v5, %v4199_v14  ;;  %v5630_v24 = vpop.permute.xlu1 %1554 }
 0x29b   :  { %v2930_v8 = vrot.slane %v2913_v23, %v4232_v39  ;;  %v2934_v28 = vrot.slane %v2914_v5, %v4232_v39  ;;  %v2942_v62 = vrot.slane %v2913_v23, %v4241_v29  ;;  %v2946_v46 = vrot.slane %v2914_v5, %v4241_v29 }
 0x29c   :  { %v2905_v40 = vadd.f32 %v2903_v19, %v2893_v10  ;;  %v2906_v52 = vadd.f32 %v2904_v55, %v2894_v58  ;;  %v2923_v22 = vmul.f32 %v2918_v26, %v6419_v56  ;;  %v2924_v17 = vmul.f32 %v2922_v41, %v6419_v56  ;;  %v5634_v55 = vpop.permute.xlu0 %1522  ;;  %v6424_v26 = vld [vmem:[#allocation17_spill] sm:$0xff] }
 0x29d   :  { %v2935_v13 = vmul.f32 %v2930_v8, %v6420_v48  ;;  %v2936_v59 = vmul.f32 %v2934_v28, %v6420_v48  ;;  %v2947_v61 = vmul.f32 %v2942_v62, %v6421_v49  ;;  %v2948_v47 = vmul.f32 %v2946_v46, %v6421_v49  ;;  %v6425_v49 = vld [vmem:[#allocation19_spill] sm:$0xff] }
 0x29e   :  { %v2925_v6 = vadd.f32 %v2923_v22, %v2905_v40  ;;  %v2926_v20 = vadd.f32 %v2924_v17, %v2906_v52  ;;  %v2954_v37 = vrot.slane %v2913_v23, %v4271_v15  ;;  %v2958_v19 = vrot.slane %v2914_v5, %v4271_v15 }
 0x29f   :  { %v2966_v53 = vrot.slane %v2913_v23, %v6349_v38  ;;  %v2970_v16 = vrot.slane %v2914_v5, %v6349_v38  ;;  %v2978_v45 = vrot.slane %v2913_v23, %v6352_v60  ;;  %v2982_v35 = vrot.slane %v2914_v5, %v6352_v60  ;;  %v5648_v52 = vpop.permute.xlu1 %1586 }
 0x2a0   :  { %v2937_v30 = vadd.f32 %v2935_v13, %v2925_v6  ;;  %v2938_v33 = vadd.f32 %v2936_v59, %v2926_v20  ;;  %v2959_v44 = vmul.f32 %v2954_v37, %v6422_v2  ;;  %v2960_v54 = vmul.f32 %v2958_v19, %v6422_v2  ;;  %v6426_v20 = vld [vmem:[#allocation18_spill] sm:$0xff] }
 0x2a1   :  { %v2971_v10 = vmul.f32 %v2966_v53, %v6423_v63  ;;  %v2972_v58 = vmul.f32 %v2970_v16, %v6423_v63  ;;  %v2983_v41 = vmul.f32 %v2978_v45, %v6424_v26  ;;  %v2984_v8 = vmul.f32 %v2982_v35, %v6424_v26 }
 0x2a2   :  { %v2949_v28 = vadd.f32 %v2947_v61, %v2937_v30  ;;  %v2950_v62 = vadd.f32 %v2948_v47, %v2938_v33  ;;  %v2990_v46 = vrot.slane %v2913_v23, %v4357_v25  ;;  %v2994_v40 = vrot.slane %v2914_v5, %v4357_v25  ;;  %v5656_v47 = vpop.permute.xlu0 %1570 }
 0x2a3   :  { %v3002_v56 = vrot.slane %v2913_v23, %v4360_v27  ;;  %v3006_v22 = vrot.slane %v2914_v5, %v4360_v27  ;;  %v1517_v17 = vmul.f32 %v1512_v18, %v5583_v7  ;;  %v1518_v48 = vmul.f32 %v1516_v12, %v5583_v7 }
 0x2a4   :  { %v2961_v13 = vadd.f32 %v2959_v44, %v2949_v28  ;;  %v2962_v59 = vadd.f32 %v2960_v54, %v2950_v62  ;;  %v2995_v6 = vmul.f32 %v2990_v46, %v6425_v49  ;;  %v2996_v61 = vmul.f32 %v2994_v40, %v6425_v49  ;;  %v5672_v33 = vpop.permute.xlu1 %1602 }
 0x2a5   :  { %v3007_v37 = vmul.f32 %v3002_v56, %v6426_v20  ;;  %v3008_v19 = vmul.f32 %v3006_v22, %v6426_v20  ;;  %v1519_v23 = vadd.f32 %v1517_v17, %v5579_v51  ;;  %v1520_v5 = vadd.f32 %v1518_v48, %v5581_v9 }
 0x2a6   :  { %v2973_v53 = vadd.f32 %v2971_v10, %v2961_v13  ;;  %v2974_v18 = vadd.f32 %v2972_v58, %v2962_v59  ;;  %v1533_v12 = vmul.f32 %v1528_v50, %v5634_v55  ;;  %v1534_v16 = vmul.f32 %v1532_v4, %v5634_v55  ;;  %v3108_v56 = vpop.permute.xlu0 %3107 }
 0x2a7   :  { %v1544_v45 = vrot.slane %v5597_v0, %v4241_v29  ;;  %v1548_v35 = vrot.slane %v5600_v57, %v4241_v29  ;;  %v1560_v30 = vrot.slane %v5597_v0, %v4271_v15  ;;  %v1564_v51 = vrot.slane %v5600_v57, %v4271_v15 }
 0x2a8   :  { %v2985_v9 = vadd.f32 %v2983_v41, %v2973_v53  ;;  %v2986_v2 = vadd.f32 %v2984_v8, %v2974_v18  ;;  %v1536_v44 = vadd.f32 %v1534_v16, %v1520_v5  ;;  %v1535_v50 = vadd.f32 %v1533_v12, %v1519_v23  ;;  %v3110_v48 = vpop.permute.xlu1 %3109  ;;  %v6429_v53 = vld [vmem:[#allocation20_spill] sm:$0xff]  ;;  %v6430_v18 = vld [vmem:[#allocation22_spill] sm:$0xff] }
 0x2a9   :  { %v1549_v4 = vmul.f32 %v1544_v45, %v5608_v1  ;;  %v1550_v54 = vmul.f32 %v1548_v35, %v5608_v1  ;;  %v1565_v63 = vmul.f32 %v1560_v30, %v5630_v24  ;;  %v1566_v10 = vmul.f32 %v1564_v51, %v5630_v24 }
 0x2aa   :  { %v2997_v58 = vadd.f32 %v2995_v6, %v2985_v9  ;;  %v2998_v26 = vadd.f32 %v2996_v61, %v2986_v2  ;;  %v1576_v28 = vrot.slane %v5597_v0, %v6349_v38  ;;  %v1580_v62 = vrot.slane %v5600_v57, %v6349_v38 }
 0x2ab   :  { %v6427_v41 = vrot.slane %v4995_v32, %v4241_v29  ;;  %v6428_v46 = vrot.slane %v5013_v31, %v4241_v29  ;;  %v1551_v22 = vadd.f32 %v1549_v4, %v1535_v50  ;;  %v1552_v17 = vadd.f32 %v1550_v54, %v1536_v44 }
 0x2ac   :  { %v3009_v13 = vadd.f32 %v3007_v37, %v2997_v58  ;;  %v3010_v59 = vadd.f32 %v3008_v19, %v2998_v26  ;;  %v1592_v49 = vrot.slane %v5597_v0, %v6352_v60  ;;  %v1596_v6 = vrot.slane %v5600_v57, %v6352_v60  ;;  %v1634_v51 = vpop.permute.xlu1 %1633 }
 0x2ad   :  { %v3043_v8 = vmul.f32 %v6427_v41, %v5349_v43  ;;  %v3044_v40 = vmul.f32 %v6428_v46, %v5349_v43  ;;  %v1567_v61 = vadd.f32 %v1565_v63, %v1551_v22  ;;  %v1568_v20 = vadd.f32 %v1566_v10, %v1552_v17  ;;  %v6437_v17 = vld [vmem:[#allocation24_spill] sm:$0xff] }
 0x2ae   :  { %v1581_v23 = vmul.f32 %v1576_v28, %v5656_v47  ;;  %v1582_v5 = vmul.f32 %v1580_v62, %v5656_v47  ;;  %v3021_v43 = vadd.f32 %v6429_v53, %v3009_v13  ;;  %v3022_v12 = vadd.f32 %v6430_v18, %v3010_v59  ;;  %v5728_v62 = vpop.permute.xlu0 %1618  ;;  %v6438_v13 = vld [vmem:[#allocation21_spill] sm:$0xff] }
 0x2af   :  { %v1597_v16 = vmul.f32 %v1592_v49, %v5648_v52  ;;  %v1598_v37 = vmul.f32 %v1596_v6, %v5648_v52  ;;  %v1608_v35 = vrot.slane %v5597_v0, %v4357_v25  ;;  %v1612_v30 = vrot.slane %v5600_v57, %v4357_v25  ;;  %v6440_v18 = vld [vmem:[#allocation45_spill] sm:$0xff] }
 0x2b0   :  { %v1584_v19 = vadd.f32 %v1582_v5, %v1568_v20  ;;  %v1583_v45 = vadd.f32 %v1581_v23, %v1567_v61  ;;  %v6431_v9 = vrot.slane %v4995_v32, %v6349_v38  ;;  %v6432_v44 = vrot.slane %v5013_v31, %v6349_v38  ;;  %v1636_v61 = vpop.permute.xlu1 %1635 }
 0x2b1   :  { %v6433_v4 = vrot.slane %v4995_v32, %v6352_v60  ;;  %v6434_v63 = vrot.slane %v5013_v31, %v6352_v60  ;;  %v6435_v58 = vrot.slane %v4995_v32, %v4360_v27  ;;  %v6436_v28 = vrot.slane %v5013_v31, %v4360_v27 }
 0x2b2   :  { %v3067_v2 = vmul.f32 %v6431_v9, %v5424_v42  ;;  %v3068_v50 = vmul.f32 %v6432_v44, %v5424_v42  ;;  %v1613_v41 = vmul.f32 %v1608_v35, %v5672_v33  ;;  %v1614_v46 = vmul.f32 %v1612_v30, %v5672_v33 }
 0x2b3   :  { %v3079_v54 = vmul.f32 %v6433_v4, %v5470_v36  ;;  %v3080_v10 = vmul.f32 %v6434_v63, %v5470_v36  ;;  %v3103_v26 = vmul.f32 %v6435_v58, %v5515_v3  ;;  %v3104_v42 = vmul.f32 %v6436_v28, %v5515_v3 }
 0x2b4   :  { %v3111_v22 = vsel %vm495_vm4, %v3108_v56, %v3110_v48  ;;  %v3112_v36 = vsel %vm495_vm4, %v3110_v48, %v3108_v56  ;;  %v3033_v32 = vadd.f32 %v6437_v17, %v3021_v43  ;;  %v3034_v59 = vadd.f32 %v6438_v13, %v3022_v12  ;;  %v6439_v43 = vld [vmem:[#allocation44_spill] sm:$0xff] }
 0x2b5   :  { %v1599_v49 = vadd.f32 %v1597_v16, %v1583_v45  ;;  %v1600_v6 = vadd.f32 %v1598_v37, %v1584_v19  ;;  %v1624_v31 = vrot.slane %v5597_v0, %v4360_v27  ;;  %v1628_v3 = vrot.slane %v5600_v57, %v4360_v27  ;;  %v6441_v37 = vld [vmem:[#allocation41_spill] sm:$0xff]  ;;  %v6442_v45 = vld [vmem:[#allocation23_spill] sm:$0xff] }
 0x2b6   :  { %v1637_v20 = vsel %vm576_vm5, %v1634_v51, %v1636_v61  ;;  %v1638_v23 = vsel %vm576_vm5, %v1636_v61, %v1634_v51  ;;  %v3045_v56 = vadd.f32 %v3043_v8, %v3033_v32  ;;  %v3046_v48 = vadd.f32 %v3044_v40, %v3034_v59  ;;  %v5760_v8 = vpop.permute.xlu0 %1642  ;;  %v5768_v51 = vpop.permute.xlu1 %1658 }
 0x2b7   :  { %v5747_v5 = vmul.f32 %v3111_v22, %v6416_v34  ;;  %v5750_v53 = vmul.f32 %v3112_v36, %v6417_v21  ;;  %v5753_v0 = vmul.f32 %v1637_v20, %v6439_v43  ;;  %v5756_v57 = vmul.f32 %v1638_v23, %v6440_v18 }
 0x2b8   :  { %v1615_v12 = vadd.f32 %v1613_v41, %v1599_v49  ;;  %v1616_v16 = vadd.f32 %v1614_v46, %v1600_v6  ;;  %v3057_v19 = vadd.f32 %v6441_v37, %v3045_v56  ;;  %v3058_v35 = vadd.f32 %v6442_v45, %v3046_v48 }
 0x2b9   :  { %v1629_v34 = vmul.f32 %v1624_v31, %v5728_v62  ;;  %v1630_v40 = vmul.f32 %v1628_v3, %v5728_v62  ;;  %v1648_v21 = vrot.slane %v5753_v0, %v4199_v14  ;;  %v1652_v30 = vrot.slane %v5756_v57, %v4199_v14  ;;  %v6443_v3 = vld [vmem:[#allocation25_spill] sm:$0xff] }
 0x2ba   :  { %v1664_v9 = vrot.slane %v5753_v0, %v4232_v39  ;;  %v1668_v44 = vrot.slane %v5756_v57, %v4232_v39  ;;  %v3069_v4 = vadd.f32 %v3067_v2, %v3057_v19  ;;  %v3070_v63 = vadd.f32 %v3068_v50, %v3058_v35  ;;  %v3212_v13 = vpop.permute.xlu1 %3211  ;;  %v3214_v20 = vpop.permute.xlu0 %3213 }
 0x2bb   :  { %v1653_v58 = vmul.f32 %v1648_v21, %v5760_v8  ;;  %v1654_v28 = vmul.f32 %v1652_v30, %v5760_v8  ;;  %v3118_v41 = vrot.slane %v5747_v5, %v4199_v14  ;;  %v3122_v46 = vrot.slane %v5750_v53, %v4199_v14 }
 0x2bc   :  { %v1631_v22 = vadd.f32 %v1629_v34, %v1615_v12  ;;  %v1632_v36 = vadd.f32 %v1630_v40, %v1616_v16  ;;  %v3081_v17 = vadd.f32 %v3079_v54, %v3069_v4  ;;  %v3082_v32 = vadd.f32 %v3080_v10, %v3070_v63  ;;  %v6444_v10 = vld [vmem:[#allocation37_spill] sm:$0xff] }
 0x2bd   :  { %v1680_v59 = vrot.slane %v5753_v0, %v4241_v29  ;;  %v1684_v2 = vrot.slane %v5756_v57, %v4241_v29  ;;  %v3130_v50 = vrot.slane %v5747_v5, %v4232_v39  ;;  %v3134_v49 = vrot.slane %v5750_v53, %v4232_v39 }
 0x2be   :  { %v1669_v6 = vmul.f32 %v1664_v9, %v5768_v51  ;;  %v1670_v31 = vmul.f32 %v1668_v44, %v5768_v51  ;;  %v3093_v54 = vadd.f32 %v6443_v3, %v3081_v17  ;;  %v3094_v61 = vadd.f32 %v6444_v10, %v3082_v32  ;;  %v5804_v30 = vpop.permute.xlu1 %1674 }
 0x2bf   :  { %v1656_v23 = vadd.f32 %v1654_v28, %v1632_v36  ;;  %v1655_v56 = vadd.f32 %v1653_v58, %v1631_v22  ;;  %v3123_v48 = vmul.f32 %v3118_v41, %v5583_v7  ;;  %v3124_v12 = vmul.f32 %v3122_v46, %v5583_v7 }
 0x2c0   :  { %v3215_v16 = vsel %vm576_vm5, %v3212_v13, %v3214_v20  ;;  %v3216_v37 = vsel %vm576_vm5, %v3214_v20, %v3212_v13  ;;  %v3105_v19 = vadd.f32 %v3103_v26, %v3093_v54  ;;  %v3106_v45 = vadd.f32 %v3104_v42, %v3094_v61 }
 0x2c1   :  { %v3135_v35 = vmul.f32 %v3130_v50, %v5634_v55  ;;  %v3136_v34 = vmul.f32 %v3134_v49, %v5634_v55  ;;  %v3142_v40 = vrot.slane %v5747_v5, %v4241_v29  ;;  %v3146_v21 = vrot.slane %v5750_v53, %v4241_v29 }
 0x2c2   :  { %v3125_v7 = vadd.f32 %v3123_v48, %v3105_v19  ;;  %v3126_v9 = vadd.f32 %v3124_v12, %v3106_v45  ;;  %v3154_v44 = vrot.slane %v5747_v5, %v4271_v15  ;;  %v3158_v26 = vrot.slane %v5750_v53, %v4271_v15  ;;  %v5832_v49 = vpop.permute.xlu1 %1706 }
 0x2c3   :  { %v5811_v42 = vmul.f32 %v3215_v16, %v6439_v43  ;;  %v5814_v55 = vmul.f32 %v3216_v37, %v6440_v18  ;;  %v3166_v4 = vrot.slane %v5747_v5, %v6349_v38  ;;  %v3170_v63 = vrot.slane %v5750_v53, %v6349_v38 }
 0x2c4   :  { %v3137_v58 = vadd.f32 %v3135_v35, %v3125_v7  ;;  %v3138_v28 = vadd.f32 %v3136_v34, %v3126_v9  ;;  %v3147_v41 = vmul.f32 %v3142_v40, %v5608_v1  ;;  %v3148_v46 = vmul.f32 %v3146_v21, %v5608_v1 }
 0x2c5   :  { %v3178_v22 = vrot.slane %v5747_v5, %v6352_v60  ;;  %v3182_v43 = vrot.slane %v5750_v53, %v6352_v60  ;;  %v3190_v18 = vrot.slane %v5747_v5, %v4357_v25  ;;  %v3194_v36 = vrot.slane %v5750_v53, %v4357_v25 }
 0x2c6   :  { %v3149_v17 = vadd.f32 %v3147_v41, %v3137_v58  ;;  %v3150_v32 = vadd.f32 %v3148_v46, %v3138_v28  ;;  %v3159_v13 = vmul.f32 %v3154_v44, %v5630_v24  ;;  %v3160_v50 = vmul.f32 %v3158_v26, %v5630_v24  ;;  %v5854_v45 = vpop.permute.xlu1 %1722 }
 0x2c7   :  { %v1671_v1 = vadd.f32 %v1669_v6, %v1655_v56  ;;  %v1672_v3 = vadd.f32 %v1670_v31, %v1656_v23  ;;  %v3202_v54 = vrot.slane %v5747_v5, %v4360_v27  ;;  %v3206_v10 = vrot.slane %v5750_v53, %v4360_v27 }
 0x2c8   :  { %v3161_v61 = vadd.f32 %v3159_v13, %v3149_v17  ;;  %v3162_v20 = vadd.f32 %v3160_v50, %v3150_v32  ;;  %v3171_v48 = vmul.f32 %v3166_v4, %v5656_v47  ;;  %v3172_v12 = vmul.f32 %v3170_v63, %v5656_v47  ;;  %v1691_v63 = vpop.permute.xlu0 %1690 }
 0x2c9   :  { %v3183_v16 = vmul.f32 %v3178_v22, %v5648_v52  ;;  %v3184_v24 = vmul.f32 %v3182_v43, %v5648_v52  ;;  %v3195_v37 = vmul.f32 %v3190_v18, %v5672_v33  ;;  %v3196_v6 = vmul.f32 %v3194_v36, %v5672_v33 }
 0x2ca   :  { %v3173_v31 = vadd.f32 %v3171_v48, %v3161_v61  ;;  %v3174_v23 = vadd.f32 %v3172_v12, %v3162_v20  ;;  %v3222_v5 = vrot.slane %v5811_v42, %v4199_v14  ;;  %v3226_v53 = vrot.slane %v5814_v55, %v4199_v14 }
 0x2cb   :  { %v3207_v56 = vmul.f32 %v3202_v54, %v5728_v62  ;;  %v3208_v47 = vmul.f32 %v3206_v10, %v5728_v62  ;;  %v3234_v19 = vrot.slane %v5811_v42, %v4232_v39  ;;  %v3238_v52 = vrot.slane %v5814_v55, %v4232_v39  ;;  %v5876_v36 = vpop.permute.xlu1 %1754 }
 0x2cc   :  { %v3185_v33 = vadd.f32 %v3183_v16, %v3173_v31  ;;  %v3186_v35 = vadd.f32 %v3184_v24, %v3174_v23  ;;  %v1685_v34 = vmul.f32 %v1680_v59, %v5804_v30  ;;  %v1686_v62 = vmul.f32 %v1684_v2, %v5804_v30 }
 0x2cd   :  { %v3246_v40 = vrot.slane %v5811_v42, %v4241_v29  ;;  %v3250_v21 = vrot.slane %v5814_v55, %v4241_v29  ;;  %v1696_v7 = vrot.slane %v5753_v0, %v4271_v15  ;;  %v1700_v9 = vrot.slane %v5756_v57, %v4271_v15 }
 0x2ce   :  { %v3197_v44 = vadd.f32 %v3195_v37, %v3185_v33  ;;  %v3198_v26 = vadd.f32 %v3196_v6, %v3186_v35  ;;  %v3227_v59 = vmul.f32 %v3222_v5, %v5760_v8  ;;  %v3228_v4 = vmul.f32 %v3226_v53, %v5760_v8 }
 0x2cf   :  { %v3239_v2 = vmul.f32 %v3234_v19, %v5768_v51  ;;  %v3240_v58 = vmul.f32 %v3238_v52, %v5768_v51  ;;  %v1687_v28 = vadd.f32 %v1685_v34, %v1671_v1  ;;  %v1688_v41 = vadd.f32 %v1686_v62, %v1672_v3  ;;  %v1739_v19 = vpop.permute.xlu0 %1738 }
 0x2d0   :  { %v3209_v46 = vadd.f32 %v3207_v56, %v3197_v44  ;;  %v3210_v22 = vadd.f32 %v3208_v47, %v3198_v26  ;;  %v1701_v43 = vmul.f32 %v1696_v7, %v1691_v63  ;;  %v1702_v18 = vmul.f32 %v1700_v9, %v1691_v63  ;;  %v5898_v23 = vpop.permute.xlu1 %1778 }
 0x2d1   :  { %v1712_v17 = vrot.slane %v5753_v0, %v6349_v38  ;;  %v1716_v32 = vrot.slane %v5756_v57, %v6349_v38  ;;  %v3258_v8 = vrot.slane %v5811_v42, %v4271_v15  ;;  %v3262_v51 = vrot.slane %v5814_v55, %v4271_v15 }
 0x2d2   :  { %v3229_v13 = vadd.f32 %v3227_v59, %v3209_v46  ;;  %v3230_v50 = vadd.f32 %v3228_v4, %v3210_v22  ;;  %v3251_v1 = vmul.f32 %v3246_v40, %v5804_v30  ;;  %v3252_v3 = vmul.f32 %v3250_v21, %v5804_v30 }
 0x2d3   :  { %v1704_v54 = vadd.f32 %v1702_v18, %v1688_v41  ;;  %v1703_v10 = vadd.f32 %v1701_v43, %v1687_v28  ;;  %v1717_v61 = vmul.f32 %v1712_v17, %v5832_v49  ;;  %v1718_v20 = vmul.f32 %v1716_v32, %v5832_v49  ;;  %v1770_v43 = vpop.permute.xlu0 %1769 }
 0x2d4   :  { %v3241_v48 = vadd.f32 %v3239_v2, %v3229_v13  ;;  %v3242_v12 = vadd.f32 %v3240_v58, %v3230_v50  ;;  %v1728_v16 = vrot.slane %v5753_v0, %v6352_v60  ;;  %v1732_v24 = vrot.slane %v5756_v57, %v6352_v60  ;;  %v1772_v26 = vpop.permute.xlu1 %1771 }
 0x2d5   :  { %v3263_v37 = vmul.f32 %v3258_v8, %v1691_v63  ;;  %v3264_v6 = vmul.f32 %v3262_v51, %v1691_v63  ;;  %v3270_v31 = vrot.slane %v5811_v42, %v6349_v38  ;;  %v3274_v30 = vrot.slane %v5814_v55, %v6349_v38 }
 0x2d6   :  { %v3253_v5 = vadd.f32 %v3251_v1, %v3241_v48  ;;  %v3254_v53 = vadd.f32 %v3252_v3, %v3242_v12  ;;  %v1733_v56 = vmul.f32 %v1728_v16, %v5854_v45  ;;  %v1734_v47 = vmul.f32 %v1732_v24, %v5854_v45 }
 0x2d7   :  { %v1719_v52 = vadd.f32 %v1717_v61, %v1703_v10  ;;  %v1720_v33 = vadd.f32 %v1718_v20, %v1704_v54  ;;  %v1744_v35 = vrot.slane %v5753_v0, %v4357_v25  ;;  %v1748_v34 = vrot.slane %v5756_v57, %v4357_v25  ;;  %v6445_v10 = vld [vmem:[#allocation46_spill] sm:$0xff] }
 0x2d8   :  { %v3265_v62 = vadd.f32 %v3263_v37, %v3253_v5  ;;  %v3266_v40 = vadd.f32 %v3264_v6, %v3254_v53  ;;  %v3275_v21 = vmul.f32 %v3270_v31, %v5832_v49  ;;  %v3276_v7 = vmul.f32 %v3274_v30, %v5832_v49  ;;  %v3316_v51 = vpop.permute.xlu1 %3315 }
 0x2d9   :  { %v1735_v9 = vadd.f32 %v1733_v56, %v1719_v52  ;;  %v1736_v44 = vadd.f32 %v1734_v47, %v1720_v33  ;;  %v3282_v63 = vrot.slane %v5811_v42, %v6352_v60  ;;  %v3286_v2 = vrot.slane %v5814_v55, %v6352_v60 }
 0x2da   :  { %v3277_v59 = vadd.f32 %v3275_v21, %v3265_v62  ;;  %v3278_v4 = vadd.f32 %v3276_v7, %v3266_v40  ;;  %v1749_v58 = vmul.f32 %v1744_v35, %v1739_v19  ;;  %v1750_v28 = vmul.f32 %v1748_v34, %v1739_v19 }
 0x2db   :  { %v3287_v41 = vmul.f32 %v3282_v63, %v5854_v45  ;;  %v3288_v46 = vmul.f32 %v3286_v2, %v5854_v45  ;;  %v3294_v49 = vrot.slane %v5811_v42, %v4357_v25  ;;  %v3298_v22 = vrot.slane %v5814_v55, %v4357_v25 }
 0x2dc   :  { %v1752_v18 = vadd.f32 %v1750_v28, %v1736_v44  ;;  %v1760_v17 = vrot.slane %v5753_v0, %v4360_v27  ;;  %v1764_v32 = vrot.slane %v5756_v57, %v4360_v27  ;;  %v1751_v8 = vadd.f32 %v1749_v58, %v1735_v9  ;;  %v6446_v0 = vld [vmem:[#allocation47_spill] sm:$0xff]  ;;  %v3318_v30 = vpop.permute.xlu1 %3317 }
 0x2dd   :  { %v3289_v13 = vadd.f32 %v3287_v41, %v3277_v59  ;;  %v3290_v50 = vadd.f32 %v3288_v46, %v3278_v4  ;;  %v1773_v45 = vsel %vm657_vm6, %v1770_v43, %v1772_v26  ;;  %v1774_v1 = vsel %vm657_vm6, %v1772_v26, %v1770_v43 }
 0x2de   :  { %v1765_v3 = vmul.f32 %v1760_v17, %v5876_v36  ;;  %v1766_v54 = vmul.f32 %v1764_v32, %v5876_v36  ;;  %v5929_v61 = vmul.f32 %v1773_v45, %v6445_v10  ;;  %v5932_v20 = vmul.f32 %v1774_v1, %v6446_v0 }
 0x2df   :  { %v3299_v57 = vmul.f32 %v3294_v49, %v1739_v19  ;;  %v3300_v48 = vmul.f32 %v3298_v22, %v1739_v19  ;;  %v3306_v12 = vrot.slane %v5811_v42, %v4360_v27  ;;  %v3310_v16 = vrot.slane %v5814_v55, %v4360_v27  ;;  %v1795_v55 = vpop.permute.xlu0 %1794 }
 0x2e0   :  { %v1784_v24 = vrot.slane %v5929_v61, %v4199_v14  ;;  %v1788_v37 = vrot.slane %v5932_v20, %v4199_v14  ;;  %v1800_v6 = vrot.slane %v5929_v61, %v4232_v39  ;;  %v1804_v31 = vrot.slane %v5932_v20, %v4232_v39  ;;  %v1827_v44 = vpop.permute.xlu1 %1826 }
 0x2e1   :  { %v3301_v5 = vadd.f32 %v3299_v57, %v3289_v13  ;;  %v3302_v53 = vadd.f32 %v3300_v48, %v3290_v50  ;;  %v3311_v42 = vmul.f32 %v3306_v12, %v5876_v36  ;;  %v3312_v56 = vmul.f32 %v3310_v16, %v5876_v36 }
 0x2e2   :  { %v1767_v47 = vadd.f32 %v1765_v3, %v1751_v8  ;;  %v1768_v19 = vadd.f32 %v1766_v54, %v1752_v18  ;;  %v1789_v52 = vmul.f32 %v1784_v24, %v5898_v23  ;;  %v1790_v33 = vmul.f32 %v1788_v37, %v5898_v23 }
 0x2e3   :  { %v1805_v35 = vmul.f32 %v1800_v6, %v1795_v55  ;;  %v1806_v34 = vmul.f32 %v1804_v31, %v1795_v55  ;;  %v1816_v62 = vrot.slane %v5929_v61, %v4241_v29  ;;  %v1820_v40 = vrot.slane %v5932_v20, %v4241_v29  ;;  %v1811_v28 = vpop.permute.xlu0 %1810 }
 0x2e4   :  { %v1791_v21 = vadd.f32 %v1789_v52, %v1767_v47  ;;  %v1792_v7 = vadd.f32 %v1790_v33, %v1768_v19  ;;  %v3319_v36 = vsel %vm657_vm6, %v3316_v51, %v3318_v30  ;;  %v3320_v9 = vsel %vm657_vm6, %v3318_v30, %v3316_v51 }
 0x2e5   :  { %v5959_v26 = vmul.f32 %v3319_v36, %v6445_v10  ;;  %v5962_v59 = vmul.f32 %v3320_v9, %v6446_v0  ;;  %v3313_v4 = vadd.f32 %v3311_v42, %v3301_v5  ;;  %v3314_v63 = vadd.f32 %v3312_v56, %v3302_v53  ;;  %v1843_v45 = vpop.permute.xlu1 %1842 }
 0x2e6   :  { %v1807_v2 = vadd.f32 %v1805_v35, %v1791_v21  ;;  %v1808_v58 = vadd.f32 %v1806_v34, %v1792_v7  ;;  %v1821_v43 = vmul.f32 %v1816_v62, %v1811_v28  ;;  %v1822_v18 = vmul.f32 %v1820_v40, %v1811_v28 }
 0x2e7   :  { %v3326_v41 = vrot.slane %v5959_v26, %v4199_v14  ;;  %v3330_v46 = vrot.slane %v5962_v59, %v4199_v14  ;;  %v3338_v49 = vrot.slane %v5959_v26, %v4232_v39  ;;  %v3342_v22 = vrot.slane %v5962_v59, %v4232_v39  ;;  %v1859_v6 = vpop.permute.xlu0 %1858 }
 0x2e8   :  { %v3350_v17 = vrot.slane %v5959_v26, %v4241_v29  ;;  %v3354_v32 = vrot.slane %v5962_v59, %v4241_v29  ;;  %v1832_v8 = vrot.slane %v5929_v61, %v4271_v15  ;;  %v1836_v51 = vrot.slane %v5932_v20, %v4271_v15 }
 0x2e9   :  { %v3331_v13 = vmul.f32 %v3326_v41, %v5898_v23  ;;  %v3332_v50 = vmul.f32 %v3330_v46, %v5898_v23  ;;  %v1823_v1 = vadd.f32 %v1821_v43, %v1807_v2  ;;  %v1824_v3 = vadd.f32 %v1822_v18, %v1808_v58 }
 0x2ea   :  { %v1848_v54 = vrot.slane %v5929_v61, %v6349_v38  ;;  %v1852_v10 = vrot.slane %v5932_v20, %v6349_v38  ;;  %v3343_v48 = vmul.f32 %v3338_v49, %v1795_v55  ;;  %v3344_v12 = vmul.f32 %v3342_v22, %v1795_v55  ;;  %v1875_v42 = vpop.permute.xlu1 %1874 }
 0x2eb   :  { %v3333_v0 = vadd.f32 %v3331_v13, %v3313_v4  ;;  %v3334_v57 = vadd.f32 %v3332_v50, %v3314_v63  ;;  %v3355_v16 = vmul.f32 %v3350_v17, %v1811_v28  ;;  %v3356_v24 = vmul.f32 %v3354_v32, %v1811_v28  ;;  %v5994_v21 = vpop.permute.xlu0 %1914 }
 0x2ec   :  { %v3362_v37 = vrot.slane %v5959_v26, %v4271_v15  ;;  %v3366_v23 = vrot.slane %v5962_v59, %v4271_v15  ;;  %v1837_v5 = vmul.f32 %v1832_v8, %v1827_v44  ;;  %v1838_v53 = vmul.f32 %v1836_v51, %v1827_v44 }
 0x2ed   :  { %v3345_v31 = vadd.f32 %v3343_v48, %v3333_v0  ;;  %v3346_v30 = vadd.f32 %v3344_v12, %v3334_v57  ;;  %v1853_v19 = vmul.f32 %v1848_v54, %v1843_v45  ;;  %v1854_v52 = vmul.f32 %v1852_v10, %v1843_v45 }
 0x2ee   :  { %v3367_v33 = vmul.f32 %v3362_v37, %v1827_v44  ;;  %v3368_v55 = vmul.f32 %v3366_v23, %v1827_v44  ;;  %v1864_v35 = vrot.slane %v5929_v61, %v6352_v60  ;;  %v1868_v34 = vrot.slane %v5932_v20, %v6352_v60 }
 0x2ef   :  { %v3357_v56 = vadd.f32 %v3355_v16, %v3345_v31  ;;  %v3358_v47 = vadd.f32 %v3356_v24, %v3346_v30  ;;  %v1839_v62 = vadd.f32 %v1837_v5, %v1823_v1  ;;  %v1840_v40 = vadd.f32 %v1838_v53, %v1824_v3  ;;  %v1891_v2 = vpop.permute.xlu1 %1890  ;;  %v6008_v1 = vpop.permute.xlu0 %1930 }
 0x2f0   :  { %v3374_v9 = vrot.slane %v5959_v26, %v6349_v38  ;;  %v3378_v4 = vrot.slane %v5962_v59, %v6349_v38  ;;  %v3386_v41 = vrot.slane %v5959_v26, %v6352_v60  ;;  %v3390_v46 = vrot.slane %v5962_v59, %v6352_v60 }
 0x2f1   :  { %v3369_v7 = vadd.f32 %v3367_v33, %v3357_v56  ;;  %v3370_v36 = vadd.f32 %v3368_v55, %v3358_v47  ;;  %v1855_v63 = vadd.f32 %v1853_v19, %v1839_v62  ;;  %v1856_v44 = vadd.f32 %v1854_v52, %v1840_v40  ;;  %v3747_v19 = vld [vmem:[#allocation2 + $0x10] ss:$0 sm:$0xff]  ;;  %v3748_v52 = vld [vmem:[#allocation2 + $0x18] ss:$0 sm:$0xff] }
 0x2f2   :  { %v3379_v58 = vmul.f32 %v3374_v9, %v1843_v45  ;;  %v3380_v28 = vmul.f32 %v3378_v4, %v1843_v45  ;;  %v1869_v49 = vmul.f32 %v1864_v35, %v1859_v6  ;;  %v1870_v22 = vmul.f32 %v1868_v34, %v1859_v6 }
 0x2f3   :  { %v1880_v43 = vrot.slane %v5929_v61, %v4357_v25  ;;  %v1884_v18 = vrot.slane %v5932_v20, %v4357_v25  ;;  %v1906_v45 = vpop.permute.xlu1 %1905  ;;  %v3391_v3 = vmul.f32 %v3386_v41, %v1859_v6  ;;  %v3392_v54 = vmul.f32 %v3390_v46, %v1859_v6  ;;  %v1947_v33 = vpop.permute.xlu0 %1946 }
 0x2f4   :  { %v3381_v17 = vadd.f32 %v3379_v58, %v3369_v7  ;;  %v3382_v32 = vadd.f32 %v3380_v28, %v3370_v36  ;;  %v1872_v8 = vadd.f32 %v1870_v22, %v1856_v44  ;;  %v1871_v51 = vadd.f32 %v1869_v49, %v1855_v63 }
 0x2f5   :  { %v1885_v13 = vmul.f32 %v1880_v43, %v1875_v42  ;;  %v1886_v50 = vmul.f32 %v1884_v18, %v1875_v42  ;;  %v3398_v10 = vrot.slane %v5959_v26, %v4357_v25  ;;  %v3402_v0 = vrot.slane %v5962_v59, %v4357_v25 }
 0x2f6   :  { %v3393_v57 = vadd.f32 %v3391_v3, %v3381_v17  ;;  %v3394_v48 = vadd.f32 %v3392_v54, %v3382_v32  ;;  %v1896_v23 = vrot.slane %v5929_v61, %v4360_v27  ;;  %v1900_v31 = vrot.slane %v5932_v20, %v4360_v27 }
 0x2f7   :  { %v3403_v12 = vmul.f32 %v3398_v10, %v1875_v42  ;;  %v3404_v16 = vmul.f32 %v3402_v0, %v1875_v42  ;;  %v1887_v24 = vadd.f32 %v1885_v13, %v1871_v51  ;;  %v1888_v37 = vadd.f32 %v1886_v50, %v1872_v8  ;;  %v1908_v30 = vpop.permute.xlu1 %1907  ;;  %v6050_v32 = vpop.permute.xlu0 %1994 }
 0x2f8   :  { %v3410_v6 = vrot.slane %v5959_v26, %v4360_v27  ;;  %v3414_v5 = vrot.slane %v5962_v59, %v4360_v27  ;;  %v1909_v53 = vsel %vm738_vm7, %v1906_v45, %v1908_v30  ;;  %v1910_v42 = vsel %vm738_vm7, %v1908_v30, %v1906_v45 }
 0x2f9   :  { %v1901_v56 = vmul.f32 %v1896_v23, %v1891_v2  ;;  %v1902_v47 = vmul.f32 %v1900_v31, %v1891_v2  ;;  %v6026_v61 = vmul.f32 %v3747_v19, %v1909_v53  ;;  %v6028_v20 = vmul.f32 %v3748_v52, %v1910_v42 }
 0x2fa   :  { %v3405_v55 = vadd.f32 %v3403_v12, %v3393_v57  ;;  %v3406_v26 = vadd.f32 %v3404_v16, %v3394_v48  ;;  %v3415_v35 = vmul.f32 %v3410_v6, %v1891_v2  ;;  %v3416_v34 = vmul.f32 %v3414_v5, %v1891_v2 }
 0x2fb   :  { %v1920_v59 = vrot.slane %v6026_v61, %v4199_v14  ;;  %v1924_v62 = vrot.slane %v6028_v20, %v4199_v14  ;;  %v1936_v40 = vrot.slane %v6026_v61, %v4232_v39  ;;  %v1940_v7 = vrot.slane %v6028_v20, %v4232_v39  ;;  %v3420_v36 = vpop.permute.xlu1 %3419 }
 0x2fc   :  { %v1952_v9 = vrot.slane %v6026_v61, %v4241_v29  ;;  %v1956_v4 = vrot.slane %v6028_v20, %v4241_v29  ;;  %v1903_v63 = vadd.f32 %v1901_v56, %v1887_v24  ;;  %v1904_v44 = vadd.f32 %v1902_v47, %v1888_v37 }
 0x2fd   :  { %v1925_v2 = vmul.f32 %v1920_v59, %v5994_v21  ;;  %v1926_v58 = vmul.f32 %v1924_v62, %v5994_v21  ;;  %v3417_v28 = vadd.f32 %v3415_v35, %v3405_v55  ;;  %v3418_v41 = vadd.f32 %v3416_v34, %v3406_v26 }
 0x2fe   :  { %v2000_v46 = vrot.slane %v6026_v61, %v6352_v60  ;;  %v2004_v49 = vrot.slane %v6028_v20, %v6352_v60  ;;  %v1941_v18 = vmul.f32 %v1936_v40, %v6008_v1  ;;  %v1942_v17 = vmul.f32 %v1940_v7, %v6008_v1 }
 0x2ff   :  { %v1927_v22 = vadd.f32 %v1925_v2, %v1903_v63  ;;  %v1928_v43 = vadd.f32 %v1926_v58, %v1904_v44  ;;  %v3422_v8 = vpop.permute.xlu1 %3421  ;;  %v1957_v51 = vmul.f32 %v1952_v9, %v1947_v33  ;;  %v1958_v13 = vmul.f32 %v1956_v4, %v1947_v33 }
 0x300   :  { %v3423_v50 = vsel %vm738_vm7, %v3420_v36, %v3422_v8  ;;  %v3424_v45 = vsel %vm738_vm7, %v3422_v8, %v3420_v36  ;;  %v2005_v57 = vmul.f32 %v2000_v46, %v6050_v32  ;;  %v2006_v48 = vmul.f32 %v2004_v49, %v6050_v32 }
 0x301   :  { %v1943_v3 = vadd.f32 %v1941_v18, %v1927_v22  ;;  %v1944_v54 = vadd.f32 %v1942_v17, %v1928_v43  ;;  %v6056_v10 = vmul.f32 %v3747_v19, %v3423_v50  ;;  %v6058_v0 = vmul.f32 %v3748_v52, %v3424_v45 }
 0x302   :  { %v1968_v12 = vrot.slane %v6026_v61, %v4271_v15  ;;  %v1972_v16 = vrot.slane %v6028_v20, %v4271_v15  ;;  %v1984_v23 = vrot.slane %v6026_v61, %v6349_v38  ;;  %v1988_v31 = vrot.slane %v6028_v20, %v6349_v38 }
 0x303   :  { %v3430_v11 = vrot.slane %v6056_v10, %v4199_v14  ;;  %v3434_v24 = vrot.slane %v6058_v0, %v4199_v14  ;;  %v1963_v37 = vpop.permute.xlu1 %1962  ;;  %v3442_v30 = vrot.slane %v6056_v10, %v4232_v39  ;;  %v3446_v6 = vrot.slane %v6058_v0, %v4232_v39 }
 0x304   :  { %v3454_v5 = vrot.slane %v6056_v10, %v4241_v29  ;;  %v3458_v53 = vrot.slane %v6058_v0, %v4241_v29  ;;  %v1959_v14 = vadd.f32 %v1957_v51, %v1943_v3  ;;  %v1960_v42 = vadd.f32 %v1958_v13, %v1944_v54 }
 0x305   :  { %v3435_v56 = vmul.f32 %v3430_v11, %v5994_v21  ;;  %v3436_v47 = vmul.f32 %v3434_v24, %v5994_v21  ;;  %v3447_v19 = vmul.f32 %v3442_v30, %v6008_v1  ;;  %v3448_v52 = vmul.f32 %v3446_v6, %v6008_v1 }
 0x306   :  { %v3466_v55 = vrot.slane %v6056_v10, %v4271_v15  ;;  %v3470_v39 = vrot.slane %v6058_v0, %v4271_v15  ;;  %v1973_v34 = vmul.f32 %v1968_v12, %v1963_v37  ;;  %v1974_v29 = vmul.f32 %v1972_v16, %v1963_v37 }
 0x307   :  { %v3437_v26 = vadd.f32 %v3435_v56, %v3417_v28  ;;  %v3438_v35 = vadd.f32 %v3436_v47, %v3418_v41  ;;  %v3459_v59 = vmul.f32 %v3454_v5, %v1947_v33  ;;  %v3460_v62 = vmul.f32 %v3458_v53, %v1947_v33  ;;  %v2044_v47 = vpop.permute.xlu0 %2043 }
 0x308   :  { %v2016_v21 = vrot.slane %v6026_v61, %v4357_v25  ;;  %v2020_v7 = vrot.slane %v6028_v20, %v4357_v25  ;;  %v3478_v9 = vrot.slane %v6056_v10, %v6349_v38  ;;  %v3482_v15 = vrot.slane %v6058_v0, %v6349_v38 }
 0x309   :  { %v3449_v1 = vadd.f32 %v3447_v19, %v3437_v26  ;;  %v3450_v36 = vadd.f32 %v3448_v52, %v3438_v35  ;;  %v1975_v4 = vadd.f32 %v1973_v34, %v1959_v14  ;;  %v1976_v63 = vadd.f32 %v1974_v29, %v1960_v42 }
 0x30a   :  { %v3471_v28 = vmul.f32 %v3466_v55, %v1963_v37  ;;  %v3472_v41 = vmul.f32 %v3470_v39, %v1963_v37  ;;  %v3490_v51 = vrot.slane %v6056_v10, %v6352_v60  ;;  %v3494_v38 = vrot.slane %v6058_v0, %v6352_v60 }
 0x30b   :  { %v1979_v40 = vpop.permute.xlu1 %1978  ;;  %v3461_v33 = vadd.f32 %v3459_v59, %v3449_v1  ;;  %v3462_v58 = vadd.f32 %v3460_v62, %v3450_v36  ;;  %v3502_v13 = vrot.slane %v6056_v10, %v4357_v25  ;;  %v3506_v50 = vrot.slane %v6058_v0, %v4357_v25 }
 0x30c   :  { %v1989_v44 = vmul.f32 %v1984_v23, %v1979_v40  ;;  %v1990_v2 = vmul.f32 %v1988_v31, %v1979_v40  ;;  %v3483_v22 = vmul.f32 %v3478_v9, %v1979_v40  ;;  %v3484_v43 = vmul.f32 %v3482_v15, %v1979_v40 }
 0x30d   :  { %v3473_v18 = vadd.f32 %v3471_v28, %v3461_v33  ;;  %v3474_v17 = vadd.f32 %v3472_v41, %v3462_v58  ;;  %v2032_v24 = vrot.slane %v6026_v61, %v4360_v27  ;;  %v2036_v37 = vrot.slane %v6028_v20, %v4360_v27 }
 0x30e   :  { %v1991_v46 = vadd.f32 %v1989_v44, %v1975_v4  ;;  %v1992_v49 = vadd.f32 %v1990_v2, %v1976_v63  ;;  %v3495_v60 = vmul.f32 %v3490_v51, %v6050_v32  ;;  %v3496_v23 = vmul.f32 %v3494_v38, %v6050_v32 }
 0x30f   :  { %v3485_v54 = vadd.f32 %v3483_v22, %v3473_v18  ;;  %v3486_v12 = vadd.f32 %v3484_v43, %v3474_v17  ;;  %v3514_v25 = vrot.slane %v6056_v10, %v4360_v27  ;;  %v3518_v6 = vrot.slane %v6058_v0, %v4360_v27 }
 0x310   :  { %v2007_v16 = vadd.f32 %v2005_v57, %v1991_v46  ;;  %v2008_v11 = vadd.f32 %v2006_v48, %v1992_v49 }
 0x311   :  { %v2011_v8 = vpop.permute.xlu1 %2010  ;;  %v3497_v53 = vadd.f32 %v3495_v60, %v3485_v54  ;;  %v3498_v61 = vadd.f32 %v3496_v23, %v3486_v12 }
 0x312   :  { %v2021_v45 = vmul.f32 %v2016_v21, %v2011_v8  ;;  %v2022_v3 = vmul.f32 %v2020_v7, %v2011_v8  ;;  %v3507_v31 = vmul.f32 %v3502_v13, %v2011_v8  ;;  %v3508_v30 = vmul.f32 %v3506_v50, %v2011_v8 }
 0x314   :  { %v2023_v48 = vadd.f32 %v2021_v45, %v2007_v16  ;;  %v2024_v5 = vadd.f32 %v2022_v3, %v2008_v11  ;;  %v3509_v19 = vadd.f32 %v3507_v31, %v3497_v53  ;;  %v3510_v32 = vadd.f32 %v3508_v30, %v3498_v61 }
 0x316   :  { %v2027_v57 = vpop.permute.xlu1 %2026 }
 0x317   :  { %v2037_v14 = vmul.f32 %v2032_v24, %v2027_v57  ;;  %v2038_v42 = vmul.f32 %v2036_v37, %v2027_v57  ;;  %v3519_v20 = vmul.f32 %v3514_v25, %v2027_v57  ;;  %v3520_v56 = vmul.f32 %v3518_v6, %v2027_v57 }
 0x319   :  { %v2039_v52 = vadd.f32 %v2037_v14, %v2023_v48  ;;  %v2040_v55 = vadd.f32 %v2038_v42, %v2024_v5  ;;  %v3521_v39 = vadd.f32 %v3519_v20, %v3509_v19  ;;  %v3522_v26 = vadd.f32 %v3520_v56, %v3510_v32 }
 0x31b   :  { %v2046_v10 = vadd.f32 %v2044_v47, %v2039_v52  ;;  %v2047_v35 = vadd.f32 %v2044_v47, %v2040_v55  ;;  %v3523_v27 = vadd.f32 %v3521_v39, %v2044_v47  ;;  %v3524_v0 = vadd.f32 %v3522_v26, %v2044_v47 }
 0x31d   :  { %v2048_v34 = vmax.f32 %v2046_v10, 0.0  ;;  %v2049_v29 = vmax.f32 %v2047_v35, 0.0  ;;  %v3525_v59 = vmax.f32 %v3523_v27, 0.0  ;;  %v3526_v62 = vmax.f32 %v3524_v0, 0.0 }
 0x31f   :  { %2050 = vst [vmem:[#allocation7] sm:$0xff] %v2048_v34  ;;  %2051 = vst [vmem:[#allocation7 + $0x8] sm:$0xff] %v2049_v29 }
 0x320   :  { %3528 = vst [vmem:[#allocation7 + $0x10] sm:$0xff] %v3525_v59  ;;  %3529 = vst [vmem:[#allocation7 + $0x18] sm:$0xff] %v3526_v62 }
 0x321   :  { %3804 = shalt.err (!%p3801_p6)
}
 0x322   :  { %s3805_s15 = scalar_lea.hbm %s6136_s5, 512 }
 0x323   :  { %p3806_p7 = scmp.ne.s32.totalorder %s6136_s5, %s3805_s15  ;;  %p3809_p8 = scmp.lt.u32.totalorder %s3805_s15, %s6136_s5 }
 0x325   :  { %p3811_p9 = pnand %p3809_p8, %p3806_p7 }
 0x327   :  { %3814 = shalt.err (!%p3811_p9)
}
 0x328   :  { %3541 = dma.vmem_to_hbm [thread:$0]  %s3536_s11, 512, %s6136_s5, [#allocation4], %s3822_s28, %s3822_s28, %s3823_s29  }
 0x329   :  { %3819 = dma.done.wait [#allocation4], 512  }
 0x32a   :  { %3820 = vsyncadd [#allocation4], 4294966784 }
 0x32b   :  { %3545 = vsyncpa [#allocation3], 1 }
 0x32c   :  { %3546 = vsyncpa [#allocation6], 1 }
 0x32d   :  { %3547 = vsyncpa [#allocation4], 1 }

</bundles_post_ra>
